<compile_context>
chip_gen: v7x
topology: tpu7x:2x2x1
jax: 0.10.0
libtpu: 0.0.40
codegen_flags: <defaults>
</compile_context>

<pallas_src>
import jax
import jax.numpy as jnp
import numpy as np
from jax import lax
from jax.experimental import pallas as pl
from jax.experimental.pallas import tpu as pltpu


def ffm_kernel(x1_ref, x2_ref, w1_ref, b1_ref, w2_ref, b2_ref, out_ref, mid_ref):
    _, Hp, Wp, Cp = x1_ref.shape
    H, W = Hp - 2, Wp - 2

    def im2col(xp):
        # xp: (Hp, Wp, Cp) bf16 padded plane -> (H*W, 9*Cp) patch slab.
        taps = []
        for dy in range(3):
            for dx in range(3):
                taps.append(xp[dy:dy + H, dx:dx + W, :].reshape(H * W, Cp))
        return jnp.concatenate(taps, axis=-1)

    # Fused elementwise product on the padded tiles (f32 VPU), cast for the MXU.
    prod = (x1_ref[0] * x2_ref[0]).astype(jnp.bfloat16)          # (Hp, Wp, Cp)

    # ---- conv1 (BN scale folded into w1) as a single im2col matmul ----
    acc1 = jnp.dot(im2col(prod), w1_ref[...],
                   preferred_element_type=jnp.float32)           # (H*W, Cp) f32
    y = jnp.maximum(acc1 + b1_ref[...], 0.0)                     # bias + ReLU

    # ---- stage intermediate with a 1-pixel zero halo for conv2 ----
    # Only the halo is zeroed (every step, so it is correct even when the batch
    # grid axis is sharded across cores); the interior is fully overwritten.
    mid_ref[0] = jnp.zeros((Wp, Cp), jnp.bfloat16)
    mid_ref[Hp - 1] = jnp.zeros((Wp, Cp), jnp.bfloat16)
    mid_ref[1:H + 1, 0:1, :] = jnp.zeros((H, 1, Cp), jnp.bfloat16)
    mid_ref[1:H + 1, Wp - 1:Wp, :] = jnp.zeros((H, 1, Cp), jnp.bfloat16)
    mid_ref[1:H + 1, 1:W + 1, :] = y.reshape(H, W, Cp).astype(jnp.bfloat16)

    # ---- conv2 (BN scale folded into w2) ----
    acc2 = jnp.dot(im2col(mid_ref[...]), w2_ref[...],
                   preferred_element_type=jnp.float32)
    z = jnp.maximum(acc2 + b2_ref[...], 0.0)

    out_ref[0] = z.reshape(H, W, Cp).astype(out_ref.dtype)       # lane-dense store


def ffm_forward(x1, x2, w1, w2, s1, b1, s2, b2):
    """x1, x2: NCHW float32. w*: (3,3,C,C) HWIO. s*/b*: (1,C). Returns NCHW."""
    N, C, H, W = x1.shape
    Cp = max(128, ((C + 127) // 128) * 128)      # lane-dense channel padding
    Hp, Wp = H + 2, W + 2

    def prep_x(x):
        xn = jnp.transpose(x, (0, 2, 3, 1))                        # NHWC
        return jnp.pad(xn, ((0, 0), (1, 1), (1, 1), (0, Cp - C)))  # halo + C pad

    x1n, x2n = prep_x(x1), prep_x(x2)

    def prep_w(w, s):
        # Fold eval-mode BN scale into the conv output channels, pad channels
        # to Cp and flatten to the im2col weight matrix (9*Cp, Cp) in bf16.
        ws = w * s[0][None, None, None, :]
        wp = jnp.pad(ws, ((0, 0), (0, 0), (0, Cp - C), (0, Cp - C)))
        return wp.reshape(9 * Cp, Cp).astype(jnp.bfloat16)

    w1m, w2m = prep_w(w1, s1), prep_w(w2, s2)
    b1p = jnp.pad(b1, ((0, 0), (0, Cp - C))).astype(jnp.float32)   # (1, Cp)
    b2p = jnp.pad(b2, ((0, 0), (0, Cp - C))).astype(jnp.float32)

    flops = int(4 * N * H * W * 9 * Cp * Cp)          # 2 convs x 2 flops/MAC
    bytes_acc = int((x1n.size + x2n.size) * 4 + (w1m.size + w2m.size) * 2
                    + (b1p.size + b2p.size) * 4 + N * H * W * Cp * 4)

    out_nhwc = pl.pallas_call(
        ffm_kernel,
        out_shape=jax.ShapeDtypeStruct((N, H, W, Cp), jnp.float32),
        grid_spec=pltpu.PrefetchScalarGridSpec(
            num_scalar_prefetch=0,
            grid=(N,),
            in_specs=[
                pl.BlockSpec((1, Hp, Wp, Cp), lambda n: (n, 0, 0, 0)),
                pl.BlockSpec((1, Hp, Wp, Cp), lambda n: (n, 0, 0, 0)),
                pl.BlockSpec((9 * Cp, Cp), lambda n: (0, 0)),
                pl.BlockSpec((1, Cp), lambda n: (0, 0)),
                pl.BlockSpec((9 * Cp, Cp), lambda n: (0, 0)),
                pl.BlockSpec((1, Cp), lambda n: (0, 0)),
            ],
            out_specs=pl.BlockSpec((1, H, W, Cp), lambda n: (n, 0, 0, 0)),
            scratch_shapes=[pltpu.VMEM((Hp, Wp, Cp), jnp.bfloat16)],
        ),
        compiler_params=pltpu.CompilerParams(
            dimension_semantics=("parallel",)),
        cost_estimate=pl.CostEstimate(flops=flops, transcendentals=0,
                                      bytes_accessed=bytes_acc),
    )(x1n, x2n, w1m, b1p, w2m, b2p)

    return jnp.transpose(out_nhwc[..., :C], (0, 3, 1, 2))


def ffm_reference(x1, x2, w1, w2, s1, b1, s2, b2):
    """Pure-JAX reference (NCHW, f32), mirrors the PyTorch forward."""
    def conv(x, w_hwio):
        w_oihw = jnp.transpose(w_hwio, (3, 2, 0, 1))
        return lax.conv_general_dilated(
            x, w_oihw, (1, 1), ((1, 1), (1, 1)),
            dimension_numbers=("NCHW", "OIHW", "NCHW"))

    out = x1 * x2
    out = conv(out, w1)
    out = jnp.maximum(out * s1[0][None, :, None, None]
                      + b1[0][None, :, None, None], 0.0)
    out = conv(out, w2)
    out = jnp.maximum(out * s2[0][None, :, None, None]
                      + b2[0][None, :, None, None], 0.0)
    return out


def make_params(key, channel):
    """Deterministic params matching FFM.__init__ + weight_init()."""
    k1, k2 = jax.random.split(key, 2)
    fan_in = channel * 3 * 3
    std = float(np.sqrt(2.0 / fan_in))           # kaiming_normal_, fan_in, relu
    w1 = std * jax.random.normal(k1, (3, 3, channel, channel), jnp.float32)
    w2 = std * jax.random.normal(k2, (3, 3, channel, channel), jnp.float32)

    # BatchNorm2d (eval mode): gamma=1, beta=0, running_mean=0, running_var=1
    eps = 1e-5
    gamma = jnp.ones((channel,), jnp.float32)
    beta = jnp.zeros((channel,), jnp.float32)
    rmean = jnp.zeros((channel,), jnp.float32)
    rvar = jnp.ones((channel,), jnp.float32)
    scale = gamma / jnp.sqrt(rvar + eps)
    bias = beta - rmean * scale
    s1 = scale[None, :]
    b1 = bias[None, :]
    s2 = scale[None, :]
    b2 = bias[None, :]
    return w1, w2, s1, b1, s2, b2


if __name__ == "__main__":
    key = jax.random.PRNGKey(0)
    kx1, kx2, kp = jax.random.split(key, 3)

    N, C, H, W = 2, 8, 16, 16
    x1 = jax.random.normal(kx1, (N, C, H, W), jnp.float32)
    x2 = jax.random.normal(kx2, (N, C, H, W), jnp.float32)
    w1, w2, s1, b1, s2, b2 = make_params(kp, C)

    out = ffm_forward(x1, x2, w1, w2, s1, b1, s2, b2)
    out = jax.block_until_ready(out)

    ref = jax.block_until_ready(ffm_reference(x1, x2, w1, w2, s1, b1, s2, b2))
    # bf16 MXU inputs (f32 accumulation) -> relaxed tolerance vs the f32 reference.
    np.testing.assert_allclose(np.asarray(out), np.asarray(ref),
                               rtol=2e-2, atol=2e-2)
    print("KERNEL_OK")
</pallas_src>

<mosaic_0001>
module attributes {stable_mosaic.version = 11 : i64} {
  func.func @ffm_kernel(%arg0: i32, %arg1: memref<1x18x18x128xf32, #tpu.memory_space<vmem>>, %arg2: memref<1x18x18x128xf32, #tpu.memory_space<vmem>>, %arg3: memref<1152x128xbf16, #tpu.memory_space<vmem>>, %arg4: memref<1x128xf32, #tpu.memory_space<vmem>>, %arg5: memref<1152x128xbf16, #tpu.memory_space<vmem>>, %arg6: memref<1x128xf32, #tpu.memory_space<vmem>>, %arg7: memref<1x16x16x128xf32, #tpu.memory_space<vmem>>, %arg8: memref<18x18x128xbf16, #tpu.memory_space<vmem>>) attributes {dimension_semantics = [#tpu.dimension_semantics<parallel>], iteration_bounds = array<i64: 2>, scalar_prefetch = 0 : i64, scratch_operands = 1 : i64, tpu.core_type = #tpu.core_type<tc>, window_params = [{transform_indices = @transform_0, window_bounds = array<i64: 1, 18, 18, 128>}, {transform_indices = @transform_1, window_bounds = array<i64: 1, 18, 18, 128>}, {pipeline_mode = #tpu.pipeline_mode<synchronous>, transform_indices = @transform_2, window_bounds = array<i64: 1152, 128>}, {pipeline_mode = #tpu.pipeline_mode<synchronous>, transform_indices = @transform_3, window_bounds = array<i64: 1, 128>}, {pipeline_mode = #tpu.pipeline_mode<synchronous>, transform_indices = @transform_4, window_bounds = array<i64: 1152, 128>}, {pipeline_mode = #tpu.pipeline_mode<synchronous>, transform_indices = @transform_5, window_bounds = array<i64: 1, 128>}, {transform_indices = @transform_6, window_bounds = array<i64: 1, 16, 16, 128>}]} {
    %c0 = arith.constant 0 : index
    %c0_0 = arith.constant 0 : index
    %c0_1 = arith.constant 0 : index
    %c0_2 = arith.constant 0 : index
    %0 = vector.load %arg1[%c0, %c0_0, %c0_1, %c0_2] : memref<1x18x18x128xf32, #tpu.memory_space<vmem>>, vector<1x18x18x128xf32>
    %1 = vector.shape_cast %0 : vector<1x18x18x128xf32> to vector<18x18x128xf32>
    %c0_3 = arith.constant 0 : index
    %c0_4 = arith.constant 0 : index
    %c0_5 = arith.constant 0 : index
    %c0_6 = arith.constant 0 : index
    %2 = vector.load %arg2[%c0_3, %c0_4, %c0_5, %c0_6] : memref<1x18x18x128xf32, #tpu.memory_space<vmem>>, vector<1x18x18x128xf32>
    %3 = vector.shape_cast %2 : vector<1x18x18x128xf32> to vector<18x18x128xf32>
    %4 = arith.mulf %1, %3 : vector<18x18x128xf32>
    %5 = arith.truncf %4 : vector<18x18x128xf32> to vector<18x18x128xbf16>
    %6 = vector.extract_strided_slice %5 {offsets = [0, 0, 0], sizes = [16, 16, 128], strides = [1, 1, 1]} : vector<18x18x128xbf16> to vector<16x16x128xbf16>
    %7 = vector.shape_cast %6 : vector<16x16x128xbf16> to vector<256x128xbf16>
    %8 = vector.extract_strided_slice %5 {offsets = [0, 1, 0], sizes = [16, 16, 128], strides = [1, 1, 1]} : vector<18x18x128xbf16> to vector<16x16x128xbf16>
    %9 = vector.shape_cast %8 : vector<16x16x128xbf16> to vector<256x128xbf16>
    %10 = vector.extract_strided_slice %5 {offsets = [0, 2, 0], sizes = [16, 16, 128], strides = [1, 1, 1]} : vector<18x18x128xbf16> to vector<16x16x128xbf16>
    %11 = vector.shape_cast %10 : vector<16x16x128xbf16> to vector<256x128xbf16>
    %12 = vector.extract_strided_slice %5 {offsets = [1, 0, 0], sizes = [16, 16, 128], strides = [1, 1, 1]} : vector<18x18x128xbf16> to vector<16x16x128xbf16>
    %13 = vector.shape_cast %12 : vector<16x16x128xbf16> to vector<256x128xbf16>
    %14 = vector.extract_strided_slice %5 {offsets = [1, 1, 0], sizes = [16, 16, 128], strides = [1, 1, 1]} : vector<18x18x128xbf16> to vector<16x16x128xbf16>
    %15 = vector.shape_cast %14 : vector<16x16x128xbf16> to vector<256x128xbf16>
    %16 = vector.extract_strided_slice %5 {offsets = [1, 2, 0], sizes = [16, 16, 128], strides = [1, 1, 1]} : vector<18x18x128xbf16> to vector<16x16x128xbf16>
    %17 = vector.shape_cast %16 : vector<16x16x128xbf16> to vector<256x128xbf16>
    %18 = vector.extract_strided_slice %5 {offsets = [2, 0, 0], sizes = [16, 16, 128], strides = [1, 1, 1]} : vector<18x18x128xbf16> to vector<16x16x128xbf16>
    %19 = vector.shape_cast %18 : vector<16x16x128xbf16> to vector<256x128xbf16>
    %20 = vector.extract_strided_slice %5 {offsets = [2, 1, 0], sizes = [16, 16, 128], strides = [1, 1, 1]} : vector<18x18x128xbf16> to vector<16x16x128xbf16>
    %21 = vector.shape_cast %20 : vector<16x16x128xbf16> to vector<256x128xbf16>
    %22 = vector.extract_strided_slice %5 {offsets = [2, 2, 0], sizes = [16, 16, 128], strides = [1, 1, 1]} : vector<18x18x128xbf16> to vector<16x16x128xbf16>
    %23 = vector.shape_cast %22 : vector<16x16x128xbf16> to vector<256x128xbf16>
    %24 = tpu.concatenate %7, %9, %11, %13, %15, %17, %19, %21, %23 in 1 : vector<256x128xbf16>, vector<256x128xbf16>, vector<256x128xbf16>, vector<256x128xbf16>, vector<256x128xbf16>, vector<256x128xbf16>, vector<256x128xbf16>, vector<256x128xbf16>, vector<256x128xbf16> -> vector<256x1152xbf16>
    %c0_7 = arith.constant 0 : index
    %c0_8 = arith.constant 0 : index
    %25 = vector.load %arg3[%c0_7, %c0_8] : memref<1152x128xbf16, #tpu.memory_space<vmem>>, vector<1152x128xbf16>
    %cst = arith.constant dense<0.000000e+00> : vector<256x128xf32>
    %26 = tpu.matmul %24, %25, %cst {dimension_numbers = #tpu.dot_dimension_numbers<[1], [0], [0], [1], [0, 0, 1, 1], [], []>} : vector<256x1152xbf16>, vector<1152x128xbf16>, vector<256x128xf32> -> vector<256x128xf32>
    %c0_9 = arith.constant 0 : index
    %c0_10 = arith.constant 0 : index
    %27 = vector.load %arg4[%c0_9, %c0_10] : memref<1x128xf32, #tpu.memory_space<vmem>>, vector<1x128xf32>
    %28 = vector.broadcast %27 : vector<1x128xf32> to vector<256x128xf32>
    %29 = arith.addf %26, %28 : vector<256x128xf32>
    %cst_11 = arith.constant 0.000000e+00 : f32
    %30 = vector.broadcast %cst_11 : f32 to vector<256x128xf32>
    %31 = arith.maximumf %29, %30 : vector<256x128xf32>
    %cst_12 = arith.constant 0.000000e+00 : bf16
    %32 = vector.broadcast %cst_12 : bf16 to vector<18x128xbf16>
    %c0_13 = arith.constant 0 : index
    %c0_14 = arith.constant 0 : index
    %c0_15 = arith.constant 0 : index
    %33 = vector.load %arg8[%c0_13, %c0_14, %c0_15] : memref<18x18x128xbf16, #tpu.memory_space<vmem>>, vector<1x18x128xbf16>
    %34 = vector.shape_cast %33 : vector<1x18x128xbf16> to vector<18x128xbf16>
    %35 = vector.shape_cast %32 : vector<18x128xbf16> to vector<1x18x128xbf16>
    tpu.vector_store %arg8[%c0_13, %c0_14, %c0_15], %35 {strides = array<i32>} : memref<18x18x128xbf16, #tpu.memory_space<vmem>>, vector<1x18x128xbf16>,
    %cst_16 = arith.constant 0.000000e+00 : bf16
    %36 = vector.broadcast %cst_16 : bf16 to vector<18x128xbf16>
    %c17 = arith.constant 17 : index
    %c0_17 = arith.constant 0 : index
    %c0_18 = arith.constant 0 : index
    %37 = vector.load %arg8[%c17, %c0_17, %c0_18] : memref<18x18x128xbf16, #tpu.memory_space<vmem>>, vector<1x18x128xbf16>
    %38 = vector.shape_cast %37 : vector<1x18x128xbf16> to vector<18x128xbf16>
    %39 = vector.shape_cast %36 : vector<18x128xbf16> to vector<1x18x128xbf16>
    tpu.vector_store %arg8[%c17, %c0_17, %c0_18], %39 {strides = array<i32>} : memref<18x18x128xbf16, #tpu.memory_space<vmem>>, vector<1x18x128xbf16>,
    %cst_19 = arith.constant 0.000000e+00 : bf16
    %40 = vector.broadcast %cst_19 : bf16 to vector<16x1x128xbf16>
    %c1 = arith.constant 1 : index
    %c0_20 = arith.constant 0 : index
    %c0_21 = arith.constant 0 : index
    %41 = vector.load %arg8[%c1, %c0_20, %c0_21] : memref<18x18x128xbf16, #tpu.memory_space<vmem>>, vector<16x1x128xbf16>
    tpu.vector_store %arg8[%c1, %c0_20, %c0_21], %40 {strides = array<i32>} : memref<18x18x128xbf16, #tpu.memory_space<vmem>>, vector<16x1x128xbf16>,
    %cst_22 = arith.constant 0.000000e+00 : bf16
    %42 = vector.broadcast %cst_22 : bf16 to vector<16x1x128xbf16>
    %c1_23 = arith.constant 1 : index
    %c17_24 = arith.constant 17 : index
    %c0_25 = arith.constant 0 : index
    %43 = vector.load %arg8[%c1_23, %c17_24, %c0_25] : memref<18x18x128xbf16, #tpu.memory_space<vmem>>, vector<16x1x128xbf16>
    tpu.vector_store %arg8[%c1_23, %c17_24, %c0_25], %42 {strides = array<i32>} : memref<18x18x128xbf16, #tpu.memory_space<vmem>>, vector<16x1x128xbf16>,
    %44 = vector.shape_cast %31 : vector<256x128xf32> to vector<16x16x128xf32>
    %45 = arith.truncf %44 : vector<16x16x128xf32> to vector<16x16x128xbf16>
    %c1_26 = arith.constant 1 : index
    %c1_27 = arith.constant 1 : index
    %c0_28 = arith.constant 0 : index
    %46 = vector.load %arg8[%c1_26, %c1_27, %c0_28] : memref<18x18x128xbf16, #tpu.memory_space<vmem>>, vector<16x16x128xbf16>
    tpu.vector_store %arg8[%c1_26, %c1_27, %c0_28], %45 {strides = array<i32>} : memref<18x18x128xbf16, #tpu.memory_space<vmem>>, vector<16x16x128xbf16>,
    %c0_29 = arith.constant 0 : index
    %c0_30 = arith.constant 0 : index
    %c0_31 = arith.constant 0 : index
    %47 = vector.load %arg8[%c0_29, %c0_30, %c0_31] : memref<18x18x128xbf16, #tpu.memory_space<vmem>>, vector<18x18x128xbf16>
    %48 = vector.extract_strided_slice %47 {offsets = [0, 0, 0], sizes = [16, 16, 128], strides = [1, 1, 1]} : vector<18x18x128xbf16> to vector<16x16x128xbf16>
    %49 = vector.shape_cast %48 : vector<16x16x128xbf16> to vector<256x128xbf16>
    %50 = vector.extract_strided_slice %47 {offsets = [0, 1, 0], sizes = [16, 16, 128], strides = [1, 1, 1]} : vector<18x18x128xbf16> to vector<16x16x128xbf16>
    %51 = vector.shape_cast %50 : vector<16x16x128xbf16> to vector<256x128xbf16>
    %52 = vector.extract_strided_slice %47 {offsets = [0, 2, 0], sizes = [16, 16, 128], strides = [1, 1, 1]} : vector<18x18x128xbf16> to vector<16x16x128xbf16>
    %53 = vector.shape_cast %52 : vector<16x16x128xbf16> to vector<256x128xbf16>
    %54 = vector.extract_strided_slice %47 {offsets = [1, 0, 0], sizes = [16, 16, 128], strides = [1, 1, 1]} : vector<18x18x128xbf16> to vector<16x16x128xbf16>
    %55 = vector.shape_cast %54 : vector<16x16x128xbf16> to vector<256x128xbf16>
    %56 = vector.extract_strided_slice %47 {offsets = [1, 1, 0], sizes = [16, 16, 128], strides = [1, 1, 1]} : vector<18x18x128xbf16> to vector<16x16x128xbf16>
    %57 = vector.shape_cast %56 : vector<16x16x128xbf16> to vector<256x128xbf16>
    %58 = vector.extract_strided_slice %47 {offsets = [1, 2, 0], sizes = [16, 16, 128], strides = [1, 1, 1]} : vector<18x18x128xbf16> to vector<16x16x128xbf16>
    %59 = vector.shape_cast %58 : vector<16x16x128xbf16> to vector<256x128xbf16>
    %60 = vector.extract_strided_slice %47 {offsets = [2, 0, 0], sizes = [16, 16, 128], strides = [1, 1, 1]} : vector<18x18x128xbf16> to vector<16x16x128xbf16>
    %61 = vector.shape_cast %60 : vector<16x16x128xbf16> to vector<256x128xbf16>
    %62 = vector.extract_strided_slice %47 {offsets = [2, 1, 0], sizes = [16, 16, 128], strides = [1, 1, 1]} : vector<18x18x128xbf16> to vector<16x16x128xbf16>
    %63 = vector.shape_cast %62 : vector<16x16x128xbf16> to vector<256x128xbf16>
    %64 = vector.extract_strided_slice %47 {offsets = [2, 2, 0], sizes = [16, 16, 128], strides = [1, 1, 1]} : vector<18x18x128xbf16> to vector<16x16x128xbf16>
    %65 = vector.shape_cast %64 : vector<16x16x128xbf16> to vector<256x128xbf16>
    %66 = tpu.concatenate %49, %51, %53, %55, %57, %59, %61, %63, %65 in 1 : vector<256x128xbf16>, vector<256x128xbf16>, vector<256x128xbf16>, vector<256x128xbf16>, vector<256x128xbf16>, vector<256x128xbf16>, vector<256x128xbf16>, vector<256x128xbf16>, vector<256x128xbf16> -> vector<256x1152xbf16>
    %c0_32 = arith.constant 0 : index
    %c0_33 = arith.constant 0 : index
    %67 = vector.load %arg5[%c0_32, %c0_33] : memref<1152x128xbf16, #tpu.memory_space<vmem>>, vector<1152x128xbf16>
    %cst_34 = arith.constant dense<0.000000e+00> : vector<256x128xf32>
    %68 = tpu.matmul %66, %67, %cst_34 {dimension_numbers = #tpu.dot_dimension_numbers<[1], [0], [0], [1], [0, 0, 1, 1], [], []>} : vector<256x1152xbf16>, vector<1152x128xbf16>, vector<256x128xf32> -> vector<256x128xf32>
    %c0_35 = arith.constant 0 : index
    %c0_36 = arith.constant 0 : index
    %69 = vector.load %arg6[%c0_35, %c0_36] : memref<1x128xf32, #tpu.memory_space<vmem>>, vector<1x128xf32>
    %70 = vector.broadcast %69 : vector<1x128xf32> to vector<256x128xf32>
    %71 = arith.addf %68, %70 : vector<256x128xf32>
    %cst_37 = arith.constant 0.000000e+00 : f32
    %72 = vector.broadcast %cst_37 : f32 to vector<256x128xf32>
    %73 = arith.maximumf %71, %72 : vector<256x128xf32>
    %74 = vector.shape_cast %73 : vector<256x128xf32> to vector<16x16x128xf32>
    %c0_38 = arith.constant 0 : index
    %c0_39 = arith.constant 0 : index
    %c0_40 = arith.constant 0 : index
    %c0_41 = arith.constant 0 : index
    %75 = vector.load %arg7[%c0_38, %c0_39, %c0_40, %c0_41] : memref<1x16x16x128xf32, #tpu.memory_space<vmem>>, vector<1x16x16x128xf32>
    %76 = vector.shape_cast %75 : vector<1x16x16x128xf32> to vector<16x16x128xf32>
    %77 = vector.shape_cast %74 : vector<16x16x128xf32> to vector<1x16x16x128xf32>
    tpu.vector_store %arg7[%c0_38, %c0_39, %c0_40, %c0_41], %77 {strides = array<i32>} : memref<1x16x16x128xf32, #tpu.memory_space<vmem>>, vector<1x16x16x128xf32>,
    return
  }
  func.func @transform_0(%arg0: i32) -> (i32, i32, i32, i32) {
    %c0_i32 = arith.constant 0 : i32
    %c0_i32_0 = arith.constant 0 : i32
    %c0_i32_1 = arith.constant 0 : i32
    %c0_i32_2 = arith.constant 0 : i32
    return %arg0, %c0_i32, %c0_i32_0, %c0_i32_1 : i32, i32, i32, i32
  }
  func.func @transform_1(%arg0: i32) -> (i32, i32, i32, i32) {
    %c0_i32 = arith.constant 0 : i32
    %c0_i32_0 = arith.constant 0 : i32
    %c0_i32_1 = arith.constant 0 : i32
    %c0_i32_2 = arith.constant 0 : i32
    return %arg0, %c0_i32, %c0_i32_0, %c0_i32_1 : i32, i32, i32, i32
  }
  func.func @transform_2(%arg0: i32) -> (i32, i32) {
    %c0_i32 = arith.constant 0 : i32
    %c0_i32_0 = arith.constant 0 : i32
    %c0_i32_1 = arith.constant 0 : i32
    return %c0_i32, %c0_i32_0 : i32, i32
  }
  func.func @transform_3(%arg0: i32) -> (i32, i32) {
    %c0_i32 = arith.constant 0 : i32
    %c0_i32_0 = arith.constant 0 : i32
    %c0_i32_1 = arith.constant 0 : i32
    return %c0_i32, %c0_i32_0 : i32, i32
  }
  func.func @transform_4(%arg0: i32) -> (i32, i32) {
    %c0_i32 = arith.constant 0 : i32
    %c0_i32_0 = arith.constant 0 : i32
    %c0_i32_1 = arith.constant 0 : i32
    return %c0_i32, %c0_i32_0 : i32, i32
  }
  func.func @transform_5(%arg0: i32) -> (i32, i32) {
    %c0_i32 = arith.constant 0 : i32
    %c0_i32_0 = arith.constant 0 : i32
    %c0_i32_1 = arith.constant 0 : i32
    return %c0_i32, %c0_i32_0 : i32, i32
  }
  func.func @transform_6(%arg0: i32) -> (i32, i32, i32, i32) {
    %c0_i32 = arith.constant 0 : i32
    %c0_i32_0 = arith.constant 0 : i32
    %c0_i32_1 = arith.constant 0 : i32
    %c0_i32_2 = arith.constant 0 : i32
    return %arg0, %c0_i32, %c0_i32_0, %c0_i32_1 : i32, i32, i32, i32
  }
}

</mosaic_0001>

<bundles_post_ra>
// kernel: tpu_custom_call.1
= control target key start
LH: loop header
LB: loop body
LE: loop exit
PB: predicated region body
PF: predicated region fallthrough
CT: control target
= control target key end

     0   :  { %11 = vsyncpa [#allocation4], 0  ;;  %s9492_s0 = inlined_call_operand.vmem [shape: f32[2,18,18,128], index: 0, kind: input, shape index: {}]   ;;  %s9493_s1 = inlined_call_operand.vmem [shape: f32[2,18,18,128], index: 1, kind: input, shape index: {}]   ;;  %s9494_s2 = inlined_call_operand.vmem [shape: bf16[1152,128], index: 2, kind: input, shape index: {}]   ;;  %s9495_s3 = inlined_call_operand.vmem [shape: f32[1,128], index: 3, kind: input, shape index: {}]   ;;  %s9496_s4 = inlined_call_operand.vmem [shape: bf16[1152,128], index: 4, kind: input, shape index: {}]   ;;  %s9497_s5 = inlined_call_operand.vmem [shape: f32[1,128], index: 5, kind: input, shape index: {}]   ;;  %s9498_s6 = inlined_call_operand.hbm [shape: f32[2,16,16,128], index: 6, kind: output, shape index: {}]  }
   0x1   :  { %13 = vsyncpa [#allocation4 + $0x1], 0  ;;  %s6946_s21 = smov 0   ;;  %s6948_s22 = smov 0  }
   0x2   :  { %s6950_s23 = smov 0   ;;  %s6952_s24 = smov 0  }
   0x3 LB: > { %s6967_s25 = sadd.s32 4294967295, %s6905_s24   ;;  %s5302_s26 = sadd.s32 4294967294, %s6905_s24   ;;  %s6905_s24 = sphi %s6952_s24, %s9575_s24   ;;  %s6901_s23 = sphi %s6950_s23, %s9574_s23   ;;  %s6897_s22 = sphi %s6948_s22, %s9573_s22   ;;  %s6893_s21 = sphi %s6946_s21, %s9572_s21  }
   0x4   : > { %s6971_s27 = sadd.s32 1, %s6905_s24   ;;  %s162_s28 = sadd.s32 1, %s6901_s23 }
   0x5   : > { %s159_s29 = ssub.s32 %s6905_s24, %s6971_s27  ;;  %p172_p0 = scmp.ne.s32.totalorder %s6901_s23, %s6897_s22 }
   0x6   : > { %p160_p1 = scmp.eq.s32.totalorder %s159_s29, 0  ;;  %p173_p2 = scmp.eq.s32.totalorder %s6967_s25, 1 }
   0x7   : > { %p178_p3 = scmp.ne.s32.totalorder %s6897_s22, %s6893_s21  ;;  %p179_p4 = scmp.eq.s32.totalorder %s5302_s26, 1 }
   0x8   : > { %s6982_s30 = scalar_select %p160_p1, %s6901_s23, %s162_s28  }
   0x9   : > { %p6984_p5 = por %p173_p2, %p172_p0  ;;  %p6988_p6 = por %p179_p4, %p178_p3 }
   0xa   : > { %p5305_p7 = scmp.ge.s32.totalorder %s6905_s24, 1  ;;  %p225_p8 = scmp.lt.s32.totalorder %s6905_s24, 3 }
   0xc   : > { %p226_p9 = pnand %p5305_p7, %p225_p8 }
   0xe   : > { %229 = sbr.rel (%p226_p9) target bundleno = 1148 (0x47c), region = 44 }
  0x15   : > { %v6680_v0 = vld [vmem:[%s9494_s2 + $0x40] sm:$0xff]   ;;  %v6684_v4 = vld [vmem:[%s9494_s2 + $0x48] sm:$0xff]   ;;  %v6688_v8 = vld [vmem:[%s9494_s2 + $0x50] sm:$0xff]   ;;  %p260_p10 = scmp.lt.s32.totalorder %s6967_s25, 1  ;;  %vm469_vm0 = vsmask.f32 7424 }
  0x16   : > { %v6681_v1 = vld [vmem:[%s9494_s2] sm:$0xff]   ;;  %5597 = vmatprep.subr.bf16.mxu0 %v6680_v0  ;;  %v6685_v5 = vld [vmem:[%s9494_s2 + $0x8] sm:$0xff]   ;;  %v6689_v9 = vld [vmem:[%s9494_s2 + $0x10] sm:$0xff]   ;;  %vm710_vm1 = vcmask 1046528   ;;  %vm2241_vm2 = vcmask 1040384   ;;  %vm3363_vm10 = vcmask 1042432  }
  0x17   : > { %v6682_v2 = vld [vmem:[%s9494_s2 + $0xc0] sm:$0xff]   ;;  %5598 = vmatpush3.bf16.msra.mxu0 %v6681_v1  ;;  %v6686_v6 = vld [vmem:[%s9494_s2 + $0xc8] sm:$0xff]   ;;  %v6690_v10 = vld [vmem:[%s9494_s2 + $0xd0] sm:$0xff]   ;;  %s261_s26 = scalar_select %p260_p10, %s6967_s25, 1  ;;  %vm2242_vm3 = vsmask.f32 256 }
  0x18   : > { %v6683_v3 = vld [vmem:[%s9494_s2 + $0x80] sm:$0xff]   ;;  %5709 = vmatprep.subr.bf16.mxu1 %v6682_v2  ;;  %5599 = vmatprep.subr.bf16.mxu0 %v6684_v4  ;;  %v6687_v7 = vld [vmem:[%s9494_s2 + $0x88] sm:$0xff]   ;;  %v6691_v11 = vld [vmem:[%s9494_s2 + $0x90] sm:$0xff]   ;;  %vm2292_vm5 = vsmask.f32 7938  ;;  %vm3364_vm11 = vcmask 1046532  }
  0x19   : > { %5710 = vmatpush3.bf16.msra.mxu1 %v6683_v3  ;;  %v6692_v12 = vld [vmem:[%s9494_s2 + $0x58] sm:$0xff]   ;;  %v6696_v16 = vld [vmem:[%s9494_s2 + $0x60] sm:$0xff]   ;;  %v6700_v20 = vld [vmem:[%s9494_s2 + $0x68] sm:$0xff]   ;;  %s6637_s15 = smul.u32 432, %s261_s26  ;;  %vm2928_vm7 = vsmask.f32 3328 }
  0x1a   : > { %5711 = vmatprep.subr.bf16.mxu1 %v6686_v6  ;;  %v6693_v13 = vld [vmem:[%s9494_s2 + $0x18] sm:$0xff]   ;;  %v6697_v17 = vld [vmem:[%s9494_s2 + $0x20] sm:$0xff]   ;;  %v6701_v21 = vld [vmem:[%s9494_s2 + $0x28] sm:$0xff]   ;;  %vm2929_vm8 = vsmask.f32 7440  ;;  %vm2760_vm13 = vcmask 1043456  }
  0x1b   : > { %5600 = vmatpush3.bf16.msra.mxu0 %v6685_v5  ;;  %v6694_v14 = vld [vmem:[%s9494_s2 + $0xd8] sm:$0xff]   ;;  %v6698_v18 = vld [vmem:[%s9494_s2 + $0xe0] sm:$0xff]   ;;  %v6702_v22 = vld [vmem:[%s9494_s2 + $0xe8] sm:$0xff]   ;;  %s7086_s11 = scalar_lea.vmem %s9492_s0, %s6637_s15  ;;  %s7094_s17 = scalar_lea.vmem %s9493_s1, %s6637_s15  ;;  %vm2438_vm14 = vsmask.f32 4368 }
  0x1c   : > { %5601 = vmatprep.subr.bf16.mxu0 %v6688_v8  ;;  %v6695_v15 = vld [vmem:[%s9494_s2 + $0x98] sm:$0xff]   ;;  %v6699_v19 = vld [vmem:[%s9494_s2 + $0xa0] sm:$0xff]   ;;  %v6703_v23 = vld [vmem:[%s9494_s2 + $0xa8] sm:$0xff]   ;;  %s257_s9 = sand.u32 1, %s6897_s22   ;;  %s6908_s18 = smov [#allocation3]  }
  0x1d   : > { %5712 = vmatpush3.bf16.msra.mxu1 %v6687_v7  ;;  %v6704_v24 = vld [vmem:[%s9494_s2 + $0x70] sm:$0xff]   ;;  %v6708_v28 = vld [vmem:[%s9494_s2 + $0x78] sm:$0xff]   ;;  %v271_v31 = vld [vmem:[%s7086_s11] sm:$0xff]  ;;  %s5306_s26 = sshll.u32 %s257_s9, 8  ;;  %s6847_s19 = sshll.u32 %s6908_s18, 4  ;;  %s6848_s19 = int_to_ptr.vmem [resolvable:$false] %s6847_s19 }
  0x1e   : > { %5713 = vmatprep.subr.bf16.mxu1 %v6690_v10  ;;  %v6705_v25 = vld [vmem:[%s9494_s2 + $0x30] sm:$0xff]   ;;  %v6709_v29 = vld [vmem:[%s9494_s2 + $0x38] sm:$0xff]   ;;  %v272_v32 = vld [vmem:[%s7086_s11 + $0x8] sm:$0xff]  ;;  %s6849_s15 = scalar_lea.vmem %s6848_s19, 8192 }
  0x1f   : > { %5602 = vmatpush3.bf16.msra.mxu0 %v6689_v9  ;;  %v6706_v26 = vld [vmem:[%s9494_s2 + $0xf0] sm:$0xff]   ;;  %v6710_v30 = vld [vmem:[%s9494_s2 + $0xf8] sm:$0xff]   ;;  %v325_v34 = vld [vmem:[%s7094_s17] sm:$0xff] }
  0x20   : > { %5603 = vmatprep.subr.bf16.mxu0 %v6692_v12  ;;  %v6707_v27 = vld [vmem:[%s9494_s2 + $0xb0] sm:$0xff]   ;;  %v326_v35 = vld [vmem:[%s7094_s17 + $0x8] sm:$0xff]  ;;  %v379_v37 = vmul.f32 %v325_v34, %v271_v31  ;;  %v6711_v40 = vld [vmem:[%s9494_s2 + $0xb8] sm:$0xff]  }
  0x21   : > { %5714 = vmatpush3.bf16.msra.mxu1 %v6691_v11  ;;  %v273_v33 = vld [vmem:[%s7086_s11 + $0x10] sm:$0x3]  ;;  %v380_v38 = vmul.f32 %v326_v35, %v272_v32  ;;  %v6712_v41 = vld [vmem:[%s9494_s2 + $0x140] sm:$0xff]   ;;  %v274_v44 = vld [vmem:[%s7086_s11 + $0x18] sm:$0xff] }
  0x22   : > { %5715 = vmatprep.subr.bf16.mxu1 %v6694_v14  ;;  %v327_v36 = vld [vmem:[%s7094_s17 + $0x10] sm:$0x3]  ;;  %v275_v45 = vld [vmem:[%s7086_s11 + $0x20] sm:$0xff]  ;;  %v328_v46 = vld [vmem:[%s7094_s17 + $0x18] sm:$0xff] }
  0x23   : > { %5604 = vmatpush3.bf16.msra.mxu0 %v6693_v13  ;;  %v381_v39 = vmul.f32 %v327_v36, %v273_v33  ;;  %v433_v42 = vpack.c.bf16 %v380_v38, %v379_v37  ;;  %v329_v47 = vld [vmem:[%s7094_s17 + $0x20] sm:$0xff]  ;;  %v382_v48 = vmul.f32 %v328_v46, %v274_v44  ;;  %v276_v53 = vld [vmem:[%s7086_s11 + $0x28] sm:$0x3]  ;;  %v277_v57 = vld [vmem:[%s7086_s11 + $0x30] sm:$0xff] }
  0x24   : > { %5605 = vmatprep.subr.bf16.mxu0 %v6696_v16  ;;  %v383_v52 = vmul.f32 %v329_v47, %v275_v45  ;;  %v330_v56 = vld [vmem:[%s7094_s17 + $0x28] sm:$0x3]  ;;  %v278_v58 = vld [vmem:[%s7086_s11 + $0x38] sm:$0xff]  ;;  %v331_v63 = vld [vmem:[%s7094_s17 + $0x30] sm:$0xff] }
  0x25   : > { %5716 = vmatpush3.bf16.msra.mxu1 %v6695_v15  ;;  %v434_v43 = vpack.c.bf16 %v381_v39, %v381_v39  ;;  %v471_v49 = vshrl.u32 %v433_v42, 16  ;;  %v473_v50 = vshll.u32 %v433_v42, 16  ;;  %v711_v54 = vrot.slane %v433_v42, 1  ;;  %v332_v0 = vld [vmem:[%s7094_s17 + $0x38] sm:$0xff]  ;;  %v279_v1 = vld [vmem:[%s7086_s11 + $0x40] sm:$0x3]  ;;  %vm7943_vm4 = vmand %vm2241_vm2, %vm2242_vm3 }
  0x26   : > { %5717 = vmatprep.subr.bf16.mxu1 %v6698_v18  ;;  %v7119_v61 = vpack.c.bf16 %v383_v52, %v382_v48  ;;  %v384_v62 = vmul.f32 %v330_v56, %v276_v53  ;;  %v385_v3 = vmul.f32 %v331_v63, %v277_v57  ;;  %v386_v4 = vmul.f32 %v332_v0, %v278_v58  ;;  %v333_v5 = vld [vmem:[%s7094_s17 + $0x40] sm:$0x3]  ;;  %v280_v11 = vld [vmem:[%s7086_s11 + $0x48] sm:$0xff]  ;;  %v281_v12 = vld [vmem:[%s7086_s11 + $0x50] sm:$0xff] }
  0x27   : > { %5606 = vmatpush3.bf16.msra.mxu0 %v6697_v17  ;;  %v478_v51 = vshll.u32 %v434_v43, 16  ;;  %v712_v55 = vrot.slane %v434_v43, 1  ;;  %v475_v59 = vrot.slane %v473_v50, 1  ;;  %v6713_v7 = vld [vmem:[%s9494_s2 + $0x100] sm:$0xff]   ;;  %v387_v15 = vmul.f32 %v333_v5, %v279_v1  ;;  %v334_v16 = vld [vmem:[%s7094_s17 + $0x48] sm:$0xff]  ;;  %v335_v17 = vld [vmem:[%s7094_s17 + $0x50] sm:$0xff] }
  0x28   : > { %5607 = vmatprep.subr.bf16.mxu0 %v6700_v20  ;;  %1589 = vmatprep.mubr.bf16.mxu1 %v7119_v61  ;;  %v436_v8 = vpack.c.bf16 %v384_v62, %v384_v62  ;;  %v483_v9 = vshrl.u32 %v7119_v61, 16  ;;  %v485_v10 = vshll.u32 %v7119_v61, 16  ;;  %v7134_v13 = vpack.c.bf16 %v386_v4, %v385_v3  ;;  %v283_v32 = vld [vmem:[%s7086_s11 + $0x60] sm:$0xff]  ;;  %v284_v33 = vld [vmem:[%s7086_s11 + $0x68] sm:$0xff]  ;;  %v285_v45 = vld [vmem:[%s7086_s11 + $0x70] sm:$0x3] }
  0x29   : > { %5718 = vmatpush3.bf16.msra.mxu1 %v6699_v19  ;;  %v480_v60 = vrot.slane %v478_v51, 1  ;;  %v713_v2 = vsel %vm710_vm1, %v711_v54, %v712_v55  ;;  %v476_v6 = vor.u32 %v475_v59, %v471_v49  ;;  %v714_v14 = vrot.slane %v7119_v61, 1  ;;  %v337_v34 = vld [vmem:[%s7094_s17 + $0x60] sm:$0xff]  ;;  %v6715_v38 = vld [vmem:[%s9494_s2 + $0x108] sm:$0xff]   ;;  %v339_v46 = vld [vmem:[%s7094_s17 + $0x70] sm:$0x3] }
  0x2a   : > { %5719 = vmatprep.subr.bf16.mxu1 %v6702_v22  ;;  %v487_v19 = vrot.slane %v485_v10, 1  ;;  %v490_v20 = vshll.u32 %v436_v8, 16  ;;  %v6714_v22 = vld [vmem:[%s9494_s2 + $0x148] sm:$0xff]   ;;  %v389_v31 = vmul.f32 %v335_v17, %v281_v12  ;;  %v391_v44 = vmul.f32 %v337_v34, %v283_v32  ;;  %v6717_v56 = vld [vmem:[%s9494_s2 + $0x110] sm:$0xff]   ;;  %v286_v62 = vld [vmem:[%s7086_s11 + $0x78] sm:$0xff] }
  0x2b   : > { %5608 = vmatpush3.bf16.msra.mxu0 %v6701_v21  ;;  %v481_v18 = vsel %vm469_vm0, %v476_v6, %v480_v60  ;;  %v715_v21 = vrot.slane %v436_v8, 1  ;;  %v338_v39 = vld [vmem:[%s7094_s17 + $0x68] sm:$0xff]  ;;  %v717_v50 = vrot.slane %v7134_v13, 1  ;;  %v393_v55 = vmul.f32 %v339_v46, %v285_v45  ;;  %v287_v63 = vld [vmem:[%s7086_s11 + $0x80] sm:$0xff]  ;;  %v340_v0 = vld [vmem:[%s7094_s17 + $0x78] sm:$0xff] }
  0x2c   : > { %5609 = vmatprep.subr.bf16.mxu0 %v6704_v24  ;;  %1428 = vmatprep.mubr.bf16.mxu0 %v481_v18  ;;  %v495_v24 = vshrl.u32 %v7134_v13, 16  ;;  %v392_v49 = vmul.f32 %v338_v39, %v284_v33  ;;  %v341_v1 = vld [vmem:[%s7094_s17 + $0x80] sm:$0xff]  ;;  %v6718_v5 = vld [vmem:[%s9494_s2 + $0x158] sm:$0xff]   ;;  %v342_v10 = vld [vmem:[%s7094_s17 + $0x88] sm:$0x3] }
  0x2d   : > { %5720 = vmatpush3.bf16.msra.mxu1 %v6703_v23  ;;  %v438_v23 = vpack.c.bf16 %v387_v15, %v387_v15  ;;  %v7152_v35 = vsel %vm710_vm1, %v714_v14, %v715_v21  ;;  %v7194_v3 = vpack.c.bf16 %v393_v55, %v393_v55  ;;  %v395_v8 = vmul.f32 %v341_v1, %v287_v63  ;;  %v289_v12 = vld [vmem:[%s7086_s11 + $0x90] sm:$0xff]  ;;  %v6719_v14 = vld [vmem:[%s9494_s2 + $0x118] sm:$0xff]   ;;  %v296_v55 = vld [vmem:[%s7086_s11 + $0xc8] sm:$0xff] }
  0x2e   : > { %5721 = vmatprep.subr.bf16.mxu1 %v6706_v26  ;;  %v388_v26 = vmul.f32 %v334_v16, %v280_v11  ;;  %v7174_v54 = vpack.c.bf16 %v392_v49, %v391_v44  ;;  %v290_v18 = vld [vmem:[%s7086_s11 + $0x98] sm:$0xff]  ;;  %v295_v49 = vld [vmem:[%s7086_s11 + $0xc0] sm:$0xff]  ;;  %v6722_v1 = vld [vmem:[%s9494_s2 + $0x168] sm:$0xff]  }
  0x2f   : > { %5610 = vmatpush3.bf16.msra.mxu0 %v6705_v25  ;;  %v497_v25 = vshll.u32 %v7134_v13, 16  ;;  %v502_v37 = vshll.u32 %v438_v23, 16  ;;  %v718_v53 = vrot.slane %v438_v23, 1  ;;  %v526_v17 = vshll.u32 %v7194_v3, 16  ;;  %v348_v46 = vld [vmem:[%s7094_s17 + $0xb8] sm:$0x3]  ;;  %vm7954_vm6 = vmand %vm2241_vm2, %vm2292_vm5 }
  0x30   : > { %5611 = vmatprep.subr.bf16.mxu0 %v6708_v28  ;;  %v336_v28 = vld [vmem:[%s7094_s17 + $0x58] sm:$0x3]  ;;  %v521_v4 = vshll.u32 %v7174_v54, 16  ;;  %v519_v15 = vshrl.u32 %v7174_v54, 16  ;;  %vm8051_vm9 = vmor %vm2928_vm7, %vm2929_vm8 }
  0x31   : > { %5722 = vmatpush3.bf16.msra.mxu1 %v6707_v27  ;;  %v282_v27 = vld [vmem:[%s7086_s11 + $0x58] sm:$0x3]  ;;  %v499_v36 = vrot.slane %v497_v25, 1  ;;  %v504_v48 = vrot.slane %v502_v37, 1  ;;  %v291_v25 = vld [vmem:[%s7086_s11 + $0xa0] sm:$0x3]  ;;  %vm8076_vm12 = vmor %vm3363_vm10, %vm3364_vm11 }
  0x32   : > { %5723 = vmatprep.subr.bf16.mxu1 %v6710_v30  ;;  %v492_v30 = vrot.slane %v490_v20, 1  ;;  %v390_v43 = vmul.f32 %v336_v28, %v282_v27  ;;  %v523_v16 = vrot.slane %v521_v4, 1  ;;  %v344_v20 = vld [vmem:[%s7094_s17 + $0x98] sm:$0xff]  ;;  %v292_v27 = vld [vmem:[%s7086_s11 + $0xa8] sm:$0xff]  ;;  %v293_v28 = vld [vmem:[%s7086_s11 + $0xb0] sm:$0xff]  ;;  %v528_v33 = vrot.slane %v526_v17, 1 }
  0x33   : > { %5612 = vmatpush3.bf16.msra.mxu0 %v6709_v29  ;;  %v488_v29 = vor.u32 %v487_v19, %v483_v9  ;;  %v500_v47 = vor.u32 %v499_v36, %v495_v24  ;;  %v288_v9 = vld [vmem:[%s7086_s11 + $0x88] sm:$0x3]  ;;  %v343_v19 = vld [vmem:[%s7094_s17 + $0x90] sm:$0xff]  ;;  %v398_v36 = vmul.f32 %v344_v20, %v290_v18  ;;  %v299_v17 = vld [vmem:[%s7086_s11 + $0xe0] sm:$0xff] }
  0x34   : > { %5821 = vmatprep.subr.bf16.mxu0 %v6712_v41  ;;  %v7170_v51 = vpack.c.bf16 %v390_v43, %v390_v43  ;;  %v396_v24 = vmul.f32 %v342_v10, %v288_v9  ;;  %v524_v32 = vor.u32 %v523_v16, %v519_v15  ;;  %v397_v34 = vmul.f32 %v343_v19, %v289_v12  ;;  %v294_v43 = vld [vmem:[%s7086_s11 + $0xb8] sm:$0x3]  ;;  %v351_v9 = vld [vmem:[%s7094_s17 + $0xd0] sm:$0x3]  ;;  %v353_v20 = vld [vmem:[%s7094_s17 + $0xe0] sm:$0xff] }
  0x35   : > { %5724 = vmatpush3.bf16.msra.mxu1 %v6711_v40  ;;  %v6716_v40 = vld [vmem:[%s9494_s2 + $0x150] sm:$0xff]   ;;  %v7162_v41 = vsel %vm469_vm0, %v488_v29, %v492_v30  ;;  %v7180_v57 = vsel %vm469_vm0, %v500_v47, %v504_v48  ;;  %v346_v29 = vld [vmem:[%s7094_s17 + $0xa8] sm:$0xff]  ;;  %v6721_v47 = vld [vmem:[%s9494_s2 + $0x120] sm:$0xff]   ;;  %v723_v48 = vrot.slane %v7174_v54, 1  ;;  %v402_v63 = vmul.f32 %v348_v46, %v294_v43 }
  0x36   : > { %1429 = vmatmul.mubr.bf16.vlgmr.msra.gmra.mrb[0].mxu0 %v433_v42  ;;  %v7164_v42 = vpack.c.bf16 %v389_v31, %v388_v26  ;;  %v514_v60 = vshll.u32 %v7170_v51, 16  ;;  %v345_v26 = vld [vmem:[%s7094_s17 + $0xa0] sm:$0x3]  ;;  %v347_v30 = vld [vmem:[%s7094_s17 + $0xb0] sm:$0xff]  ;;  %v400_v44 = vmul.f32 %v346_v29, %v292_v27  ;;  %v298_v10 = vld [vmem:[%s7086_s11 + $0xd8] sm:$0xff] }
  0x37   : > { %5822 = vmatpush3.bf16.msra.mxu0 %v6713_v7  ;;  %1436 = vmatprep.mubr.bf16.mxu0 %v7162_v41  ;;  %v6720_v31 = vld [vmem:[%s9494_s2 + $0x160] sm:$0xff]   ;;  %v401_v45 = vmul.f32 %v347_v30, %v293_v28  ;;  %v7279_v16 = vpack.c.bf16 %v402_v63, %v402_v63  ;;  %v352_v18 = vld [vmem:[%s7094_s17 + $0xd8] sm:$0xff]  ;;  %v354_v27 = vld [vmem:[%s7094_s17 + $0xe8] sm:$0x3] }
  0x38   : > { %1590 = vmatmul.mubr.bf16.vlgmr.msra.gmra.mrb[0].mxu1 %v713_v2  ;;  %5823 = vmatprep.subr.bf16.mxu0 %v6714_v22  ;;  %v509_v52 = vshll.u32 %v7164_v42, 16  ;;  %v507_v58 = vshrl.u32 %v7164_v42, 16  ;;  %v7192_v2 = vsel %vm710_vm1, %v717_v50, %v718_v53  ;;  %v516_v7 = vrot.slane %v514_v60, 1  ;;  %v301_v28 = vld [vmem:[%s7086_s11 + $0xf0] sm:$0xff]  ;;  %v302_v29 = vld [vmem:[%s7086_s11 + $0xf8] sm:$0xff]  ;;  %vm8220_vm15 = vmand %vm2760_vm13, %vm2292_vm5 }
  0x39   : > { %1597 = vmatprep.mubr.bf16.mxu1 %v7134_v13  ;;  %v720_v11 = vrot.slane %v7164_v42, 1  ;;  %v721_v22 = vrot.slane %v7170_v51, 1  ;;  %v7246_v50 = vsel %vm469_vm0, %v524_v32, %v528_v33  ;;  %v724_v51 = vrot.slane %v7194_v3, 1 }
  0x3a   : > { %v511_v59 = vrot.slane %v509_v52, 1  ;;  %v7250_v53 = vpack.c.bf16 %v398_v36, %v397_v34  ;;  %v355_v34 = vld [vmem:[%s7094_s17 + $0xf0] sm:$0xff]  ;;  %v356_v36 = vld [vmem:[%s7094_s17 + $0xf8] sm:$0xff]  ;;  %v406_v43 = vmul.f32 %v352_v18, %v298_v10  ;;  %v358_v10 = vld [vmem:[%s7094_s17 + $0x108] sm:$0xff] }
  0x3b   : > { %5824 = vmatpush3.bf16.msra.mxu0 %v6715_v38  ;;  %v7232_v37 = vsel %vm710_vm1, %v720_v11, %v721_v22  ;;  %v7234_v38 = vpack.c.bf16 %v396_v24, %v396_v24  ;;  %v6723_v11 = vld [vmem:[%s9494_s2 + $0x128] sm:$0xff]   ;;  %v306_v18 = vld [vmem:[%s7086_s11 + $0x118] sm:$0x3] }
  0x3c   : > { %5825 = vmatprep.subr.bf16.mxu0 %v6716_v40  ;;  %v512_v6 = vor.u32 %v511_v59, %v507_v58  ;;  %v399_v40 = vmul.f32 %v345_v26, %v291_v25  ;;  %v350_v58 = vld [vmem:[%s7094_s17 + $0xc8] sm:$0xff]  ;;  %v543_v24 = vshrl.u32 %v7250_v53, 16  ;;  %v729_v25 = vrot.slane %v7250_v53, 1 }
  0x3d   : > { %v538_v60 = vshll.u32 %v7234_v38, 16  ;;  %v300_v22 = vld [vmem:[%s7086_s11 + $0xe8] sm:$0x3] }
  0x3e   : > { %1437 = vmatmul.mubr.bf16.gmra.mrb[4].mxu0 %v7119_v61  ;;  %v394_v61 = vmul.f32 %v340_v0, %v286_v62  ;;  %v7214_v21 = vsel %vm469_vm0, %v512_v6, %v516_v7  ;;  %v7257_v62 = vpack.c.bf16 %v399_v40, %v399_v40  ;;  %v7259_v0 = vpack.c.bf16 %v401_v45, %v400_v44  ;;  %v297_v6 = vld [vmem:[%s7086_s11 + $0xd0] sm:$0x3] }
  0x3f   : > { %1444 = vmatprep.mubr.bf16.mxu0 %v7180_v57  ;;  %5826 = vmatpush3.bf16.msra.mxu0 %v6717_v56  ;;  %v349_v56 = vld [vmem:[%s7094_s17 + $0xc0] sm:$0xff]  ;;  %v7269_v7 = vsel %vm710_vm1, %v723_v48, %v724_v51  ;;  %v405_v33 = vmul.f32 %v351_v9, %v297_v6  ;;  %v562_v40 = vshll.u32 %v7279_v16, 16  ;;  %v407_v44 = vmul.f32 %v353_v20, %v299_v17 }
  0x40   : > { %1598 = vmatmul.mubr.bf16.gmra.mrb[4].mxu1 %v7152_v35  ;;  %5827 = vmatprep.subr.bf16.mxu0 %v6718_v5  ;;  %v7218_v23 = vpack.c.bf16 %v395_v8, %v394_v61  ;;  %v403_v4 = vmul.f32 %v349_v56, %v295_v49  ;;  %v404_v5 = vmul.f32 %v350_v58, %v296_v55  ;;  %v727_v61 = vrot.slane %v7234_v38, 1  ;;  %v6724_v38 = vld [vmem:[%s9494_s2 + $0x170] sm:$0xff]   ;;  %v6726_v6 = vld [vmem:[%s9494_s2 + $0x1c0] sm:$0xff]  }
  0x41   : > { %1605 = vmatprep.mubr.bf16.mxu1 %v7164_v42  ;;  %v545_v8 = vshll.u32 %v7250_v53, 16  ;;  %v550_v15 = vshll.u32 %v7257_v62, 16  ;;  %v557_v19 = vshll.u32 %v7259_v0, 16  ;;  %v555_v32 = vshrl.u32 %v7259_v0, 16  ;;  %v6725_v56 = vld [vmem:[%s9494_s2 + $0x130] sm:$0xff]   ;;  %5933 = vmatprep.subr.bf16.mxu1 %v6726_v6 }
  0x42   : > { %v533_v39 = vshll.u32 %v7218_v23, 16  ;;  %v531_v52 = vshrl.u32 %v7218_v23, 16  ;;  %v726_v3 = vrot.slane %v7218_v23, 1  ;;  %v7288_v26 = vpack.c.bf16 %v404_v5, %v403_v4  ;;  %v303_v4 = vld [vmem:[%s7086_s11 + $0x100] sm:$0x3] }
  0x43   : > { %5828 = vmatpush3.bf16.msra.mxu0 %v6719_v14  ;;  %v540_v14 = vrot.slane %v538_v60, 1  ;;  %v547_v30 = vrot.slane %v545_v8, 1  ;;  %v552_v45 = vrot.slane %v550_v15, 1  ;;  %v559_v46 = vrot.slane %v557_v19, 1  ;;  %v357_v5 = vld [vmem:[%s7094_s17 + $0x100] sm:$0x3] }
  0x44   : > { %5829 = vmatprep.subr.bf16.mxu0 %v6720_v31  ;;  %v535_v59 = vrot.slane %v533_v39, 1  ;;  %v730_v31 = vrot.slane %v7257_v62, 1  ;;  %v733_v48 = vrot.slane %v7279_v16, 1  ;;  %v569_v49 = vshll.u32 %v7288_v26, 16  ;;  %v6728_v19 = vld [vmem:[%s9494_s2 + $0x1c8] sm:$0xff]   ;;  %v6737_v16 = vld [vmem:[%s9494_s2 + $0x1a0] sm:$0xff]  }
  0x45   : > { %v408_v51 = vmul.f32 %v354_v27, %v300_v22  ;;  %v410_v55 = vmul.f32 %v356_v36, %v302_v29  ;;  %v7314_v58 = vpack.c.bf16 %v405_v33, %v405_v33  ;;  %v548_v60 = vor.u32 %v547_v30, %v543_v24  ;;  %v360_v24 = vld [vmem:[%s7094_s17 + $0x118] sm:$0x3]  ;;  %v307_v27 = vld [vmem:[%s7086_s11 + $0x120] sm:$0xff]  ;;  %v362_v36 = vld [vmem:[%s7094_s17 + $0x128] sm:$0xff] }
  0x46   : > { %1445 = vmatmul.mubr.bf16.gmra.mrb[8].mxu0 %v7134_v13  ;;  %v536_v12 = vor.u32 %v535_v59, %v531_v52  ;;  %v409_v52 = vmul.f32 %v355_v34, %v301_v28  ;;  %v7317_v59 = vsel %vm710_vm1, %v726_v3, %v727_v61  ;;  %v7319_v63 = vrot.slane %v562_v40, 1  ;;  %v304_v3 = vld [vmem:[%s7086_s11 + $0x108] sm:$0xff]  ;;  %v305_v61 = vld [vmem:[%s7086_s11 + $0x110] sm:$0xff]  ;;  %v361_v29 = vld [vmem:[%s7094_s17 + $0x120] sm:$0xff] }
  0x47   : > { %1452 = vmatprep.mubr.bf16.mxu0 %v7214_v21  ;;  %5830 = vmatpush3.bf16.msra.mxu0 %v6721_v47  ;;  %v732_v47 = vrot.slane %v7259_v0, 1  ;;  %v567_v8 = vshrl.u32 %v7288_v26, 16  ;;  %v735_v9 = vrot.slane %v7288_v26, 1  ;;  %v7339_v15 = vpack.c.bf16 %v408_v51, %v408_v51  ;;  %v308_v28 = vld [vmem:[%s7086_s11 + $0x128] sm:$0xff] }
  0x48   : > { %1606 = vmatmul.mubr.bf16.gmra.mrb[8].mxu1 %v7192_v2  ;;  %5831 = vmatprep.subr.bf16.mxu0 %v6722_v1  ;;  %v7302_v39 = vsel %vm469_vm0, %v536_v12, %v540_v14  ;;  %v7321_v1 = vpack.c.bf16 %v407_v44, %v406_v43  ;;  %v6727_v12 = vld [vmem:[%s9494_s2 + $0x180] sm:$0xff]   ;;  %v7337_v14 = vrot.slane %v569_v49, 1  ;;  %v7341_v17 = vpack.c.bf16 %v410_v55, %v409_v52  ;;  %v309_v43 = vld [vmem:[%s7086_s11 + $0x130] sm:$0x3] }
  0x49   : > { %1613 = vmatprep.mubr.bf16.mxu1 %v7174_v54  ;;  %v574_v20 = vshll.u32 %v7314_v58, 16  ;;  %v736_v22 = vrot.slane %v7314_v58, 1  ;;  %v7355_v30 = vsel %vm469_vm0, %v548_v60, %v552_v45  ;;  %5934 = vmatpush3.bf16.msra.mxu1 %v6727_v12  ;;  %v411_v40 = vmul.f32 %v357_v5, %v303_v4  ;;  %v363_v44 = vld [vmem:[%s7094_s17 + $0x130] sm:$0x3]  ;;  %v370_v60 = vld [vmem:[%s7094_s17 + $0x168] sm:$0xff] }
  0x4a   : > { %v579_v33 = vshrl.u32 %v7321_v1, 16  ;;  %v581_v34 = vshll.u32 %v7321_v1, 16  ;;  %5935 = vmatprep.subr.bf16.mxu1 %v6728_v19  ;;  %v586_v45 = vshll.u32 %v7339_v15, 16  ;;  %v593_v49 = vshll.u32 %v7341_v17, 16  ;;  %v6730_v5 = vld [vmem:[%s9494_s2 + $0x1d0] sm:$0xff]  }
  0x4b   : > { %5832 = vmatpush3.bf16.msra.mxu0 %v6723_v11  ;;  %v359_v11 = vld [vmem:[%s7094_s17 + $0x110] sm:$0xff]  ;;  %v412_v51 = vmul.f32 %v358_v10, %v304_v3  ;;  %v7375_v55 = vsel %vm710_vm1, %v729_v25, %v730_v31  ;;  %v414_v4 = vmul.f32 %v360_v24, %v306_v18  ;;  %v7383_v6 = vrot.slane %v574_v20, 1  ;;  %v310_v20 = vld [vmem:[%s7086_s11 + $0x138] sm:$0xff]  ;;  %v311_v24 = vld [vmem:[%s7086_s11 + $0x140] sm:$0xff] }
  0x4c   : > { %5833 = vmatprep.subr.bf16.mxu0 %v6724_v38  ;;  %v6729_v38 = vld [vmem:[%s9494_s2 + $0x188] sm:$0xff]   ;;  %v413_v52 = vmul.f32 %v359_v11, %v305_v61  ;;  %v415_v62 = vmul.f32 %v361_v29, %v307_v27  ;;  %v416_v3 = vmul.f32 %v362_v36, %v308_v28  ;;  %v417_v25 = vmul.f32 %v363_v44, %v309_v43  ;;  %v6731_v31 = vld [vmem:[%s9494_s2 + $0x190] sm:$0xff]   ;;  %v6732_v11 = vld [vmem:[%s9494_s2 + $0x1d8] sm:$0xff]  }
  0x4d   : > { %5936 = vmatpush3.bf16.msra.mxu1 %v6729_v38  ;;  %v7391_v61 = vpack.c.bf16 %v411_v40, %v411_v40  ;;  %v7397_v12 = vrot.slane %v586_v45, 1  ;;  %v7399_v18 = vrot.slane %v593_v49, 1  ;;  %v364_v27 = vld [vmem:[%s7094_s17 + $0x138] sm:$0xff]  ;;  %v365_v28 = vld [vmem:[%s7094_s17 + $0x140] sm:$0xff]  ;;  %v312_v36 = vld [vmem:[%s7086_s11 + $0x148] sm:$0x3] }
  0x4e   : > { %1453 = vmatmul.mubr.bf16.gmra.mrb[12].mxu0 %v7164_v42  ;;  %5937 = vmatprep.subr.bf16.mxu1 %v6730_v5  ;;  %v7401_v19 = vpack.c.bf16 %v413_v52, %v412_v51  ;;  %v6734_v29 = vld [vmem:[%s9494_s2 + $0x178] sm:$0xff]   ;;  %v366_v38 = vld [vmem:[%s7094_s17 + $0x148] sm:$0x3]  ;;  %v7421_v44 = vpack.c.bf16 %v416_v3, %v415_v62  ;;  %v7423_v45 = vpack.c.bf16 %v417_v25, %v417_v25  ;;  %v313_v49 = vld [vmem:[%s7086_s11 + $0x150] sm:$0xff] }
  0x4f   : > { %1460 = vmatprep.mubr.bf16.mxu0 %v7246_v50  ;;  %5834 = vmatpush3.bf16.msra.mxu0 %v6725_v56  ;;  %v560_v56 = vor.u32 %v559_v46, %v555_v32  ;;  %v7388_v32 = vrot.slane %v581_v34, 1  ;;  %v7411_v34 = vpack.c.bf16 %v414_v4, %v414_v4  ;;  %v6733_v51 = vld [vmem:[%s9494_s2 + $0x198] sm:$0xff]   ;;  %v598_v52 = vshll.u32 %v7391_v61, 16  ;;  %v367_v4 = vld [vmem:[%s7094_s17 + $0x150] sm:$0xff]  ;;  %v6738_v46 = vld [vmem:[%s9494_s2 + $0x1e8] sm:$0xff]  }
  0x50   : > { %1614 = vmatmul.mubr.bf16.gmra.mrb[12].mxu1 %v7232_v37  ;;  %5835 = vmatprep.subr.bf16.mxu0 %v6734_v29  ;;  %v572_v5 = vor.u32 %v7337_v14, %v567_v8  ;;  %v605_v62 = vshll.u32 %v7401_v19, 16  ;;  %v368_v3 = vld [vmem:[%s7094_s17 + $0x158] sm:$0xff]  ;;  %v419_v43 = vmul.f32 %v365_v28, %v311_v24  ;;  %v7449_v8 = vsel %vm710_vm1, %v732_v47, %v733_v48  ;;  %v315_v28 = vld [vmem:[%s7086_s11 + $0x160] sm:$0x3]  ;;  %v316_v48 = vld [vmem:[%s7086_s11 + $0x168] sm:$0xff] }
  0x51   : > { %1621 = vmatprep.mubr.bf16.mxu1 %v7218_v23  ;;  %v7417_v40 = vsel %vm469_vm0, %v560_v56, %v7319_v63  ;;  %5938 = vmatpush3.bf16.msra.mxu1 %v6731_v31  ;;  %v314_v56 = vld [vmem:[%s7086_s11 + $0x158] sm:$0xff]  ;;  %v610_v25 = vshll.u32 %v7411_v34, 16  ;;  %v418_v31 = vmul.f32 %v364_v27, %v310_v20  ;;  %v617_v14 = vshll.u32 %v7421_v44, 16  ;;  %v6736_v20 = vld [vmem:[%s9494_s2 + $0x1e0] sm:$0xff]   ;;  %v317_v10 = vld [vmem:[%s7086_s11 + $0x170] sm:$0xff] }
  0x52   : > { %5939 = vmatprep.subr.bf16.mxu1 %v6732_v11  ;;  %v420_v11 = vmul.f32 %v366_v38, %v312_v36  ;;  %v6735_v29 = vld [vmem:[%s9494_s2 + $0x138] sm:$0xff]   ;;  %v622_v63 = vshll.u32 %v7423_v45, 16  ;;  %v421_v24 = vmul.f32 %v367_v4, %v313_v49  ;;  %v422_v27 = vmul.f32 %v368_v3, %v314_v56  ;;  %v369_v47 = vld [vmem:[%s7094_s17 + $0x160] sm:$0x3]  ;;  %v371_v3 = vld [vmem:[%s7094_s17 + $0x170] sm:$0xff] }
  0x53   : > { %5836 = vmatpush3.bf16.msra.mxu0 %v6735_v29  ;;  %v7462_v36 = vrot.slane %v598_v52, 1  ;;  %v7474_v49 = vsel %vm469_vm0, %v572_v5, %v7383_v6  ;;  %v7477_v56 = vpack.c.bf16 %v419_v43, %v418_v31  ;;  %v607_v29 = vrot.slane %v605_v62, 1  ;;  %v6739_v6 = vld [vmem:[%s9494_s2 + $0x1a8] sm:$0xff]  }
  0x54   : > { %v7479_v4 = vpack.c.bf16 %v420_v11, %v420_v11  ;;  %v619_v5 = vrot.slane %v617_v14, 1  ;;  %v7488_v52 = vrot.slane %v622_v63, 1  ;;  %v748_v43 = vrot.slane %v7423_v45, 1 }
  0x55   : > { %5940 = vmatpush3.bf16.msra.mxu1 %v6733_v51  ;;  %v615_v51 = vshrl.u32 %v7421_v44, 16  ;;  %v7491_v31 = vpack.c.bf16 %v422_v27, %v421_v24  ;;  %v627_v62 = vshrl.u32 %v7477_v56, 16  ;;  %v424_v11 = vmul.f32 %v370_v60, %v316_v48 }
  0x56   : > { %1461 = vmatmul.mubr.bf16.gmra.mrb[16].mxu0 %v7174_v54  ;;  %5941 = vmatprep.subr.bf16.mxu1 %v6736_v20  ;;  %v612_v20 = vrot.slane %v610_v25, 1  ;;  %v423_v25 = vmul.f32 %v369_v47, %v315_v28  ;;  %v425_v38 = vmul.f32 %v371_v3, %v317_v10  ;;  %v629_v63 = vshll.u32 %v7477_v56, 16  ;;  %v6742_v28 = vld [vmem:[%s9494_s2 + $0x1f8] sm:$0xff]  }
  0x57   : > { %1468 = vmatprep.mubr.bf16.mxu0 %v7302_v39  ;;  %v634_v14 = vshll.u32 %v7479_v4, 16  ;;  %v750_v24 = vrot.slane %v7477_v56, 1  ;;  %v7510_v60 = vsel %vm710_vm1, %v735_v9, %v736_v22  ;;  %v584_v10 = vor.u32 %v7388_v32, %v579_v33  ;;  %v7527_v9 = vld [vmem:[%s9494_s2 + $0x200] sm:$0xff]  }
  0x58   : > { %1622 = vmatmul.mubr.bf16.gmra.mrb[16].mxu1 %v7269_v7  ;;  %v641_v27 = vshll.u32 %v7491_v31, 16  ;;  %v751_v47 = vrot.slane %v7479_v4, 1  ;;  %v7520_v58 = vpack.c.bf16 %v423_v25, %v423_v25  ;;  %v7522_v48 = vpack.c.bf16 %v425_v38, %v424_v11  ;;  %v6743_v38 = vld [vmem:[%s9494_s2 + $0x1b8] sm:$0xff]   ;;  %6541 = vmatprep.subr.bf16.mxu0 %v7527_v9 }
  0x59   : > { %1629 = vmatprep.mubr.bf16.mxu1 %v7250_v53  ;;  %5942 = vmatpush3.bf16.msra.mxu1 %v6737_v16  ;;  %v6740_v16 = vld [vmem:[%s9494_s2 + $0x1f0] sm:$0xff]   ;;  %v631_v22 = vrot.slane %v629_v63, 1  ;;  %v636_v33 = vrot.slane %v634_v14, 1  ;;  %v7532_v32 = vsel %vm469_vm0, %v584_v10, %v7397_v12  ;;  %v639_v3 = vshrl.u32 %v7491_v31, 16 }
  0x5a   : > { %5943 = vmatprep.subr.bf16.mxu1 %v6738_v46  ;;  %v6741_v46 = vld [vmem:[%s9494_s2 + $0x1b0] sm:$0xff]   ;;  %v753_v25 = vrot.slane %v7491_v31, 1  ;;  %v646_v12 = vshll.u32 %v7520_v58, 16  ;;  %v653_v11 = vshll.u32 %v7522_v48, 16  ;;  %v9524_v63 = vrot.slane %v7321_v1, 1 }
  0x5d   : > { %5944 = vmatpush3.bf16.msra.mxu1 %v6739_v6  ;;  %v643_v6 = vrot.slane %v641_v27, 1 }
  0x5e   : > { %1469 = vmatmul.mubr.bf16.gmra.mrb[20].mxu0 %v7218_v23  ;;  %5945 = vmatprep.subr.bf16.mxu1 %v6740_v16  ;;  %v9523_v16 = vrot.slane %v7339_v15, 1  ;;  %v9526_v15 = vrot.slane %v7391_v61, 1  ;;  %v754_v61 = vrot.slane %v7520_v58, 1 }
  0x5f   : > { %1476 = vmatprep.mubr.bf16.mxu0 %v7355_v30 }
  0x60   : > { %1630 = vmatmul.mubr.bf16.gmra.mrb[20].mxu1 %v7317_v59  ;;  %v7550_v14 = vsel %vm710_vm1, %v9524_v63, %v9523_v16  ;;  %v648_v63 = vrot.slane %v646_v12, 1  ;;  %v7635_v4 = vsel %vm710_vm1, %v753_v25, %v754_v61  ;;  %v6745_v61 = vld [vmem:[%s9494_s2 + $0x208] sm:$0xff]  }
  0x61   : > { %1637 = vmatprep.mubr.bf16.mxu1 %v7259_v0  ;;  %5946 = vmatpush3.bf16.msra.mxu1 %v6741_v46  ;;  %v9525_v46 = vshrl.u32 %v7341_v17, 16 }
  0x62   : > { %5947 = vmatprep.subr.bf16.mxu1 %v6742_v28  ;;  %v9527_v28 = vrot.slane %v7341_v17, 1 }
  0x63   : > { %v596_v10 = vor.u32 %v7399_v18, %v9525_v46  ;;  %v9529_v46 = vrot.slane %v7411_v34, 1 }
  0x64   : > { %v7568_v18 = vsel %vm710_vm1, %v9527_v28, %v9526_v15  ;;  %v651_v15 = vshrl.u32 %v7522_v48, 16  ;;  %v655_v28 = vrot.slane %v653_v11, 1 }
  0x65   : > { %5948 = vmatpush3.bf16.msra.mxu1 %v6743_v38  ;;  %v7558_v27 = vsel %vm469_vm0, %v596_v10, %v7462_v36  ;;  %v9528_v38 = vshrl.u32 %v7401_v19, 16  ;;  %v9530_v10 = vrot.slane %v7401_v19, 1 }
  0x66   : > { %1477 = vmatmul.mubr.bf16.gmra.mrb[24].mxu0 %v7250_v53 }
  0x67   : > { %1484 = vmatprep.mubr.bf16.mxu0 %v7417_v40  ;;  %v608_v16 = vor.u32 %v607_v29, %v9528_v38  ;;  %v7585_v29 = vsel %vm710_vm1, %v9530_v10, %v9529_v46  ;;  %v318_v38 = vld [vmem:[%s7086_s11 + $0x178] sm:$0x3]  ;;  %v319_v46 = vld [vmem:[%s7086_s11 + $0x180] sm:$0xff]  ;;  %v320_v10 = vld [vmem:[%s7086_s11 + $0x188] sm:$0xff] }
  0x68   : > { %1638 = vmatmul.mubr.bf16.gmra.mrb[24].mxu1 %v7375_v55 }
  0x69   : > { %1645 = vmatprep.mubr.bf16.mxu1 %v7288_v26  ;;  %v7574_v36 = vsel %vm469_vm0, %v608_v16, %v612_v20  ;;  %v620_v20 = vor.u32 %v619_v5, %v615_v51  ;;  %v372_v16 = vld [vmem:[%s7094_s17 + $0x178] sm:$0x3]  ;;  %v9531_v5 = vrot.slane %v7421_v44, 1 }
  0x6a   : > { %v426_v51 = vmul.f32 %v372_v16, %v318_v38 }
  0x6b   : > { %v7595_v34 = vsel %vm469_vm0, %v620_v20, %v7488_v52  ;;  %v7605_v58 = vsel %vm710_vm1, %v9531_v5, %v748_v43  ;;  %v632_v52 = vor.u32 %v631_v22, %v627_v62  ;;  %v373_v43 = vld [vmem:[%s7094_s17 + $0x180] sm:$0xff]  ;;  %v374_v20 = vld [vmem:[%s7094_s17 + $0x188] sm:$0xff]  ;;  %v7625_v62 = vsel %vm710_vm1, %v750_v24, %v751_v47 }
  0x6c   : > { %v464_v12 = vpack.c.bf16 %v426_v51, %v426_v51  ;;  %v644_v22 = vor.u32 %v643_v6, %v639_v3  ;;  %v427_v38 = vmul.f32 %v373_v43, %v319_v46  ;;  %v428_v16 = vmul.f32 %v374_v20, %v320_v10  ;;  %v324_v43 = vld [vmem:[%s7086_s11 + $0x1a8] sm:$0x3] }
  0x6d   : > { %v7611_v11 = vsel %vm469_vm0, %v632_v52, %v636_v33  ;;  %v656_v51 = vor.u32 %v655_v28, %v651_v15  ;;  %v756_v6 = vrot.slane %v7522_v48, 1  ;;  %v6746_v15 = vld [vmem:[%s9494_s2 + $0x210] sm:$0xff]   ;;  %v378_v20 = vld [vmem:[%s7094_s17 + $0x1a8] sm:$0x3] }
  0x6e   : > { %1485 = vmatmul.mubr.bf16.gmra.mrb[28].mxu0 %v7259_v0  ;;  %v658_v45 = vshll.u32 %v464_v12, 16  ;;  %v7629_v33 = vsel %vm469_vm0, %v644_v22, %v648_v63  ;;  %v7637_v47 = vpack.c.bf16 %v428_v16, %v427_v38  ;;  %v757_v63 = vrot.slane %v464_v12, 1 }
  0x6f   : > { %1492 = vmatprep.mubr.bf16.mxu0 %v7474_v49 }
  0x70   : > { %1646 = vmatmul.mubr.bf16.gmra.mrb[28].mxu1 %v7449_v8  ;;  %v660_v24 = vrot.slane %v658_v45, 1  ;;  %v7648_v25 = vsel %vm710_vm1, %v756_v6, %v757_v63  ;;  %v778_v5 = vshll.u32 %v7637_v47, 16 }
  0x71   : > { %1653 = vmatprep.mubr.bf16.mxu1 %v7321_v1 }
  0x72   : > { %v7641_v3 = vsel %vm469_vm0, %v656_v51, %v660_v24  ;;  %v776_v24 = vshrl.u32 %v7637_v47, 16  ;;  %v780_v6 = vrot.slane %v778_v5, 1 }
  0x76   : > { %1493 = vmatmul.mubr.bf16.gmra.mrb[32].mxu0 %v7288_v26 }
  0x77   : > { %1500 = vmatprep.mubr.bf16.mxu0 %v7532_v32 }
  0x78   : > { %1654 = vmatmul.mubr.bf16.gmra.mrb[32].mxu1 %v7510_v60 }
  0x79   : > { %1661 = vmatprep.mubr.bf16.mxu1 %v7341_v17 }
  0x7e   : > { %1501 = vmatmul.mubr.bf16.gmra.mrb[36].mxu0 %v7321_v1 }
  0x7f   : > { %1508 = vmatprep.mubr.bf16.mxu0 %v7558_v27 }
  0x80   : > { %1662 = vmatmul.mubr.bf16.gmra.mrb[36].mxu1 %v7550_v14 }
  0x81   : > { %1669 = vmatprep.mubr.bf16.mxu1 %v7401_v19 }
  0x86   : > { %1509 = vmatmul.mubr.bf16.gmra.mrb[40].mxu0 %v7341_v17 }
  0x87   : > { %1516 = vmatprep.mubr.bf16.mxu0 %v7574_v36 }
  0x88   : > { %1670 = vmatmul.mubr.bf16.gmra.mrb[40].mxu1 %v7568_v18 }
  0x89   : > { %1677 = vmatprep.mubr.bf16.mxu1 %v7421_v44 }
  0x8e   : > { %1517 = vmatmul.mubr.bf16.gmra.mrb[44].mxu0 %v7401_v19 }
  0x8f   : > { %1524 = vmatprep.mubr.bf16.mxu0 %v7595_v34 }
  0x90   : > { %1678 = vmatmul.mubr.bf16.gmra.mrb[44].mxu1 %v7585_v29 }
  0x91   : > { %1685 = vmatprep.mubr.bf16.mxu1 %v7477_v56 }
  0x96   : > { %1525 = vmatmul.mubr.bf16.gmra.mrb[48].mxu0 %v7421_v44 }
  0x97   : > { %1532 = vmatprep.mubr.bf16.mxu0 %v7611_v11 }
  0x98   : > { %1686 = vmatmul.mubr.bf16.gmra.mrb[48].mxu1 %v7605_v58 }
  0x99   : > { %1693 = vmatprep.mubr.bf16.mxu1 %v7491_v31 }
  0x9e   : > { %1533 = vmatmul.mubr.bf16.gmra.mrb[52].mxu0 %v7477_v56 }
  0x9f   : > { %1540 = vmatprep.mubr.bf16.mxu0 %v7629_v33 }
  0xa0   : > { %1694 = vmatmul.mubr.bf16.gmra.mrb[52].mxu1 %v7625_v62 }
  0xa1   : > { %1701 = vmatprep.mubr.bf16.mxu1 %v7522_v48 }
  0xa6   : > { %1541 = vmatmul.mubr.bf16.gmra.mrb[56].mxu0 %v7491_v31 }
  0xa7   : > { %1548 = vmatprep.mubr.bf16.mxu0 %v7641_v3 }
  0xa8   : > { %1702 = vmatmul.mubr.bf16.gmra.mrb[56].mxu1 %v7635_v4 }
  0xa9   : > { %1709 = vmatprep.mubr.bf16.mxu1 %v7637_v47 }
  0xae   : > { %1549 = vmatmul.mubr.bf16.gmra.mrb[60].mxu0 %v7522_v48 }
  0xaf   : > { %1750 = vmatprep.mubr.bf16.mxu0 %v7152_v35  ;;  %v6748_v35 = vld [vmem:[%s9494_s2 + $0x220] sm:$0xff]  }
  0xb0   : > { %1710 = vmatmul.mubr.bf16.gmra.mrb[60].mxu1 %v7648_v25 }
  0xb1   : > { %1911 = vmatprep.mubr.bf16.mxu1 %v7180_v57 }
  0xb6   : > { %1751 = vmatmul.mubr.bf16.vlgmr.msra.gmra.mrb[64].mxu0 %v7162_v41  ;;  %v6749_v41 = vld [vmem:[%s9494_s2 + $0x228] sm:$0xff]  }
  0xb7   : > { %6542 = vmatpush3.bf16.msra.mxu0 %v7527_v9  ;;  %1758 = vmatprep.mubr.bf16.mxu0 %v7192_v2  ;;  %v377_v9 = vld [vmem:[%s7094_s17 + $0x1a0] sm:$0xff] }
  0xb8   : > { %1912 = vmatmul.mubr.bf16.vlgmr.msra.gmra.mrb[64].mxu1 %v7134_v13  ;;  %6543 = vmatprep.subr.bf16.mxu0 %v6745_v61  ;;  %v6747_v13 = vld [vmem:[%s9494_s2 + $0x218] sm:$0xff]  }
  0xb9   : > { %1919 = vmatprep.mubr.bf16.mxu1 %v7214_v21 }
  0xbb   : > { %6544 = vmatpush3.bf16.msra.mxu0 %v6745_v61 }
  0xbc   : > { %6545 = vmatprep.subr.bf16.mxu0 %v6746_v15 }
  0xbe   : > { %1759 = vmatmul.mubr.bf16.gmra.mrb[68].mxu0 %v7180_v57  ;;  %v321_v57 = vld [vmem:[%s7086_s11 + $0x190] sm:$0x3] }
  0xbf   : > { %1766 = vmatprep.mubr.bf16.mxu0 %v7232_v37  ;;  %6546 = vmatpush3.bf16.msra.mxu0 %v6746_v15 }
  0xc0   : > { %1920 = vmatmul.mubr.bf16.gmra.mrb[68].mxu1 %v7164_v42  ;;  %6547 = vmatprep.subr.bf16.mxu0 %v6747_v13  ;;  %v6750_v42 = vld [vmem:[%s9494_s2 + $0x230] sm:$0xff]  }
  0xc1   : > { %1927 = vmatprep.mubr.bf16.mxu1 %v7246_v50 }
  0xc3   : > { %6548 = vmatpush3.bf16.msra.mxu0 %v6747_v13 }
  0xc4   : > { %6549 = vmatprep.subr.bf16.mxu0 %v6748_v35 }
  0xc6   : > { %1767 = vmatmul.mubr.bf16.gmra.mrb[72].mxu0 %v7214_v21  ;;  %v375_v21 = vld [vmem:[%s7094_s17 + $0x190] sm:$0x3] }
  0xc7   : > { %1774 = vmatprep.mubr.bf16.mxu0 %v7269_v7  ;;  %6550 = vmatpush3.bf16.msra.mxu0 %v6748_v35 }
  0xc8   : > { %1928 = vmatmul.mubr.bf16.gmra.mrb[72].mxu1 %v7174_v54  ;;  %6551 = vmatprep.subr.bf16.mxu0 %v6749_v41  ;;  %v6751_v54 = vld [vmem:[%s9494_s2 + $0x238] sm:$0xff]  }
  0xc9   : > { %1935 = vmatprep.mubr.bf16.mxu1 %v7302_v39 }
  0xcb   : > { %6552 = vmatpush3.bf16.msra.mxu0 %v6749_v41 }
  0xcc   : > { %6553 = vmatprep.subr.bf16.mxu0 %v6750_v42 }
  0xce   : > { %1775 = vmatmul.mubr.bf16.gmra.mrb[76].mxu0 %v7246_v50 }
  0xcf   : > { %1782 = vmatprep.mubr.bf16.mxu0 %v7317_v59  ;;  %6554 = vmatpush3.bf16.msra.mxu0 %v6750_v42 }
  0xd0   : > { %1936 = vmatmul.mubr.bf16.gmra.mrb[76].mxu1 %v7218_v23  ;;  %6555 = vmatprep.subr.bf16.mxu0 %v6751_v54 }
  0xd1   : > { %1943 = vmatprep.mubr.bf16.mxu1 %v7355_v30 }
  0xd3   : > { %6556 = vmatpush3.bf16.msra.mxu0 %v6751_v54 }
  0xd6   : > { %1783 = vmatmul.mubr.bf16.gmra.mrb[80].mxu0 %v7302_v39 }
  0xd7   : > { %1790 = vmatprep.mubr.bf16.mxu0 %v7375_v55 }
  0xd8   : > { %1944 = vmatmul.mubr.bf16.gmra.mrb[80].mxu1 %v7250_v53 }
  0xd9   : > { %1951 = vmatprep.mubr.bf16.mxu1 %v7417_v40 }
  0xde   : > { %1791 = vmatmul.mubr.bf16.gmra.mrb[84].mxu0 %v7355_v30  ;;  %v322_v30 = vld [vmem:[%s7086_s11 + $0x198] sm:$0xff] }
  0xdf   : > { %1798 = vmatprep.mubr.bf16.mxu0 %v7449_v8 }
  0xe0   : > { %1952 = vmatmul.mubr.bf16.gmra.mrb[84].mxu1 %v7259_v0 }
  0xe1   : > { %1959 = vmatprep.mubr.bf16.mxu1 %v7474_v49 }
  0xe6   : > { %1799 = vmatmul.mubr.bf16.gmra.mrb[88].mxu0 %v7417_v40 }
  0xe7   : > { %1806 = vmatprep.mubr.bf16.mxu0 %v7510_v60 }
  0xe8   : > { %1960 = vmatmul.mubr.bf16.gmra.mrb[88].mxu1 %v7288_v26  ;;  %v429_v26 = vmul.f32 %v375_v21, %v321_v57 }
  0xe9   : > { %1967 = vmatprep.mubr.bf16.mxu1 %v7532_v32 }
  0xea   : > { %v7733_v28 = vpack.c.bf16 %v429_v26, %v429_v26 }
  0xec   : > { %v783_v63 = vshll.u32 %v7733_v28, 16 }
  0xee   : > { %1807 = vmatmul.mubr.bf16.gmra.mrb[92].mxu0 %v7474_v49  ;;  %v376_v49 = vld [vmem:[%s7094_s17 + $0x198] sm:$0xff]  ;;  %s5596_s17 = sshll.u32 %s6967_s25, 12  ;;  %s9451_s25 = scalar_lea.sflag [#allocation4], %s257_s9 }
  0xef   : > { %1814 = vmatprep.mubr.bf16.mxu0 %v7550_v14  ;;  %v430_v45 = vmul.f32 %v376_v49, %v322_v30  ;;  %s9442_s14 = scalar_lea.hbm %s9498_s6, %s5596_s17 }
  0xf0   : > { %1968 = vmatmul.mubr.bf16.gmra.mrb[92].mxu1 %v7321_v1  ;;  %v7725_v1 = vld [vmem:[%s9495_s3] ss:$0 sm:$0xff] }
  0xf1   : > { %1975 = vmatprep.mubr.bf16.mxu1 %v7558_v27 }
  0xf6   : > { %1815 = vmatmul.mubr.bf16.gmra.mrb[96].mxu0 %v7532_v32 }
  0xf7   : > { %1822 = vmatprep.mubr.bf16.mxu0 %v7568_v18 }
  0xf8   : > { %1976 = vmatmul.mubr.bf16.gmra.mrb[96].mxu1 %v7341_v17 }
  0xf9   : > { %1983 = vmatprep.mubr.bf16.mxu1 %v7574_v36 }
  0xfe   : > { %1823 = vmatmul.mubr.bf16.gmra.mrb[100].mxu0 %v7558_v27 }
  0xff   : > { %1830 = vmatprep.mubr.bf16.mxu0 %v7585_v29 }
 0x100   : > { %1984 = vmatmul.mubr.bf16.gmra.mrb[100].mxu1 %v7401_v19 }
 0x101   : > { %1991 = vmatprep.mubr.bf16.mxu1 %v7595_v34 }
 0x106   : > { %1831 = vmatmul.mubr.bf16.gmra.mrb[104].mxu0 %v7574_v36 }
 0x107   : > { %1838 = vmatprep.mubr.bf16.mxu0 %v7605_v58 }
 0x108   : > { %1992 = vmatmul.mubr.bf16.gmra.mrb[104].mxu1 %v7421_v44  ;;  %v323_v44 = vld [vmem:[%s7086_s11 + $0x1a0] sm:$0xff]  ;;  %s9378_s11 = scalar_lea.vmem [#allocation3], %s5306_s26 }
 0x109   : > { %1999 = vmatprep.mubr.bf16.mxu1 %v7611_v11  ;;  %v5613_v39 = vpop.f32.mrb[0].mxu0  ;;  %v431_v46 = vmul.f32 %v377_v9, %v323_v44  ;;  %s5228_s10 = sshll.u32 %s9378_s11, 4  ;;  %s9444_s10 = int_to_ptr.vmem [resolvable:$true] %s5228_s10 }
 0x10a   : > { %v5614_v19 = vpop.f32.mrb[1].mxu0  ;;  %s6843_s16 = scalar_lea.vmem %s9444_s10, 4096  ;;  %p6850_p0 = scmp.lt.s32.totalorder %s9444_s10, %s6848_s19 }
 0x10b   : > { %v5725_v23 = vpop.f32.mrb[0].mxu1  ;;  %v5615_v32 = vadd.f32 %v5614_v19, %v5613_v39  ;;  %v5616_v27 = vpop.f32.mrb[2].mxu0  ;;  %v7746_v13 = vpack.c.bf16 %v431_v46, %v430_v45  ;;  %p6844_p11 = scmp.ne.s32.totalorder %s9444_s10, %s6843_s16  ;;  %p6851_p1 = scmp.lt.s32.totalorder %s6849_s15, %s6843_s16 }
 0x10c   : > { %v5726_v50 = vpop.f32.mrb[1].mxu1  ;;  %v5617_v36 = vpop.f32.mrb[3].mxu0 }
 0x10d   : > { %v5727_v53 = vadd.f32 %v5726_v50, %v5725_v23  ;;  %v5728_v0 = vpop.f32.mrb[2].mxu1  ;;  %v1431_v52 = vadd.f32 %v5615_v32, %v7725_v1  ;;  %v5618_v12 = vadd.f32 %v5617_v36, %v5616_v27  ;;  %v781_v23 = vor.u32 %v780_v6, %v776_v24  ;;  %p6845_p12 = pnand %p6844_p11, %p6984_p5  ;;  %p6852_p2 = por %p6851_p1, %p6850_p0 }
 0x10e   : > { %v5729_v17 = vpop.f32.mrb[3].mxu1  ;;  %1839 = vmatmul.mubr.bf16.gmra.mrb[108].mxu0 %v7595_v34  ;;  %v432_v34 = vmul.f32 %v378_v20, %v324_v43  ;;  %v785_v50 = vrot.slane %v783_v63, 1  ;;  %v797_v39 = vshll.u32 %v7746_v13, 16  ;;  %v795_v27 = vshrl.u32 %v7746_v13, 16 }
 0x10f   : > { %v5730_v40 = vadd.f32 %v5729_v17, %v5728_v0  ;;  %v1434_v22 = vadd.f32 %v5618_v12, %v7725_v1  ;;  %1846 = vmatprep.mubr.bf16.mxu0 %v7625_v62  ;;  %v7742_v38 = vadd.f32 %v5727_v53, %v1431_v52  ;;  %p6846_p13 = pneg %p6845_p12 }
 0x110   : > { %2000 = vmatmul.mubr.bf16.gmra.mrb[108].mxu1 %v7477_v56  ;;  %v7753_v26 = vpack.c.bf16 %v432_v34, %v432_v34  ;;  %v7762_v49 = vsel %vm469_vm0, %v781_v23, %v785_v50  ;;  %v799_v36 = vrot.slane %v797_v39, 1 }
 0x111   : > { %2007 = vmatprep.mubr.bf16.mxu1 %v7629_v33  ;;  %v5619_v61 = vpop.f32.mrb[4].mxu0  ;;  %v7748_v35 = vadd.f32 %v5730_v40, %v1434_v22  ;;  %p6853_p3 = pnand %p6852_p2, %p6846_p13 }
 0x112   : > { %v5620_v41 = vpop.f32.mrb[5].mxu0  ;;  %v800_v22 = vor.u32 %v799_v36, %v795_v27 }
 0x113   : > { %v5731_v10 = vpop.f32.mrb[4].mxu1  ;;  %v5621_v54 = vadd.f32 %v5620_v41, %v5619_v61  ;;  %v5622_v57 = vpop.f32.mrb[6].mxu0  ;;  %v790_v61 = vrot.slane %v7637_v47, 1 }
 0x114   : > { %v5732_v56 = vpop.f32.mrb[5].mxu1  ;;  %v5623_v21 = vpop.f32.mrb[7].mxu0 }
 0x115   : > { %v5733_v16 = vadd.f32 %v5732_v56, %v5731_v10  ;;  %v5734_v51 = vpop.f32.mrb[6].mxu1  ;;  %v1439_v53 = vadd.f32 %v5621_v54, %v7725_v1  ;;  %v5624_v0 = vadd.f32 %v5623_v21, %v5622_v57 }
 0x116   : > { %v5735_v15 = vpop.f32.mrb[7].mxu1  ;;  %1847 = vmatmul.mubr.bf16.gmra.mrb[112].mxu0 %v7611_v11  ;;  %v802_v11 = vshll.u32 %v7753_v26, 16 }
 0x117   : > { %v5736_v42 = vadd.f32 %v5735_v15, %v5734_v51  ;;  %v1442_v30 = vadd.f32 %v5624_v0, %v7725_v1  ;;  %1854 = vmatprep.mubr.bf16.mxu0 %v7635_v4  ;;  %v791_v15 = vrot.slane %v7733_v28, 1 }
 0x118   : > { %2008 = vmatmul.mubr.bf16.gmra.mrb[112].mxu1 %v7491_v31  ;;  %v7759_v31 = vadd.f32 %v5733_v16, %v1439_v53  ;;  %v804_v56 = vrot.slane %v802_v11, 1 }
 0x119   : > { %2015 = vmatprep.mubr.bf16.mxu1 %v7641_v3  ;;  %v5625_v9 = vpop.f32.mrb[8].mxu0  ;;  %v7766_v5 = vadd.f32 %v5736_v42, %v1442_v30  ;;  %v7783_v53 = vsel %vm710_vm1, %v790_v61, %v791_v15 }
 0x11a   : > { %v5626_v52 = vpop.f32.mrb[9].mxu0  ;;  %v805_v42 = vsel %vm469_vm0, %v800_v22, %v804_v56  ;;  %vm8230_vm0 = vmor %vm2242_vm3, %vm2438_vm14 }
 0x11b   : > { %v5737_v17 = vpop.f32.mrb[8].mxu1  ;;  %v5627_v45 = vadd.f32 %v5626_v52, %v5625_v9  ;;  %v5628_v46 = vpop.f32.mrb[10].mxu0 }
 0x11c   : > { %v5738_v19 = vpop.f32.mrb[9].mxu1  ;;  %v5629_v10 = vpop.f32.mrb[11].mxu0 }
 0x11d   : > { %v5739_v40 = vadd.f32 %v5738_v19, %v5737_v17  ;;  %v5740_v44 = vpop.f32.mrb[10].mxu1  ;;  %v1447_v43 = vadd.f32 %v5627_v45, %v7725_v1  ;;  %v5630_v20 = vadd.f32 %v5629_v10, %v5628_v46 }
 0x11e   : > { %v5741_v32 = vpop.f32.mrb[11].mxu1  ;;  %1855 = vmatmul.mubr.bf16.gmra.mrb[116].mxu0 %v7629_v33 }
 0x11f   : > { %v5742_v12 = vadd.f32 %v5741_v32, %v5740_v44  ;;  %v1450_v51 = vadd.f32 %v5630_v20, %v7725_v1  ;;  %1862 = vmatprep.mubr.bf16.mxu0 %v7648_v25  ;;  %v7774_v6 = vadd.f32 %v5739_v40, %v1447_v43  ;;  %v6753_v40 = vld [vmem:[%s9496_s4] sm:$0xff]  }
 0x120   : > { %2016 = vmatmul.mubr.bf16.gmra.mrb[116].mxu1 %v7522_v48 }
 0x121   : > { %2023 = vmatprep.mubr.bf16.mxu1 %v7762_v49  ;;  %v5631_v34 = vpop.f32.mrb[12].mxu0  ;;  %v7779_v54 = vadd.f32 %v5742_v12, %v1450_v51 }
 0x122   : > { %v5632_v33 = vpop.f32.mrb[13].mxu0 }
 0x123   : > { %v5743_v16 = vpop.f32.mrb[12].mxu1  ;;  %v5633_v21 = vadd.f32 %v5632_v33, %v5631_v34  ;;  %v5634_v23 = vpop.f32.mrb[14].mxu0 }
 0x124   : > { %v5744_v24 = vpop.f32.mrb[13].mxu1  ;;  %v5635_v50 = vpop.f32.mrb[15].mxu0 }
 0x125   : > { %v5745_v63 = vadd.f32 %v5744_v24, %v5743_v16  ;;  %v5746_v48 = vpop.f32.mrb[14].mxu1  ;;  %v1455_v0 = vadd.f32 %v5633_v21, %v7725_v1  ;;  %v5636_v28 = vadd.f32 %v5635_v50, %v5634_v23  ;;  %v6754_v50 = vld [vmem:[%s9496_s4 + $0x48] sm:$0xff]  }
 0x126   : > { %v5747_v41 = vpop.f32.mrb[15].mxu1  ;;  %1863 = vmatmul.mubr.bf16.gmra.mrb[120].mxu0 %v7641_v3 }
 0x127   : > { %v5748_v57 = vadd.f32 %v5747_v41, %v5746_v48  ;;  %v1458_v17 = vadd.f32 %v5636_v28, %v7725_v1  ;;  %1870 = vmatprep.mubr.bf16.mxu0 %v7783_v53  ;;  %v7789_v19 = vadd.f32 %v5745_v63, %v1455_v0  ;;  %v6755_v0 = vld [vmem:[%s9496_s4 + $0x8] sm:$0xff]  }
 0x128   : > { %2024 = vmatmul.mubr.bf16.gmra.mrb[120].mxu1 %v7637_v47  ;;  %v6752_v47 = vld [vmem:[%s9496_s4 + $0x40] sm:$0xff]  }
 0x129   : > { %2031 = vmatprep.mubr.bf16.mxu1 %v805_v42  ;;  %v5637_v32 = vpop.f32.mrb[16].mxu0  ;;  %v7797_v27 = vadd.f32 %v5748_v57, %v1458_v17  ;;  %6069 = vmatprep.subr.bf16.mxu1 %v6752_v47 }
 0x12a   : > { %v5638_v36 = vpop.f32.mrb[17].mxu0  ;;  %6070 = vmatpush3.bf16.msra.mxu1 %v6753_v40 }
 0x12b   : > { %v5749_v39 = vpop.f32.mrb[16].mxu1  ;;  %v5639_v52 = vadd.f32 %v5638_v36, %v5637_v32  ;;  %v5640_v12 = vpop.f32.mrb[18].mxu0  ;;  %6071 = vmatprep.subr.bf16.mxu1 %v6754_v50 }
 0x12c   : > { %v5750_v30 = vpop.f32.mrb[17].mxu1  ;;  %v5641_v45 = vpop.f32.mrb[19].mxu0 }
 0x12d   : > { %v5751_v44 = vadd.f32 %v5750_v30, %v5749_v39  ;;  %v5752_v9 = vpop.f32.mrb[18].mxu1  ;;  %v1463_v46 = vadd.f32 %v5639_v52, %v7725_v1  ;;  %v5642_v10 = vadd.f32 %v5641_v45, %v5640_v12 }
 0x12e   : > { %v5753_v3 = vpop.f32.mrb[19].mxu1  ;;  %1871 = vmatmul.mubr.bf16.gmra.mrb[124].mxu0 %v7762_v49  ;;  %6072 = vmatpush3.bf16.msra.mxu1 %v6755_v0 }
 0x12f   : > { %v5754_v11 = vadd.f32 %v5753_v3, %v5752_v9  ;;  %v1466_v20 = vadd.f32 %v5642_v10, %v7725_v1  ;;  %6557 = vmatprep.mubr.bf16.mxu0 %v7192_v2  ;;  %v7804_v56 = vadd.f32 %v5751_v44, %v1463_v46 }
 0x130   : > { %2032 = vmatmul.mubr.bf16.gmra.mrb[124].mxu1 %v7746_v13 }
 0x131   : > { %v5643_v24 = vpop.f32.mrb[20].mxu0  ;;  %v7806_v48 = vadd.f32 %v5754_v11, %v1466_v20 }
 0x132   : > { %v5644_v61 = vpop.f32.mrb[21].mxu0 }
 0x133   : > { %v5755_v43 = vpop.f32.mrb[20].mxu1  ;;  %v5645_v34 = vadd.f32 %v5644_v61, %v5643_v24  ;;  %v5646_v41 = vpop.f32.mrb[22].mxu0 }
 0x134   : > { %v5756_v22 = vpop.f32.mrb[21].mxu1  ;;  %v5647_v42 = vpop.f32.mrb[23].mxu0 }
 0x135   : > { %v5757_v16 = vadd.f32 %v5756_v22, %v5755_v43  ;;  %v5758_v51 = vpop.f32.mrb[22].mxu1  ;;  %v1471_v49 = vadd.f32 %v5645_v34, %v7725_v1  ;;  %v5648_v33 = vadd.f32 %v5647_v42, %v5646_v41  ;;  %v6756_v42 = vld [vmem:[%s9496_s4 + $0x50] sm:$0xff]  }
 0x136   : > { %v5759_v63 = vpop.f32.mrb[23].mxu1  ;;  %6558 = vmatmul.mubr.bf16.vlgmr.msra.gmra.mrb[128].mxu0 %v7232_v37  ;;  %6073 = vmatprep.subr.bf16.mxu1 %v6756_v42 }
 0x137   : > { %v5760_v15 = vadd.f32 %v5759_v63, %v5758_v51  ;;  %v1474_v2 = vadd.f32 %v5648_v33, %v7725_v1  ;;  %6561 = vmatprep.mubr.bf16.mxu0 %v7269_v7  ;;  %v7812_v23 = vadd.f32 %v5757_v16, %v1471_v49  ;;  %v6757_v49 = vld [vmem:[%s9496_s4 + $0x10] sm:$0xff]  }
 0x138   : > { %6074 = vmatpush3.bf16.msra.mxu1 %v6757_v49 }
 0x139   : > { %v5649_v17 = vpop.f32.mrb[24].mxu0  ;;  %v7820_v30 = vadd.f32 %v5760_v15, %v1474_v2 }
 0x13a   : > { %v5650_v47 = vpop.f32.mrb[25].mxu0 }
 0x13b   : > { %v5761_v57 = vpop.f32.mrb[24].mxu1  ;;  %v5651_v7 = vadd.f32 %v5650_v47, %v5649_v17  ;;  %v5652_v44 = vpop.f32.mrb[26].mxu0 }
 0x13c   : > { %v5762_v21 = vpop.f32.mrb[25].mxu1  ;;  %v5653_v9 = vpop.f32.mrb[27].mxu0 }
 0x13d   : > { %v5763_v28 = vadd.f32 %v5762_v21, %v5761_v57  ;;  %v5764_v39 = vpop.f32.mrb[26].mxu1  ;;  %v1479_v32 = vadd.f32 %v5651_v7, %v7725_v1  ;;  %v5654_v3 = vadd.f32 %v5653_v9, %v5652_v44 }
 0x13e   : > { %v5765_v37 = vpop.f32.mrb[27].mxu1  ;;  %6562 = vmatmul.mubr.bf16.gmra.mrb[132].mxu0 %v7317_v59 }
 0x13f   : > { %v5766_v40 = vadd.f32 %v5765_v37, %v5764_v39  ;;  %v1482_v11 = vadd.f32 %v5654_v3, %v7725_v1  ;;  %6565 = vmatprep.mubr.bf16.mxu0 %v7375_v55  ;;  %v7826_v12 = vadd.f32 %v5763_v28, %v1479_v32 }
 0x141   : > { %v5655_v10 = vpop.f32.mrb[28].mxu0  ;;  %v7828_v20 = vadd.f32 %v5766_v40, %v1482_v11 }
 0x142   : > { %v5656_v22 = vpop.f32.mrb[29].mxu0 }
 0x143   : > { %v5767_v36 = vpop.f32.mrb[28].mxu1  ;;  %v5657_v51 = vadd.f32 %v5656_v22, %v5655_v10  ;;  %v5658_v24 = vpop.f32.mrb[30].mxu0 }
 0x144   : > { %v5768_v52 = vpop.f32.mrb[29].mxu1  ;;  %v5659_v63 = vpop.f32.mrb[31].mxu0 }
 0x145   : > { %v5769_v45 = vadd.f32 %v5768_v52, %v5767_v36  ;;  %v5770_v46 = vpop.f32.mrb[30].mxu1  ;;  %v1487_v59 = vadd.f32 %v5657_v51, %v7725_v1  ;;  %v5660_v61 = vadd.f32 %v5659_v63, %v5658_v24  ;;  %v6758_v63 = vld [vmem:[%s9496_s4 + $0x58] sm:$0xff]  }
 0x146   : > { %v5771_v43 = vpop.f32.mrb[31].mxu1  ;;  %6566 = vmatmul.mubr.bf16.gmra.mrb[136].mxu0 %v7449_v8  ;;  %6075 = vmatprep.subr.bf16.mxu1 %v6758_v63 }
 0x147   : > { %v5772_v16 = vadd.f32 %v5771_v43, %v5770_v46  ;;  %v1490_v55 = vadd.f32 %v5660_v61, %v7725_v1  ;;  %6569 = vmatprep.mubr.bf16.mxu0 %v7510_v60  ;;  %v7834_v41 = vadd.f32 %v5769_v45, %v1487_v59  ;;  %v6759_v59 = vld [vmem:[%s9496_s4 + $0x18] sm:$0xff]  }
 0x148   : > { %6076 = vmatpush3.bf16.msra.mxu1 %v6759_v59 }
 0x149   : > { %v5661_v2 = vpop.f32.mrb[32].mxu0  ;;  %v7842_v21 = vadd.f32 %v5772_v16, %v1490_v55 }
 0x14a   : > { %v5662_v50 = vpop.f32.mrb[33].mxu0 }
 0x14b   : > { %v5773_v15 = vpop.f32.mrb[32].mxu1  ;;  %v5663_v60 = vadd.f32 %v5662_v50, %v5661_v2  ;;  %v5664_v28 = vpop.f32.mrb[34].mxu0 }
 0x14c   : > { %v5774_v34 = vpop.f32.mrb[33].mxu1  ;;  %v5665_v39 = vpop.f32.mrb[35].mxu0 }
 0x14d   : > { %v5775_v33 = vadd.f32 %v5774_v34, %v5773_v15  ;;  %v5776_v57 = vpop.f32.mrb[34].mxu1  ;;  %v1495_v17 = vadd.f32 %v5663_v60, %v7725_v1  ;;  %v5666_v37 = vadd.f32 %v5665_v39, %v5664_v28 }
 0x14e   : > { %v5777_v8 = vpop.f32.mrb[35].mxu1  ;;  %6570 = vmatmul.mubr.bf16.gmra.mrb[140].mxu0 %v7550_v14 }
 0x14f   : > { %v5778_v0 = vadd.f32 %v5777_v8, %v5776_v57  ;;  %v1498_v40 = vadd.f32 %v5666_v37, %v7725_v1  ;;  %v7847_v7 = vadd.f32 %v5775_v33, %v1495_v17  ;;  %6573 = vmatprep.mubr.bf16.mxu0 %v7568_v18 }
 0x151   : > { %v7850_v3 = vadd.f32 %v5778_v0, %v1498_v40  ;;  %v5667_v36 = vpop.f32.mrb[36].mxu0 }
 0x152   : > { %v5668_v52 = vpop.f32.mrb[37].mxu0 }
 0x153   : > { %v5779_v47 = vpop.f32.mrb[36].mxu1  ;;  %v5669_v46 = vadd.f32 %v5668_v52, %v5667_v36  ;;  %v5670_v10 = vpop.f32.mrb[38].mxu0 }
 0x154   : > { %v5780_v44 = vpop.f32.mrb[37].mxu1  ;;  %v5671_v43 = vpop.f32.mrb[39].mxu0 }
 0x155   : > { %v5781_v9 = vadd.f32 %v5780_v44, %v5779_v47  ;;  %v5782_v32 = vpop.f32.mrb[38].mxu1  ;;  %v1503_v14 = vadd.f32 %v5669_v46, %v7725_v1  ;;  %v5672_v22 = vadd.f32 %v5671_v43, %v5670_v10  ;;  %v809_v43 = vrot.slane %v7746_v13, 1 }
 0x156   : > { %v5783_v11 = vpop.f32.mrb[39].mxu1  ;;  %6574 = vmatmul.mubr.bf16.gmra.mrb[144].mxu0 %v7585_v29 }
 0x157   : > { %v5784_v45 = vadd.f32 %v5783_v11, %v5782_v32  ;;  %v1506_v51 = vadd.f32 %v5672_v22, %v7725_v1  ;;  %v7855_v18 = vadd.f32 %v5781_v9, %v1503_v14  ;;  %6577 = vmatprep.mubr.bf16.mxu0 %v7605_v58  ;;  %v810_v14 = vrot.slane %v7753_v26, 1  ;;  %v6760_v22 = vld [vmem:[%s9496_s4 + $0x60] sm:$0xff]  }
 0x158   : > { %6077 = vmatprep.subr.bf16.mxu1 %v6760_v22 }
 0x159   : > { %v7864_v55 = vadd.f32 %v5784_v45, %v1506_v51  ;;  %v5673_v29 = vpop.f32.mrb[40].mxu0 }
 0x15a   : > { %v5674_v42 = vpop.f32.mrb[41].mxu0 }
 0x15b   : > { %v5785_v16 = vpop.f32.mrb[40].mxu1  ;;  %v5675_v33 = vadd.f32 %v5674_v42, %v5673_v29  ;;  %v5676_v58 = vpop.f32.mrb[42].mxu0 }
 0x15c   : > { %v5786_v24 = vpop.f32.mrb[41].mxu1  ;;  %v5677_v57 = vpop.f32.mrb[43].mxu0 }
 0x15d   : > { %v5787_v61 = vadd.f32 %v5786_v24, %v5785_v16  ;;  %v5788_v15 = vpop.f32.mrb[42].mxu1  ;;  %v1511_v2 = vadd.f32 %v5675_v33, %v7725_v1  ;;  %v5678_v8 = vadd.f32 %v5677_v57, %v5676_v58 }
 0x15e   : > { %v5789_v34 = vpop.f32.mrb[43].mxu1  ;;  %6578 = vmatmul.mubr.bf16.gmra.mrb[148].mxu0 %v7625_v62 }
 0x15f   : > { %v5790_v49 = vadd.f32 %v5789_v34, %v5788_v15  ;;  %v1514_v0 = vadd.f32 %v5678_v8, %v7725_v1  ;;  %v7869_v60 = vadd.f32 %v5787_v61, %v1511_v2  ;;  %6581 = vmatprep.mubr.bf16.mxu0 %v7635_v4  ;;  %v811_v15 = vsel %vm710_vm1, %v809_v43, %v810_v14 }
 0x161   : > { %v7872_v37 = vadd.f32 %v5790_v49, %v1514_v0  ;;  %v5679_v47 = vpop.f32.mrb[44].mxu0 }
 0x162   : > { %v5680_v44 = vpop.f32.mrb[45].mxu0 }
 0x163   : > { %v5791_v50 = vpop.f32.mrb[44].mxu1  ;;  %v5681_v32 = vadd.f32 %v5680_v44, %v5679_v47  ;;  %v5682_v36 = vpop.f32.mrb[46].mxu0 }
 0x164   : > { %v5792_v28 = vpop.f32.mrb[45].mxu1  ;;  %v5683_v11 = vpop.f32.mrb[47].mxu0 }
 0x165   : > { %v5793_v39 = vadd.f32 %v5792_v28, %v5791_v50  ;;  %v5794_v17 = vpop.f32.mrb[46].mxu1  ;;  %v1519_v62 = vadd.f32 %v5681_v32, %v7725_v1  ;;  %v5684_v52 = vadd.f32 %v5683_v11, %v5682_v36 }
 0x166   : > { %v5795_v40 = vpop.f32.mrb[47].mxu1  ;;  %6582 = vmatmul.mubr.bf16.gmra.mrb[152].mxu0 %v7648_v25  ;;  %v6761_v25 = vld [vmem:[%s9496_s4 + $0x20] sm:$0xff]  }
 0x167   : > { %v5796_v9 = vadd.f32 %v5795_v40, %v5794_v17  ;;  %v1522_v46 = vadd.f32 %v5684_v52, %v7725_v1  ;;  %v7877_v4 = vadd.f32 %v5793_v39, %v1519_v62  ;;  %6585 = vmatprep.mubr.bf16.mxu0 %v7783_v53  ;;  %6078 = vmatpush3.bf16.msra.mxu1 %v6761_v25 }
 0x169   : > { %v7888_v24 = vadd.f32 %v5796_v9, %v1522_v46  ;;  %v5685_v63 = vpop.f32.mrb[48].mxu0  ;;  %v6763_v46 = vld [vmem:[%s9496_s4 + $0x28] sm:$0xff]  }
 0x16a   : > { %v5686_v53 = vpop.f32.mrb[49].mxu0 }
 0x16b   : > { %v5797_v45 = vpop.f32.mrb[48].mxu1  ;;  %v5687_v13 = vadd.f32 %v5686_v53, %v5685_v63  ;;  %v5688_v26 = vpop.f32.mrb[50].mxu0 }
 0x16c   : > { %v5798_v10 = vpop.f32.mrb[49].mxu1  ;;  %v5689_v29 = vpop.f32.mrb[51].mxu0 }
 0x16d   : > { %v5799_v16 = vadd.f32 %v5798_v10, %v5797_v45  ;;  %v5800_v51 = vpop.f32.mrb[50].mxu1  ;;  %v1527_v34 = vadd.f32 %v5687_v13, %v7725_v1  ;;  %v5690_v42 = vadd.f32 %v5689_v29, %v5688_v26  ;;  %v6762_v45 = vld [vmem:[%s9496_s4 + $0x68] sm:$0xff]  }
 0x16e   : > { %v5801_v59 = vpop.f32.mrb[51].mxu1  ;;  %6586 = vmatmul.mubr.bf16.gmra.mrb[156].mxu0 %v811_v15  ;;  %6079 = vmatprep.subr.bf16.mxu1 %v6762_v45  ;;  %v6765_v45 = vld [vmem:[%s9496_s4 + $0x70] sm:$0xff]  }
 0x16f   : > { %v5802_v61 = vadd.f32 %v5801_v59, %v5800_v51  ;;  %v1530_v33 = vadd.f32 %v5690_v42, %v7725_v1  ;;  %v7893_v58 = vadd.f32 %v5799_v16, %v1527_v34  ;;  %6080 = vmatpush3.bf16.msra.mxu1 %v6763_v46  ;;  %v6767_v46 = vld [vmem:[%s9496_s4 + $0x30] sm:$0xff]  }
 0x170   : > { %6081 = vmatprep.subr.bf16.mxu1 %v6765_v45 }
 0x171   : > { %v7895_v50 = vadd.f32 %v5802_v61, %v1530_v33  ;;  %v5691_v0 = vpop.f32.mrb[52].mxu0 }
 0x172   : > { %v5692_v39 = vpop.f32.mrb[53].mxu0 }
 0x173   : > { %v5803_v49 = vpop.f32.mrb[52].mxu1  ;;  %v5693_v47 = vadd.f32 %v5692_v39, %v5691_v0  ;;  %v5694_v40 = vpop.f32.mrb[54].mxu0  ;;  %6082 = vmatpush3.bf16.msra.mxu1 %v6767_v46 }
 0x174   : > { %v5804_v57 = vpop.f32.mrb[53].mxu1  ;;  %v5695_v44 = vpop.f32.mrb[55].mxu0 }
 0x175   : > { %v5805_v2 = vadd.f32 %v5804_v57, %v5803_v49  ;;  %v5806_v8 = vpop.f32.mrb[54].mxu1  ;;  %v1535_v9 = vadd.f32 %v5693_v47, %v7725_v1  ;;  %v5696_v32 = vadd.f32 %v5695_v44, %v5694_v40  ;;  %v6766_v40 = vld [vmem:[%s9496_s4 + $0x80] sm:$0xff]  }
 0x176   : > { %v5807_v28 = vpop.f32.mrb[55].mxu1 }
 0x177   : > { %v5808_v17 = vadd.f32 %v5807_v28, %v5806_v8  ;;  %v1538_v11 = vadd.f32 %v5696_v32, %v7725_v1  ;;  %v7899_v62 = vadd.f32 %v5805_v2, %v1535_v9 }
 0x179   : > { %v7907_v14 = vadd.f32 %v5808_v17, %v1538_v11  ;;  %v5697_v22 = vpop.f32.mrb[56].mxu0  ;;  %v6764_v17 = vld [vmem:[%s9496_s4 + $0xc0] sm:$0xff]  }
 0x17a   : > { %v5698_v16 = vpop.f32.mrb[57].mxu0  ;;  %6181 = vmatprep.subr.bf16.mxu0 %v6764_v17  ;;  %v2297_v17 = vld [vmem:[#allocation2 + $0x20] sm:$0x1] }
 0x17b   : > { %v5809_v36 = vpop.f32.mrb[56].mxu1  ;;  %v5699_v63 = vadd.f32 %v5698_v16, %v5697_v22  ;;  %v5700_v59 = vpop.f32.mrb[58].mxu0  ;;  %6182 = vmatpush3.bf16.msra.mxu0 %v6766_v40 }
 0x17c   : > { %v5810_v52 = vpop.f32.mrb[57].mxu1  ;;  %v5701_v53 = vpop.f32.mrb[59].mxu0 }
 0x17d   : > { %v5811_v10 = vadd.f32 %v5810_v52, %v5809_v36  ;;  %v5812_v43 = vpop.f32.mrb[58].mxu1  ;;  %v1543_v61 = vadd.f32 %v5699_v63, %v7725_v1  ;;  %v5702_v13 = vadd.f32 %v5701_v53, %v5700_v59 }
 0x17e   : > { %v5813_v25 = vpop.f32.mrb[59].mxu1 }
 0x17f   : > { %v5814_v51 = vadd.f32 %v5813_v25, %v5812_v43  ;;  %v1546_v15 = vadd.f32 %v5702_v13, %v7725_v1  ;;  %v7911_v29 = vadd.f32 %v5811_v10, %v1543_v61  ;;  %v6768_v10 = vld [vmem:[%s9496_s4 + $0xc8] sm:$0xff]   ;;  %v6770_v13 = vld [vmem:[%s9496_s4 + $0xd0] sm:$0xff]  }
 0x180   : > { %6183 = vmatprep.subr.bf16.mxu0 %v6768_v10 }
 0x181   : > { %v7913_v33 = vadd.f32 %v5814_v51, %v1546_v15  ;;  %v5703_v57 = vpop.f32.mrb[60].mxu0 }
 0x182   : > { %v5704_v8 = vpop.f32.mrb[61].mxu0 }
 0x183   : > { %v5815_v26 = vpop.f32.mrb[60].mxu1  ;;  %v5705_v28 = vadd.f32 %v5704_v8, %v5703_v57  ;;  %v5706_v39 = vpop.f32.mrb[62].mxu0 }
 0x184   : > { %v5816_v34 = vpop.f32.mrb[61].mxu1  ;;  %v5707_v47 = vpop.f32.mrb[63].mxu0 }
 0x185   : > { %v5817_v42 = vadd.f32 %v5816_v34, %v5815_v26  ;;  %v5818_v49 = vpop.f32.mrb[62].mxu1  ;;  %v1551_v44 = vadd.f32 %v5705_v28, %v7725_v1  ;;  %v5708_v9 = vadd.f32 %v5707_v47, %v5706_v39  ;;  %v2247_v34 = vld [vmem:[#allocation2 + $0x18] sm:$0x1] }
 0x186   : > { %v5819_v2 = vpop.f32.mrb[63].mxu1 }
 0x187   : > { %v5820_v0 = vadd.f32 %v5819_v2, %v5818_v49  ;;  %v1554_v36 = vadd.f32 %v5708_v9, %v7725_v1  ;;  %v7923_v11 = vadd.f32 %v5817_v42, %v1551_v44  ;;  %v6769_v1 = vld [vmem:[%s9496_s4 + $0x88] sm:$0xff]   ;;  %v6771_v42 = vld [vmem:[%s9496_s4 + $0x90] sm:$0xff]   ;;  %v2248_v2 = vsel %vm7943_vm4, 0, %v2247_v34  ;;  %v2250_v34 = vld [vmem:[#allocation2 + $0x24] sm:$0x1] }
 0x188   : > { %6184 = vmatpush3.bf16.msra.mxu0 %v6769_v1  ;;  %2249 = vst [vmem:[#allocation2 + $0x18] sm:$0x1] %v2248_v2  ;;  %v2298_v44 = vsel %vm7954_vm6, 0, %v2297_v17  ;;  %v2294_v9 = vld [vmem:[#allocation2 + $0x14] sm:$0x1] }
 0x189   : > { %v7937_v25 = vadd.f32 %v5820_v0, %v1554_v36  ;;  %v5837_v16 = vpop.f32.mrb[64].mxu0  ;;  %v2244_v0 = vld [vmem:[#allocation2 + $0xc] sm:$0x1]  ;;  %6185 = vmatprep.subr.bf16.mxu0 %v6770_v13  ;;  %2299 = vst [vmem:[#allocation2 + $0x20] sm:$0x1] %v2298_v44  ;;  %v2295_v45 = vsel %vm7954_vm6, 0, %v2294_v9 }
 0x18a   : > { %v5838_v63 = vpop.f32.mrb[65].mxu0  ;;  %v2245_v39 = vsel %vm7943_vm4, 0, %v2244_v0  ;;  %2296 = vst [vmem:[#allocation2 + $0x14] sm:$0x1] %v2295_v45  ;;  %v2303_v45 = vld [vmem:[#allocation2 + $0x38] sm:$0x1] }
 0x18b   : > { %v5949_v32 = vpop.f32.mrb[64].mxu1  ;;  %v5839_v53 = vadd.f32 %v5838_v63, %v5837_v16  ;;  %v5840_v61 = vpop.f32.mrb[66].mxu0  ;;  %2246 = vst [vmem:[#allocation2 + $0xc] sm:$0x1] %v2245_v39 }
 0x18c   : > { %v5950_v52 = vpop.f32.mrb[65].mxu1  ;;  %v5841_v26 = vpop.f32.mrb[67].mxu0  ;;  %6186 = vmatpush3.bf16.msra.mxu0 %v6771_v42 }
 0x18d   : > { %v5951_v43 = vadd.f32 %v5950_v52, %v5949_v32  ;;  %v5952_v22 = vpop.f32.mrb[66].mxu1  ;;  %v1753_v49 = vadd.f32 %v5839_v53, %v7742_v38  ;;  %v5842_v57 = vadd.f32 %v5841_v26, %v5840_v61  ;;  %v6772_v32 = vld [vmem:[%s9496_s4 + $0xd8] sm:$0xff]   ;;  %v2253_v53 = vld [vmem:[#allocation2 + $0x30] sm:$0x1] }
 0x18e   : > { %v5953_v51 = vpop.f32.mrb[67].mxu1  ;;  %6187 = vmatprep.subr.bf16.mxu0 %v6772_v32  ;;  %v2254_v26 = vsel %vm7943_vm4, 0, %v2253_v53 }
 0x18f   : > { %v5954_v59 = vadd.f32 %v5953_v51, %v5952_v22  ;;  %v1756_v38 = vadd.f32 %v5842_v57, %v7748_v35  ;;  %v7961_v40 = vadd.f32 %v5951_v43, %v1753_v49  ;;  %v6773_v35 = vld [vmem:[%s9496_s4 + $0x98] sm:$0xff]   ;;  %2255 = vst [vmem:[#allocation2 + $0x30] sm:$0x1] %v2254_v26  ;;  %v6907_v49 = vmov 0  }
 0x190   : > { %6188 = vmatpush3.bf16.msra.mxu0 %v6773_v35  ;;  %2233 = vst [vmem:[#allocation2] sm:$0xf] %v6907_v49  ;;  %2234 = vst [vmem:[#allocation2 + $0x4] sm:$0xf] %v6907_v49 }
 0x191   : > { %v5843_v46 = vpop.f32.mrb[68].mxu0  ;;  %v7973_v43 = vadd.f32 %v5954_v59, %v1756_v38  ;;  %v2251_v59 = vsel %vm7943_vm4, 0, %v2250_v34  ;;  %2235 = vst [vmem:[#allocation2 + $0x8] sm:$0x1] %v6907_v49  ;;  %2237 = vst [vmem:[#allocation2 + $0xcc] sm:$0xf] %v6907_v49 }
 0x192   : > { %v5844_v22 = vpop.f32.mrb[69].mxu0  ;;  %2238 = vst [vmem:[#allocation2 + $0xd0] sm:$0xf] %v6907_v49  ;;  %2239 = vst [vmem:[#allocation2 + $0xd4] sm:$0x1] %v6907_v49 }
 0x193   : > { %v5955_v28 = vpop.f32.mrb[68].mxu1  ;;  %v5845_v16 = vadd.f32 %v5844_v22, %v5843_v46  ;;  %v5846_v51 = vpop.f32.mrb[70].mxu0  ;;  %2252 = vst [vmem:[#allocation2 + $0x24] sm:$0x1] %v2251_v59  ;;  %v2300_v22 = vld [vmem:[#allocation2 + $0x2c] sm:$0x1] }
 0x194   : > { %v5956_v47 = vpop.f32.mrb[69].mxu1  ;;  %v5847_v63 = vpop.f32.mrb[71].mxu0 }
 0x195   : > { %v5957_v36 = vadd.f32 %v5956_v47, %v5955_v28  ;;  %v5958_v52 = vpop.f32.mrb[70].mxu1  ;;  %v1761_v61 = vadd.f32 %v5845_v16, %v7759_v31  ;;  %v5848_v13 = vadd.f32 %v5847_v63, %v5846_v51  ;;  %v6774_v47 = vld [vmem:[%s9496_s4 + $0xe0] sm:$0xff]   ;;  %v2301_v51 = vsel %vm7954_vm6, 0, %v2300_v22  ;;  %v6779_v63 = vld [vmem:[%s9496_s4 + $0xa8] sm:$0xff]  }
 0x196   : > { %v5959_v10 = vpop.f32.mrb[71].mxu1  ;;  %6189 = vmatprep.subr.bf16.mxu0 %v6774_v47  ;;  %2302 = vst [vmem:[#allocation2 + $0x2c] sm:$0x1] %v2301_v51  ;;  %v6780_v47 = vld [vmem:[%s9496_s4 + $0xf0] sm:$0xff]  }
 0x197   : > { %v5960_v1 = vadd.f32 %v5959_v10, %v5958_v52  ;;  %v1764_v57 = vadd.f32 %v5848_v13, %v7766_v5  ;;  %v7981_v2 = vadd.f32 %v5957_v36, %v1761_v61  ;;  %v6776_v5 = vld [vmem:[%s9496_s4 + $0xa0] sm:$0xff]   ;;  %v2304_v10 = vsel %vm7954_vm6, 0, %v2303_v45  ;;  %v2256_v45 = vld [vmem:[#allocation2 + $0x3c] sm:$0x1] }
 0x198   : > { %6190 = vmatpush3.bf16.msra.mxu0 %v6776_v5  ;;  %2305 = vst [vmem:[#allocation2 + $0x38] sm:$0x1] %v2304_v10  ;;  %v8005_v13 = vld [vmem:[#allocation2] sm:$0xf]  ;;  %v8007_v26 = vld [vmem:[#allocation2 + $0x4] sm:$0xf] }
 0x199   : > { %v5849_v39 = vpop.f32.mrb[72].mxu0  ;;  %v7983_v38 = vadd.f32 %v5960_v1, %v1764_v57  ;;  %v6778_v1 = vld [vmem:[%s9496_s4 + $0xe8] sm:$0xff]   ;;  %v2932_v59 = vshrl.u32 %v8005_v13, 16  ;;  %v2935_v49 = vshll.u32 %v8005_v13, 16  ;;  %v6777_v10 = vld [vmem:[%s9496_s4 + $0x38] sm:$0xff]   ;;  %v2257_v22 = vsel %vm7943_vm4, 0, %v2256_v45 }
 0x19a   : > { %v5850_v44 = vpop.f32.mrb[73].mxu0  ;;  %6191 = vmatprep.subr.bf16.mxu0 %v6778_v1  ;;  %v2309_v1 = vld [vmem:[#allocation2 + $0x50] sm:$0x1]  ;;  %v2945_v51 = vshrl.u32 %v8007_v26, 16  ;;  %2258 = vst [vmem:[#allocation2 + $0x3c] sm:$0x1] %v2257_v22 }
 0x19b   : > { %v5961_v42 = vpop.f32.mrb[72].mxu1  ;;  %v5851_v32 = vadd.f32 %v5850_v44, %v5849_v39  ;;  %v5852_v36 = vpop.f32.mrb[74].mxu0  ;;  %v2934_v44 = vrot.slane %v2932_v59, 4  ;;  %v2937_v5 = vrot.slane %v2935_v49, 5 }
 0x19c   : > { %v5962_v31 = vpop.f32.mrb[73].mxu1  ;;  %v5853_v52 = vpop.f32.mrb[75].mxu0  ;;  %6192 = vmatpush3.bf16.msra.mxu0 %v6779_v63 }
 0x19d   : > { %v5963_v0 = vadd.f32 %v5962_v31, %v5961_v42  ;;  %v5964_v28 = vpop.f32.mrb[74].mxu1  ;;  %v1769_v35 = vadd.f32 %v5851_v32, %v7774_v6  ;;  %v5854_v46 = vadd.f32 %v5853_v52, %v5852_v36  ;;  %v6775_v52 = vld [vmem:[%s9496_s4 + $0x78] sm:$0xff]   ;;  %6193 = vmatprep.subr.bf16.mxu0 %v6780_v47 }
 0x19e   : > { %v5965_v17 = vpop.f32.mrb[75].mxu1  ;;  %6083 = vmatprep.subr.bf16.mxu1 %v6775_v52 }
 0x19f   : > { %v5966_v9 = vadd.f32 %v5965_v17, %v5964_v28  ;;  %v1772_v6 = vadd.f32 %v5854_v46, %v7779_v54  ;;  %v8003_v61 = vadd.f32 %v5963_v0, %v1769_v35  ;;  %v2941_v54 = vshll.u32 %v8007_v26, 16  ;;  %v2259_v17 = vld [vmem:[#allocation2 + $0x48] sm:$0x1]  ;;  %v6781_v35 = vld [vmem:[%s9496_s4 + $0xb0] sm:$0xff]   ;;  %6084 = vmatpush3.bf16.msra.mxu1 %v6777_v10 }
 0x1a0   : > { %6194 = vmatpush3.bf16.msra.mxu0 %v6781_v35 }
 0x1a1   : > { %v5855_v57 = vpop.f32.mrb[76].mxu0  ;;  %v8011_v28 = vadd.f32 %v5966_v9, %v1772_v6  ;;  %v2260_v9 = vsel %vm7943_vm4, 0, %v2259_v17  ;;  %v2943_v59 = vrot.slane %v2941_v54, 5  ;;  %v6783_v54 = vld [vmem:[%s9496_s4 + $0xb8] sm:$0xff]  }
 0x1a2   : > { %v5856_v0 = vpop.f32.mrb[77].mxu0  ;;  %2261 = vst [vmem:[#allocation2 + $0x48] sm:$0x1] %v2260_v9 }
 0x1a3   : > { %v5967_v16 = vpop.f32.mrb[76].mxu1  ;;  %v5857_v32 = vadd.f32 %v5856_v0, %v5855_v57  ;;  %v5858_v36 = vpop.f32.mrb[78].mxu0  ;;  %v2306_v57 = vld [vmem:[#allocation2 + $0x44] sm:$0x1] }
 0x1a4   : > { %v5968_v53 = vpop.f32.mrb[77].mxu1  ;;  %v5859_v46 = vpop.f32.mrb[79].mxu0  ;;  %v2307_v47 = vsel %vm7954_vm6, 0, %v2306_v57 }
 0x1a5   : > { %v5969_v34 = vadd.f32 %v5968_v53, %v5967_v16  ;;  %v5970_v42 = vpop.f32.mrb[78].mxu1  ;;  %v2938_v16 = vor.u32 %v2937_v5, %v2934_v44  ;;  %v1777_v63 = vadd.f32 %v5857_v32, %v7789_v19  ;;  %v5860_v6 = vadd.f32 %v5859_v46, %v5858_v36  ;;  %2308 = vst [vmem:[#allocation2 + $0x44] sm:$0x1] %v2307_v47 }
 0x1a6   : > { %v5971_v31 = vpop.f32.mrb[79].mxu1  ;;  %v2310_v53 = vsel %vm7954_vm6, 0, %v2309_v1  ;;  %v2947_v36 = vrot.slane %v2945_v51, 4 }
 0x1a7   : > { %v5972_v39 = vadd.f32 %v5971_v31, %v5970_v42  ;;  %v8034_v42 = vld [vmem:[#allocation2 + $0x8] sm:$0x1]  ;;  %2311 = vst [vmem:[#allocation2 + $0x50] sm:$0x1] %v2310_v53  ;;  %v6782_v31 = vld [vmem:[%s9496_s4 + $0xf8] sm:$0xff]   ;;  %v1780_v19 = vadd.f32 %v5860_v6, %v7797_v27  ;;  %v8040_v17 = vadd.f32 %v5969_v34, %v1777_v63  ;;  %v2939_v32 = vrot.slane %v2938_v16, 4 }
 0x1a8   : > { %6195 = vmatprep.subr.bf16.mxu0 %v6782_v31  ;;  %v2951_v52 = vshll.u32 %v8034_v42, 16  ;;  %v2948_v10 = vor.u32 %v2947_v36, %v2943_v59  ;;  %v2265_v63 = vld [vmem:[#allocation2 + $0x60] sm:$0x1]  ;;  %v2262_v53 = vld [vmem:[#allocation2 + $0x54] sm:$0x1]  ;;  %v5432_v36 = vcombine.low %v8005_v13, %v8007_v26 }
 0x1a9   : > { %v5861_v27 = vpop.f32.mrb[80].mxu0  ;;  %v8048_v34 = vadd.f32 %v5972_v39, %v1780_v19  ;;  %6196 = vmatpush3.bf16.msra.mxu0 %v6783_v54  ;;  %v2266_v6 = vsel %vm7943_vm4, 0, %v2265_v63  ;;  %v2944_v39 = vsel %vm8051_vm9, %v2939_v32, %v2943_v59  ;;  %v2263_v31 = vsel %vm7943_vm4, 0, %v2262_v53  ;;  %v2315_v19 = vld [vmem:[#allocation2 + $0x68] sm:$0x1] }
 0x1aa   : > { %v5862_v35 = vpop.f32.mrb[81].mxu0  ;;  %v2953_v16 = vrot.slane %v2951_v52, 5  ;;  %2267 = vst [vmem:[#allocation2 + $0x60] sm:$0x1] %v2266_v6  ;;  %2264 = vst [vmem:[#allocation2 + $0x54] sm:$0x1] %v2263_v31 }
 0x1ab   : > { %v5973_v49 = vpop.f32.mrb[80].mxu1  ;;  %v5863_v22 = vadd.f32 %v5862_v35, %v5861_v27  ;;  %v5864_v1 = vpop.f32.mrb[82].mxu0  ;;  %v2316_v54 = vsel %vm7954_vm6, 0, %v2315_v19 }
 0x1ac   : > { %v5974_v0 = vpop.f32.mrb[81].mxu1  ;;  %v5865_v51 = vpop.f32.mrb[83].mxu0  ;;  %2317 = vst [vmem:[#allocation2 + $0x68] sm:$0x1] %v2316_v54 }
 0x1ad   : > { %v5975_v44 = vadd.f32 %v5974_v0, %v5973_v49  ;;  %v5976_v5 = vpop.f32.mrb[82].mxu1  ;;  %v1785_v49 = vadd.f32 %v5863_v22, %v7804_v56  ;;  %v5866_v57 = vadd.f32 %v5865_v51, %v5864_v1  ;;  %v2949_v0 = vrot.slane %v2948_v10, 4 }
 0x1ae   : > { %v5977_v9 = vpop.f32.mrb[83].mxu1  ;;  %v3368_v51 = vrot.slane %v8007_v26, 5 }
 0x1af   : > { %v5978_v46 = vadd.f32 %v5977_v9, %v5976_v5  ;;  %v2312_v5 = vld [vmem:[#allocation2 + $0x5c] sm:$0x1]  ;;  %v1788_v59 = vadd.f32 %v5866_v57, %v7806_v48  ;;  %v8067_v56 = vadd.f32 %v5975_v44, %v1785_v49  ;;  %v2954_v52 = vsel %vm8051_vm9, %v2949_v0, %v2953_v16 }
 0x1b0   : > { %v2313_v27 = vsel %vm7954_vm6, 0, %v2312_v5  ;;  %v5448_v10 = vcombine.low %v2944_v39, %v2954_v52  ;;  %v3371_v48 = vrot.slane %v8034_v42, 5  ;;  %v5414_v16 = vrot.slane %v8005_v13, 9  ;;  %v2271_v52 = vld [vmem:[#allocation2 + $0x78] sm:$0x1] }
 0x1b1   : > { %2314 = vst [vmem:[#allocation2 + $0x5c] sm:$0x1] %v2313_v27  ;;  %v5867_v22 = vpop.f32.mrb[84].mxu0  ;;  %v8073_v63 = vadd.f32 %v5978_v46, %v1788_v59  ;;  %v3370_v57 = vrot.slane %v3368_v51, 4  ;;  %v6836_v44 = vld [vmem:[%s9496_s4 + $0x218] sm:$0xff]  }
 0x1b2   : > { %v5868_v6 = vpop.f32.mrb[85].mxu0  ;;  %4377 = vmatprep.mubr.bf16.mxu1 %v5448_v10  ;;  %v8084_v46 = vsel %vm8076_vm12, %v5414_v16, %v3368_v51 }
 0x1b3   : > { %v5979_v47 = vpop.f32.mrb[84].mxu1  ;;  %v5869_v39 = vadd.f32 %v5868_v6, %v5867_v22  ;;  %v5870_v49 = vpop.f32.mrb[86].mxu0  ;;  %4378 = vmatmul.mubr.bf16.vlgmr.msra.gmra.mrb[128].mxu1 %v5432_v36  ;;  %v8089_v13 = vsel %vm8076_vm12, %v3370_v57, %v3371_v48 }
 0x1b4   : > { %v5980_v32 = vpop.f32.mrb[85].mxu1  ;;  %v5871_v42 = vpop.f32.mrb[87].mxu0  ;;  %v5464_v0 = vcombine.low %v8084_v46, %v8089_v13 }
 0x1b5   : > { %v5981_v9 = vadd.f32 %v5980_v32, %v5979_v47  ;;  %v5982_v35 = vpop.f32.mrb[86].mxu1  ;;  %v1793_v31 = vadd.f32 %v5869_v39, %v7812_v23  ;;  %v5872_v19 = vadd.f32 %v5871_v42, %v5870_v49  ;;  %v6787_v23 = vld [vmem:[%s9496_s4 + $0x140] sm:$0xff]  }
 0x1b6   : > { %v5983_v1 = vpop.f32.mrb[87].mxu1  ;;  %v6788_v32 = vld [vmem:[%s9496_s4 + $0x100] sm:$0xff]   ;;  %6293 = vmatprep.subr.bf16.mxu1 %v6787_v23 }
 0x1b7   : > { %v5984_v53 = vadd.f32 %v5983_v1, %v5982_v35  ;;  %v1796_v47 = vadd.f32 %v5872_v19, %v7820_v30  ;;  %v8094_v5 = vadd.f32 %v5981_v9, %v1793_v31  ;;  %v2272_v30 = vsel %vm7943_vm4, 0, %v2271_v52  ;;  %6294 = vmatpush3.bf16.msra.mxu1 %v6788_v32 }
 0x1b8   : > { %2273 = vst [vmem:[#allocation2 + $0x78] sm:$0x1] %v2272_v30 }
 0x1b9   : > { %v5873_v27 = vpop.f32.mrb[88].mxu0  ;;  %v8102_v10 = vadd.f32 %v5984_v53, %v1796_v47 }
 0x1ba   : > { %v5874_v9 = vpop.f32.mrb[89].mxu0 }
 0x1bb   : > { %v5985_v26 = vpop.f32.mrb[88].mxu1  ;;  %v5875_v1 = vadd.f32 %v5874_v9, %v5873_v27  ;;  %v5876_v48 = vpop.f32.mrb[90].mxu0 }
 0x1bc   : > { %v5986_v54 = vpop.f32.mrb[89].mxu1  ;;  %v5877_v16 = vpop.f32.mrb[91].mxu0 }
 0x1bd   : > { %v5987_v36 = vadd.f32 %v5986_v54, %v5985_v26  ;;  %v5988_v59 = vpop.f32.mrb[90].mxu1  ;;  %v1801_v51 = vadd.f32 %v5875_v1, %v7826_v12  ;;  %v5878_v6 = vadd.f32 %v5877_v16, %v5876_v48  ;;  %v2268_v54 = vld [vmem:[#allocation2 + $0x6c] sm:$0x1]  ;;  %v2321_v12 = vld [vmem:[#allocation2 + $0x80] sm:$0x1] }
 0x1be   : > { %v5989_v35 = vpop.f32.mrb[91].mxu1  ;;  %v2269_v32 = vsel %vm7943_vm4, 0, %v2268_v54 }
 0x1bf   : > { %v5990_v22 = vadd.f32 %v5989_v35, %v5988_v59  ;;  %v1804_v49 = vadd.f32 %v5878_v6, %v7828_v20  ;;  %v8108_v53 = vadd.f32 %v5987_v36, %v1801_v51  ;;  %2270 = vst [vmem:[#allocation2 + $0x6c] sm:$0x1] %v2269_v32  ;;  %v2322_v20 = vsel %vm7954_vm6, 0, %v2321_v12  ;;  %v2318_v36 = vld [vmem:[#allocation2 + $0x74] sm:$0x1] }
 0x1c0   : > { %2323 = vst [vmem:[#allocation2 + $0x80] sm:$0x1] %v2322_v20  ;;  %v2319_v30 = vsel %vm7954_vm6, 0, %v2318_v36 }
 0x1c1   : > { %v5879_v19 = vpop.f32.mrb[92].mxu0  ;;  %v8110_v47 = vadd.f32 %v5990_v22, %v1804_v49  ;;  %2320 = vst [vmem:[#allocation2 + $0x74] sm:$0x1] %v2319_v30 }
 0x1c2   : > { %v5880_v59 = vpop.f32.mrb[93].mxu0 }
 0x1c3   : > { %v5991_v39 = vpop.f32.mrb[92].mxu1  ;;  %v5881_v52 = vadd.f32 %v5880_v59, %v5879_v19  ;;  %v5882_v27 = vpop.f32.mrb[94].mxu0 }
 0x1c4   : > { %v5992_v57 = vpop.f32.mrb[93].mxu1  ;;  %v5883_v35 = vpop.f32.mrb[95].mxu0 }
 0x1c5   : > { %v5993_v42 = vadd.f32 %v5992_v57, %v5991_v39  ;;  %v5994_v31 = vpop.f32.mrb[94].mxu1  ;;  %v1809_v9 = vadd.f32 %v5881_v52, %v7834_v41  ;;  %v5884_v22 = vadd.f32 %v5883_v35, %v5882_v27 }
 0x1c6   : > { %v5995_v26 = vpop.f32.mrb[95].mxu1 }
 0x1c7   : > { %v5996_v23 = vadd.f32 %v5995_v26, %v5994_v31  ;;  %v1812_v48 = vadd.f32 %v5884_v22, %v7842_v21  ;;  %v8120_v51 = vadd.f32 %v5993_v42, %v1809_v9  ;;  %v2277_v9 = vld [vmem:[#allocation2 + $0x90] sm:$0x1] }
 0x1c9   : > { %v5885_v49 = vpop.f32.mrb[96].mxu0  ;;  %v8122_v31 = vadd.f32 %v5996_v23, %v1812_v48  ;;  %v2278_v48 = vsel %vm7943_vm4, 0, %v2277_v9 }
 0x1ca   : > { %v5886_v19 = vpop.f32.mrb[97].mxu0  ;;  %2279 = vst [vmem:[#allocation2 + $0x90] sm:$0x1] %v2278_v48 }
 0x1cb   : > { %v5997_v1 = vpop.f32.mrb[96].mxu1  ;;  %v5887_v54 = vadd.f32 %v5886_v19, %v5885_v49  ;;  %v5888_v59 = vpop.f32.mrb[98].mxu0  ;;  %v2327_v49 = vld [vmem:[#allocation2 + $0x98] sm:$0x1] }
 0x1cc   : > { %v5998_v16 = vpop.f32.mrb[97].mxu1  ;;  %v5889_v32 = vpop.f32.mrb[99].mxu0 }
 0x1cd   : > { %v5999_v6 = vadd.f32 %v5998_v16, %v5997_v1  ;;  %v6000_v39 = vpop.f32.mrb[98].mxu1  ;;  %v1817_v41 = vadd.f32 %v5887_v54, %v7847_v7  ;;  %v5890_v12 = vadd.f32 %v5889_v32, %v5888_v59  ;;  %v2324_v54 = vld [vmem:[#allocation2 + $0x8c] sm:$0x1] }
 0x1ce   : > { %v6001_v57 = vpop.f32.mrb[99].mxu1  ;;  %v2325_v32 = vsel %vm7954_vm6, 0, %v2324_v54 }
 0x1cf   : > { %v6002_v26 = vadd.f32 %v6001_v57, %v6000_v39  ;;  %v1820_v21 = vadd.f32 %v5890_v12, %v7850_v3  ;;  %v8126_v42 = vadd.f32 %v5999_v6, %v1817_v41  ;;  %v2274_v3 = vld [vmem:[#allocation2 + $0x84] sm:$0x1]  ;;  %2326 = vst [vmem:[#allocation2 + $0x8c] sm:$0x1] %v2325_v32  ;;  %v2283_v32 = vld [vmem:[#allocation2 + $0xa8] sm:$0x1] }
 0x1d0   : > { %v2275_v19 = vsel %vm7943_vm4, 0, %v2274_v3 }
 0x1d1   : > { %v5891_v35 = vpop.f32.mrb[100].mxu0  ;;  %v8128_v23 = vadd.f32 %v6002_v26, %v1820_v21  ;;  %v2328_v26 = vsel %vm7954_vm6, 0, %v2327_v49  ;;  %2276 = vst [vmem:[#allocation2 + $0x84] sm:$0x1] %v2275_v19 }
 0x1d2   : > { %v5892_v22 = vpop.f32.mrb[101].mxu0  ;;  %2329 = vst [vmem:[#allocation2 + $0x98] sm:$0x1] %v2328_v26 }
 0x1d3   : > { %v6003_v52 = vpop.f32.mrb[100].mxu1  ;;  %v5893_v7 = vadd.f32 %v5892_v22, %v5891_v35  ;;  %v5894_v16 = vpop.f32.mrb[102].mxu0 }
 0x1d4   : > { %v6004_v27 = vpop.f32.mrb[101].mxu1  ;;  %v5895_v39 = vpop.f32.mrb[103].mxu0 }
 0x1d5   : > { %v6005_v20 = vadd.f32 %v6004_v27, %v6003_v52  ;;  %v6006_v36 = vpop.f32.mrb[102].mxu1  ;;  %v1825_v6 = vadd.f32 %v5893_v7, %v7855_v18  ;;  %v5896_v57 = vadd.f32 %v5895_v39, %v5894_v16  ;;  %v6791_v27 = vld [vmem:[%s9496_s4 + $0x148] sm:$0xff]  }
 0x1d6   : > { %v6007_v30 = vpop.f32.mrb[103].mxu1  ;;  %6295 = vmatprep.subr.bf16.mxu1 %v6791_v27  ;;  %v2280_v27 = vld [vmem:[#allocation2 + $0x9c] sm:$0x1] }
 0x1d7   : > { %v6008_v1 = vadd.f32 %v6007_v30, %v6006_v36  ;;  %v1828_v41 = vadd.f32 %v5896_v57, %v7864_v55  ;;  %v8140_v52 = vadd.f32 %v6005_v20, %v1825_v6 }
 0x1d9   : > { %v5897_v36 = vpop.f32.mrb[104].mxu0  ;;  %v8145_v30 = vadd.f32 %v6008_v1, %v1828_v41 }
 0x1da   : > { %v5898_v9 = vpop.f32.mrb[105].mxu0 }
 0x1db   : > { %v6009_v59 = vpop.f32.mrb[104].mxu1  ;;  %v5899_v48 = vadd.f32 %v5898_v9, %v5897_v36  ;;  %v5900_v7 = vpop.f32.mrb[106].mxu0  ;;  %v2333_v36 = vld [vmem:[#allocation2 + $0xb0] sm:$0x1] }
 0x1dc   : > { %v6010_v12 = vpop.f32.mrb[105].mxu1  ;;  %v5901_v55 = vpop.f32.mrb[107].mxu0 }
 0x1dd   : > { %v6011_v18 = vadd.f32 %v6010_v12, %v6009_v59  ;;  %v6012_v21 = vpop.f32.mrb[106].mxu1  ;;  %v1833_v20 = vadd.f32 %v5899_v48, %v7869_v60  ;;  %v5902_v16 = vadd.f32 %v5901_v55, %v5900_v7  ;;  %v6792_v59 = vld [vmem:[%s9496_s4 + $0x108] sm:$0xff]   ;;  %v2284_v12 = vsel %vm7943_vm4, 0, %v2283_v32  ;;  %v2330_v7 = vld [vmem:[#allocation2 + $0xa4] sm:$0x1] }
 0x1de   : > { %v6013_v35 = vpop.f32.mrb[107].mxu1  ;;  %6296 = vmatpush3.bf16.msra.mxu1 %v6792_v59  ;;  %2285 = vst [vmem:[#allocation2 + $0xa8] sm:$0x1] %v2284_v12  ;;  %v2334_v48 = vsel %vm7954_vm6, 0, %v2333_v36 }
 0x1df   : > { %v6014_v22 = vadd.f32 %v6013_v35, %v6012_v21  ;;  %v1836_v3 = vadd.f32 %v5902_v16, %v7872_v37  ;;  %v8149_v6 = vadd.f32 %v6011_v18, %v1833_v20  ;;  %2335 = vst [vmem:[#allocation2 + $0xb0] sm:$0x1] %v2334_v48  ;;  %v2331_v20 = vsel %vm7954_vm6, 0, %v2330_v7  ;;  %v2289_v7 = vld [vmem:[#allocation2 + $0xc0] sm:$0x1] }
 0x1e0   : > { %2332 = vst [vmem:[#allocation2 + $0xa4] sm:$0x1] %v2331_v20 }
 0x1e1   : > { %v5903_v26 = vpop.f32.mrb[108].mxu0  ;;  %v8151_v54 = vadd.f32 %v6014_v22, %v1836_v3  ;;  %v2281_v22 = vsel %vm7943_vm4, 0, %v2280_v27 }
 0x1e2   : > { %v5904_v41 = vpop.f32.mrb[109].mxu0  ;;  %2282 = vst [vmem:[#allocation2 + $0x9c] sm:$0x1] %v2281_v22 }
 0x1e3   : > { %v6015_v39 = vpop.f32.mrb[108].mxu1  ;;  %v5905_v37 = vadd.f32 %v5904_v41, %v5903_v26  ;;  %v5906_v21 = vpop.f32.mrb[110].mxu0 }
 0x1e4   : > { %v6016_v49 = vpop.f32.mrb[109].mxu1  ;;  %v5907_v18 = vpop.f32.mrb[111].mxu0 }
 0x1e5   : > { %v6017_v57 = vadd.f32 %v6016_v49, %v6015_v39  ;;  %v6018_v19 = vpop.f32.mrb[110].mxu1  ;;  %v1841_v35 = vadd.f32 %v5905_v37, %v7877_v4  ;;  %v5908_v9 = vadd.f32 %v5907_v18, %v5906_v21 }
 0x1e6   : > { %v6019_v1 = vpop.f32.mrb[111].mxu1 }
 0x1e7   : > { %v6020_v60 = vadd.f32 %v6019_v1, %v6018_v19  ;;  %v1844_v16 = vadd.f32 %v5908_v9, %v7888_v24  ;;  %v8166_v3 = vadd.f32 %v6017_v57, %v1841_v35 }
 0x1e9   : > { %v5909_v19 = vpop.f32.mrb[112].mxu0  ;;  %v8168_v1 = vadd.f32 %v6020_v60, %v1844_v16  ;;  %v2290_v16 = vsel %vm7943_vm4, 0, %v2289_v7 }
 0x1ea   : > { %v5910_v59 = vpop.f32.mrb[113].mxu0  ;;  %2291 = vst [vmem:[#allocation2 + $0xc0] sm:$0x1] %v2290_v16 }
 0x1eb   : > { %v6021_v55 = vpop.f32.mrb[112].mxu1  ;;  %v5911_v41 = vadd.f32 %v5910_v59, %v5909_v19  ;;  %v5912_v12 = vpop.f32.mrb[114].mxu0  ;;  %v2339_v19 = vld [vmem:[#allocation2 + $0xc8] sm:$0x1] }
 0x1ec   : > { %v6022_v39 = vpop.f32.mrb[113].mxu1  ;;  %v5913_v37 = vpop.f32.mrb[115].mxu0 }
 0x1ed   : > { %v6023_v4 = vadd.f32 %v6022_v39, %v6021_v55  ;;  %v6024_v49 = vpop.f32.mrb[114].mxu1  ;;  %v1849_v21 = vadd.f32 %v5911_v41, %v7893_v58  ;;  %v5914_v18 = vadd.f32 %v5913_v37, %v5912_v12  ;;  %v2336_v41 = vld [vmem:[#allocation2 + $0xbc] sm:$0x1] }
 0x1ee   : > { %v6025_v26 = vpop.f32.mrb[115].mxu1  ;;  %v2337_v37 = vsel %vm7954_vm6, 0, %v2336_v41  ;;  %v6796_v41 = vld [vmem:[%s9496_s4 + $0x110] sm:$0xff]  }
 0x1ef   : > { %v6026_v32 = vadd.f32 %v6025_v26, %v6024_v49  ;;  %v1852_v24 = vadd.f32 %v5914_v18, %v7895_v50  ;;  %v8172_v36 = vadd.f32 %v6023_v4, %v1849_v21  ;;  %v2286_v50 = vld [vmem:[#allocation2 + $0xb4] sm:$0x1]  ;;  %2338 = vst [vmem:[#allocation2 + $0xbc] sm:$0x1] %v2337_v37 }
 0x1f0   : > { %v2287_v59 = vsel %vm7943_vm4, 0, %v2286_v50 }
 0x1f1   : > { %v5915_v22 = vpop.f32.mrb[116].mxu0  ;;  %v8174_v60 = vadd.f32 %v6026_v32, %v1852_v24  ;;  %v2340_v32 = vsel %vm7954_vm6, 0, %v2339_v19  ;;  %2288 = vst [vmem:[#allocation2 + $0xb4] sm:$0x1] %v2287_v59 }
 0x1f2   : > { %v5916_v55 = vpop.f32.mrb[117].mxu0  ;;  %2341 = vst [vmem:[#allocation2 + $0xc8] sm:$0x1] %v2340_v32 }
 0x1f3   : > { %v6027_v27 = vpop.f32.mrb[116].mxu1  ;;  %v5917_v58 = vadd.f32 %v5916_v55, %v5915_v22  ;;  %v5918_v39 = vpop.f32.mrb[118].mxu0 }
 0x1f4   : > { %v6028_v57 = vpop.f32.mrb[117].mxu1  ;;  %v5919_v49 = vpop.f32.mrb[119].mxu0 }
 0x1f5   : > { %v6029_v35 = vadd.f32 %v6028_v57, %v6027_v27  ;;  %v6030_v9 = vpop.f32.mrb[118].mxu1  ;;  %v1857_v4 = vadd.f32 %v5917_v58, %v7899_v62  ;;  %v5920_v26 = vadd.f32 %v5919_v49, %v5918_v39  ;;  %v6795_v62 = vld [vmem:[%s9496_s4 + $0x150] sm:$0xff]  }
 0x1f6   : > { %v6031_v48 = vpop.f32.mrb[119].mxu1  ;;  %6297 = vmatprep.subr.bf16.mxu1 %v6795_v62 }
 0x1f7   : > { %v6032_v20 = vadd.f32 %v6031_v48, %v6030_v9  ;;  %v1860_v21 = vadd.f32 %v5920_v26, %v7907_v14  ;;  %v8186_v27 = vadd.f32 %v6029_v35, %v1857_v4  ;;  %6298 = vmatpush3.bf16.msra.mxu1 %v6796_v41 }
 0x1f9   : > { %v5921_v9 = vpop.f32.mrb[120].mxu0  ;;  %v8191_v48 = vadd.f32 %v6032_v20, %v1860_v21 }
 0x1fa   : > { %v5922_v7 = vpop.f32.mrb[121].mxu0 }
 0x1fb   : > { %v6033_v12 = vpop.f32.mrb[120].mxu1  ;;  %v5923_v55 = vadd.f32 %v5922_v7, %v5921_v9  ;;  %v5924_v16 = vpop.f32.mrb[122].mxu0 }
 0x1fc   : > { %v6034_v18 = vpop.f32.mrb[121].mxu1  ;;  %v5925_v14 = vpop.f32.mrb[123].mxu0 }
 0x1fd   : > { %v6035_v24 = vadd.f32 %v6034_v18, %v6033_v12  ;;  %v6036_v57 = vpop.f32.mrb[122].mxu1  ;;  %v1865_v35 = vadd.f32 %v5923_v55, %v7911_v29  ;;  %v5926_v58 = vadd.f32 %v5925_v14, %v5924_v16  ;;  %v6799_v55 = vld [vmem:[%s9496_s4 + $0x158] sm:$0xff]  }
 0x1fe   : > { %v6037_v22 = vpop.f32.mrb[123].mxu1  ;;  %6299 = vmatprep.subr.bf16.mxu1 %v6799_v55 }
 0x1ff   : > { %v6038_v8 = vadd.f32 %v6037_v22, %v6036_v57  ;;  %v1868_v49 = vadd.f32 %v5926_v58, %v7913_v33  ;;  %v8195_v19 = vadd.f32 %v6035_v24, %v1865_v35 }
 0x201   : > { %v5927_v59 = vpop.f32.mrb[124].mxu0  ;;  %v8197_v32 = vadd.f32 %v6038_v8, %v1868_v49 }
 0x202   : > { %v5928_v12 = vpop.f32.mrb[125].mxu0 }
 0x203   : > { %v6039_v39 = vpop.f32.mrb[124].mxu1  ;;  %v5929_v29 = vadd.f32 %v5928_v12, %v5927_v59  ;;  %v5930_v21 = vpop.f32.mrb[126].mxu0 }
 0x204   : > { %v6040_v50 = vpop.f32.mrb[125].mxu1  ;;  %v5931_v18 = vpop.f32.mrb[127].mxu0 }
 0x205   : > { %v6041_v4 = vadd.f32 %v6040_v50, %v6039_v39  ;;  %v6042_v26 = vpop.f32.mrb[126].mxu1  ;;  %v1873_v33 = vadd.f32 %v5929_v29, %v7923_v11  ;;  %v5932_v62 = vadd.f32 %v5931_v18, %v5930_v21  ;;  %v2769_v21 = vld [vmem:[#allocation2 + $0x18] sm:$0xf] }
 0x206   : > { %v6043_v20 = vpop.f32.mrb[127].mxu1 }
 0x207   : > { %v6044_v37 = vadd.f32 %v6043_v20, %v6042_v26  ;;  %v1876_v24 = vadd.f32 %v5932_v62, %v7937_v25  ;;  %v8204_v57 = vadd.f32 %v6041_v4, %v1873_v33  ;;  %v6800_v25 = vld [vmem:[%s9496_s4 + $0x118] sm:$0xff]  }
 0x208   : > { %6300 = vmatpush3.bf16.msra.mxu1 %v6800_v25 }
 0x209   : > { %v6559_v9 = vpop.f32.mrb[128].mxu0  ;;  %v8206_v22 = vadd.f32 %v6044_v37, %v1876_v24 }
 0x20a   : > { %v2083_v7 = vadd.f32 %v6559_v9, %v7981_v2  ;;  %v2074_v8 = vpop.f32.mrb[129].mxu0 }
 0x20b   : > { %v2075_v16 = vadd.f32 %v2074_v8, %v7961_v40  ;;  %v6560_v14 = vpop.f32.mrb[130].mxu0 }
 0x20c   : > { %v2203_v35 = vmax.f32 %v2083_v7, 0.0  ;;  %v2086_v11 = vadd.f32 %v6560_v14, %v7983_v38  ;;  %v2077_v58 = vpop.f32.mrb[131].mxu0  ;;  %v6802_v14 = vld [vmem:[%s9496_s4 + $0x1c0] sm:$0xff]  }
 0x20d   : > { %v2201_v39 = vmax.f32 %v2075_v16, 0.0  ;;  %v2078_v2 = vadd.f32 %v2077_v58, %v7973_v43  ;;  %v2762_v58 = vld [vmem:[#allocation2 + $0xc] sm:$0xf]  ;;  %6405 = vmatprep.subr.bf16.mxu0 %v6802_v14 }
 0x20e   : > { %v5566_v49 = vpack.c.bf16 %v2203_v35, %v2203_v35  ;;  %v2204_v50 = vmax.f32 %v2086_v11, 0.0 }
 0x20f   : > { %v5564_v4 = vpack.c.bf16 %v2201_v39, %v2201_v39  ;;  %v2202_v26 = vmax.f32 %v2078_v2, 0.0 }
 0x210   : > { %v2458_v59 = vshrl.u32 %v5566_v49, 16  ;;  %v5567_v40 = vpack.c.bf16 %v2204_v50, %v2204_v50  ;;  %v2461_v20 = vshll.u32 %v5566_v49, 16 }
 0x211   : > { %v2441_v38 = vshrl.u32 %v5564_v4, 16  ;;  %v2444_v41 = vshll.u32 %v5564_v4, 16  ;;  %v5565_v12 = vpack.c.bf16 %v2202_v26, %v2202_v26  ;;  %v6563_v37 = vpop.f32.mrb[132].mxu0 }
 0x212   : > { %v2460_v29 = vrot.slane %v2458_v59, 7  ;;  %v2466_v18 = vshrl.u32 %v5567_v40, 16  ;;  %v2469_v33 = vshll.u32 %v5567_v40, 16  ;;  %v2099_v43 = vadd.f32 %v6563_v37, %v8040_v17  ;;  %v2090_v62 = vpop.f32.mrb[133].mxu0 }
 0x213   : > { %v2443_v9 = vrot.slane %v2441_v38, 7  ;;  %v2449_v7 = vshrl.u32 %v5565_v12, 16  ;;  %v2452_v8 = vshll.u32 %v5565_v12, 16  ;;  %v2091_v55 = vadd.f32 %v2090_v62, %v8003_v61  ;;  %v6564_v16 = vpop.f32.mrb[134].mxu0  ;;  %v2773_v61 = vld [vmem:[#allocation2 + $0x20] sm:$0x1] }
 0x214   : > { %v2463_v35 = vor.u32 %v2461_v20, %v2460_v29  ;;  %v2464_v11 = vrot.slane %v2460_v29, 4  ;;  %v2468_v17 = vrot.slane %v2466_v18, 7  ;;  %v2207_v25 = vmax.f32 %v2099_v43, 0.0  ;;  %v2093_v39 = vpop.f32.mrb[135].mxu0  ;;  %v2766_v38 = vld [vmem:[#allocation2 + $0x14] sm:$0x1] }
 0x215   : > { %v2446_v2 = vor.u32 %v2444_v41, %v2443_v9  ;;  %v2447_v49 = vrot.slane %v2443_v9, 4  ;;  %v2451_v4 = vrot.slane %v2449_v7, 7  ;;  %v2205_v26 = vmax.f32 %v2091_v55, 0.0 }
 0x216   : > { %v2770_v59 = vsel %vm8220_vm15, %v2463_v35, %v2769_v21  ;;  %v2471_v40 = vor.u32 %v2469_v33, %v2468_v17  ;;  %v2473_v20 = vrot.slane %v2468_v17, 4  ;;  %v5570_v12 = vpack.c.bf16 %v2207_v25, %v2207_v25  ;;  %v6805_v25 = vld [vmem:[%s9496_s4 + $0x160] sm:$0xff]  }
 0x217   : > { %2771 = vst [vmem:[#allocation2 + $0x18] sm:$0xf] %v2770_v59  ;;  %v2763_v41 = vsel %vm8220_vm15, %v2446_v2, %v2762_v58  ;;  %v2454_v37 = vor.u32 %v2452_v8, %v2451_v4  ;;  %v2456_v29 = vrot.slane %v2451_v4, 4  ;;  %v5568_v18 = vpack.c.bf16 %v2205_v26, %v2205_v26  ;;  %v2783_v2 = vld [vmem:[#allocation2 + $0x30] sm:$0xf]  ;;  %v6806_v59 = vld [vmem:[%s9496_s4 + $0x120] sm:$0xff]   ;;  %6301 = vmatprep.subr.bf16.mxu1 %v6805_v25 }
 0x218   : > { %2764 = vst [vmem:[#allocation2 + $0xc] sm:$0xf] %v2763_v41  ;;  %v2472_v43 = vsel %vm8230_vm0, %v2464_v11, %v2471_v40  ;;  %v2774_v62 = vsel %vm7943_vm4, %v2473_v20, %v2773_v61  ;;  %v2492_v9 = vshrl.u32 %v5570_v12, 16  ;;  %v2495_v7 = vshll.u32 %v5570_v12, 16  ;;  %6302 = vmatpush3.bf16.msra.mxu1 %v6806_v59 }
 0x219   : > { %2772 = vst [vmem:[#allocation2 + $0x1c] sm:$0xf] %v2472_v43  ;;  %2775 = vst [vmem:[#allocation2 + $0x20] sm:$0x1] %v2774_v62  ;;  %v2455_v21 = vsel %vm8230_vm0, %v2447_v49, %v2454_v37  ;;  %v2767_v33 = vsel %vm7943_vm4, %v2456_v29, %v2766_v38  ;;  %v2475_v8 = vshrl.u32 %v5568_v18, 16  ;;  %v6567_v55 = vpop.f32.mrb[136].mxu0  ;;  %v2102_v35 = vadd.f32 %v6564_v16, %v8048_v34 }
 0x21a   : > { %2765 = vst [vmem:[#allocation2 + $0x10] sm:$0xf] %v2455_v21  ;;  %2768 = vst [vmem:[#allocation2 + $0x14] sm:$0x1] %v2767_v33  ;;  %v8246_v14 = vrot.slane %v2492_v9, 7  ;;  %v2094_v11 = vadd.f32 %v2093_v39, %v8011_v28  ;;  %v2115_v58 = vadd.f32 %v6567_v55, %v8094_v5  ;;  %v2106_v17 = vpop.f32.mrb[137].mxu0 }
 0x21b   : > { %v2477_v49 = vrot.slane %v2475_v8, 7  ;;  %v2478_v61 = vshll.u32 %v5568_v18, 16  ;;  %v2107_v4 = vadd.f32 %v2106_v17, %v8067_v56  ;;  %v6568_v26 = vpop.f32.mrb[138].mxu0  ;;  %v2776_v5 = vld [vmem:[#allocation2 + $0x24] sm:$0xf]  ;;  %v2208_v16 = vmax.f32 %v2102_v35, 0.0 }
 0x21c   : > { %v2497_v34 = vor.u32 %v2495_v7, %v8246_v14  ;;  %v2498_v28 = vrot.slane %v8246_v14, 4  ;;  %v2206_v39 = vmax.f32 %v2094_v11, 0.0  ;;  %v2109_v40 = vpop.f32.mrb[139].mxu0  ;;  %v2211_v12 = vmax.f32 %v2115_v58, 0.0  ;;  %v2787_v14 = vld [vmem:[#allocation2 + $0x38] sm:$0x1] }
 0x21d   : > { %v2480_v20 = vor.u32 %v2478_v61, %v2477_v49  ;;  %v2481_v38 = vrot.slane %v2477_v49, 4  ;;  %v2209_v41 = vmax.f32 %v2107_v4, 0.0  ;;  %v5571_v37 = vpack.c.bf16 %v2208_v16, %v2208_v16  ;;  %v2780_v35 = vld [vmem:[#allocation2 + $0x2c] sm:$0x1] }
 0x21e   : > { %v2784_v56 = vsel %vm8220_vm15, %v2497_v34, %v2783_v2  ;;  %v5569_v29 = vpack.c.bf16 %v2206_v39, %v2206_v39  ;;  %v2118_v18 = vadd.f32 %v6568_v26, %v8102_v10  ;;  %v5574_v62 = vpack.c.bf16 %v2211_v12, %v2211_v12 }
 0x21f   : > { %2785 = vst [vmem:[#allocation2 + $0x30] sm:$0xf] %v2784_v56  ;;  %v2777_v43 = vsel %vm8220_vm15, %v2480_v20, %v2776_v5  ;;  %v5572_v9 = vpack.c.bf16 %v2209_v41, %v2209_v41  ;;  %v2110_v21 = vadd.f32 %v2109_v40, %v8073_v63  ;;  %v2500_v33 = vshrl.u32 %v5571_v37, 16  ;;  %v2797_v63 = vld [vmem:[#allocation2 + $0x48] sm:$0xf] }
 0x220   : > { %2778 = vst [vmem:[#allocation2 + $0x24] sm:$0xf] %v2777_v43  ;;  %v2503_v7 = vshll.u32 %v5571_v37, 16  ;;  %v2483_v8 = vshrl.u32 %v5569_v29, 16  ;;  %v2486_v55 = vshll.u32 %v5569_v29, 16  ;;  %v2526_v11 = vshrl.u32 %v5574_v62, 16 }
 0x221   : > { %v2529_v58 = vshll.u32 %v5574_v62, 16  ;;  %v2509_v17 = vshrl.u32 %v5572_v9, 16  ;;  %v2512_v25 = vshll.u32 %v5572_v9, 16  ;;  %v6571_v10 = vpop.f32.mrb[140].mxu0  ;;  %v2502_v2 = vrot.slane %v2500_v33, 7 }
 0x222   : > { %v2485_v49 = vrot.slane %v2483_v8, 7  ;;  %v2212_v61 = vmax.f32 %v2118_v18, 0.0  ;;  %v2210_v4 = vmax.f32 %v2110_v21, 0.0  ;;  %v2122_v26 = vpop.f32.mrb[141].mxu0  ;;  %v8266_v59 = vrot.slane %v2526_v11, 7 }
 0x223   : > { %v8268_v34 = vrot.slane %v2509_v17, 7  ;;  %v2131_v5 = vadd.f32 %v6571_v10, %v8120_v51  ;;  %v2123_v16 = vadd.f32 %v2122_v26, %v8108_v53  ;;  %v6572_v39 = vpop.f32.mrb[142].mxu0  ;;  %v2505_v40 = vor.u32 %v2503_v7, %v2502_v2  ;;  %v2790_v56 = vld [vmem:[#allocation2 + $0x3c] sm:$0xf] }
 0x224   : > { %v2507_v20 = vrot.slane %v2502_v2, 4  ;;  %v2488_v12 = vor.u32 %v2486_v55, %v2485_v49  ;;  %v2490_v41 = vrot.slane %v2485_v49, 4  ;;  %v2125_v37 = vpop.f32.mrb[143].mxu0  ;;  %v2531_v29 = vor.u32 %v2529_v58, %v8266_v59  ;;  %v2801_v2 = vld [vmem:[#allocation2 + $0x50] sm:$0x1] }
 0x225   : > { %v2532_v18 = vrot.slane %v8266_v59, 4  ;;  %v2514_v43 = vor.u32 %v2512_v25, %v8268_v34  ;;  %v2506_v62 = vsel %vm8230_vm0, %v2498_v28, %v2505_v40  ;;  %v5575_v28 = vpack.c.bf16 %v2212_v61, %v2212_v61  ;;  %v2794_v49 = vld [vmem:[#allocation2 + $0x44] sm:$0x1]  ;;  %v6812_v40 = vld [vmem:[%s9496_s4 + $0x128] sm:$0xff]  }
 0x226   : > { %v2788_v51 = vsel %vm7943_vm4, %v2507_v20, %v2787_v14  ;;  %v2489_v53 = vsel %vm8230_vm0, %v2481_v38, %v2488_v12  ;;  %v2781_v9 = vsel %vm7943_vm4, %v2490_v41, %v2780_v35  ;;  %2786 = vst [vmem:[#allocation2 + $0x34] sm:$0xf] %v2506_v62  ;;  %v2798_v21 = vsel %vm8220_vm15, %v2531_v29, %v2797_v63  ;;  %v8289_v35 = vld [vmem:[#allocation2 + $0xc] sm:$0xf] }
 0x227   : > { %2789 = vst [vmem:[#allocation2 + $0x38] sm:$0x1] %v2788_v51  ;;  %2779 = vst [vmem:[#allocation2 + $0x28] sm:$0xf] %v2489_v53  ;;  %v2791_v33 = vsel %vm8220_vm15, %v2514_v43, %v2790_v56  ;;  %v5573_v7 = vpack.c.bf16 %v2210_v4, %v2210_v4  ;;  %v2215_v8 = vmax.f32 %v2131_v5, 0.0  ;;  %v2213_v55 = vmax.f32 %v2123_v16, 0.0 }
 0x228   : > { %2782 = vst [vmem:[#allocation2 + $0x2c] sm:$0x1] %v2781_v9  ;;  %2799 = vst [vmem:[#allocation2 + $0x48] sm:$0xf] %v2798_v21  ;;  %v2134_v38 = vadd.f32 %v6572_v39, %v8122_v31  ;;  %v2126_v14 = vadd.f32 %v2125_v37, %v8110_v47  ;;  %v2515_v11 = vrot.slane %v8268_v34, 4  ;;  %v2534_v58 = vshrl.u32 %v5575_v28, 16 }
 0x229   : > { %2792 = vst [vmem:[#allocation2 + $0x3c] sm:$0xf] %v2791_v33  ;;  %v2537_v17 = vshll.u32 %v5575_v28, 16  ;;  %v2517_v25 = vshrl.u32 %v5573_v7, 16  ;;  %v8292_v10 = vpop.f32.mrb[144].mxu0  ;;  %v5578_v61 = vpack.c.bf16 %v2215_v8, %v2215_v8  ;;  %v5576_v4 = vpack.c.bf16 %v2213_v55, %v2213_v55  ;;  %v6811_v47 = vld [vmem:[%s9496_s4 + $0x168] sm:$0xff]  }
 0x22a   : > { %v2216_v26 = vmax.f32 %v2134_v38, 0.0  ;;  %v2214_v59 = vmax.f32 %v2126_v14, 0.0  ;;  %v8294_v63 = vpop.f32.mrb[145].mxu0  ;;  %v2536_v31 = vrot.slane %v2534_v58, 7  ;;  %v2520_v34 = vshll.u32 %v5573_v7, 16  ;;  %6303 = vmatprep.subr.bf16.mxu1 %v6811_v47 }
 0x22b   : > { %v2519_v5 = vrot.slane %v2517_v25, 7  ;;  %v2956_v16 = vshrl.u32 %v8289_v35, 16  ;;  %v8300_v39 = vpop.f32.mrb[146].mxu0  ;;  %v2560_v20 = vshrl.u32 %v5578_v61, 16  ;;  %v2563_v12 = vshll.u32 %v5578_v61, 16  ;;  %6304 = vmatpush3.bf16.msra.mxu1 %v6812_v40 }
 0x22c   : > { %v2543_v41 = vshrl.u32 %v5576_v4, 16  ;;  %v2546_v56 = vshll.u32 %v5576_v4, 16  ;;  %v8305_v37 = vpop.f32.mrb[147].mxu0  ;;  %v2539_v29 = vor.u32 %v2537_v17, %v2536_v31  ;;  %v2541_v43 = vrot.slane %v2536_v31, 4  ;;  %v2811_v38 = vld [vmem:[#allocation2 + $0x60] sm:$0xf] }
 0x22d   : > { %v2522_v62 = vor.u32 %v2520_v34, %v2519_v5  ;;  %v2524_v51 = vrot.slane %v2519_v5, 4  ;;  %v2562_v53 = vrot.slane %v2560_v20, 7  ;;  %v5579_v21 = vpack.c.bf16 %v2216_v26, %v2216_v26  ;;  %v2804_v14 = vld [vmem:[#allocation2 + $0x54] sm:$0xf]  ;;  %v8317_v58 = vld [vmem:[#allocation2 + $0x10] sm:$0xf] }
 0x22e   : > { %v8307_v9 = vrot.slane %v2543_v41, 7  ;;  %v5577_v33 = vpack.c.bf16 %v2214_v59, %v2214_v59  ;;  %v2540_v28 = vsel %vm8230_vm0, %v2532_v18, %v2539_v29  ;;  %v2802_v7 = vsel %vm7943_vm4, %v2541_v43, %v2801_v2  ;;  %v8321_v61 = vld [vmem:[#allocation2 + $0x18] sm:$0xf] }
 0x22f   : > { %v2523_v8 = vsel %vm8230_vm0, %v2515_v11, %v2522_v62  ;;  %v2795_v55 = vsel %vm7943_vm4, %v2524_v51, %v2794_v49  ;;  %2800 = vst [vmem:[#allocation2 + $0x4c] sm:$0xf] %v2540_v28  ;;  %2803 = vst [vmem:[#allocation2 + $0x50] sm:$0x1] %v2802_v7  ;;  %v2565_v17 = vor.u32 %v2563_v12, %v2562_v53  ;;  %v2566_v25 = vrot.slane %v2562_v53, 4  ;;  %v6803_v12 = vld [vmem:[%s9496_s4 + $0x180] sm:$0xff]  }
 0x230   : > { %2793 = vst [vmem:[#allocation2 + $0x40] sm:$0xf] %v2523_v8  ;;  %2796 = vst [vmem:[#allocation2 + $0x44] sm:$0x1] %v2795_v55  ;;  %v2548_v18 = vor.u32 %v2546_v56, %v8307_v9  ;;  %v2959_v2 = vshll.u32 %v8289_v35, 16  ;;  %v2549_v49 = vrot.slane %v8307_v9, 4  ;;  %v8334_v40 = vcombine.low %v8289_v35, %v8317_v58 }
 0x231   : > { %v8323_v11 = vld [vmem:[#allocation2 + $0x1c] sm:$0xf]  ;;  %v2568_v4 = vshrl.u32 %v5579_v21, 16  ;;  %v2571_v26 = vshll.u32 %v5579_v21, 16  ;;  %v2551_v59 = vshrl.u32 %v5577_v33, 16  ;;  %v8326_v47 = vpop.f32.mrb[148].mxu0  ;;  %v2812_v31 = vsel %vm8220_vm15, %v2565_v17, %v2811_v38 }
 0x232   : > { %v2805_v5 = vsel %vm8220_vm15, %v2548_v18, %v2804_v14  ;;  %v2554_v34 = vshll.u32 %v5577_v33, 16  ;;  %v8336_v20 = vpop.f32.mrb[149].mxu0  ;;  %2813 = vst [vmem:[#allocation2 + $0x60] sm:$0xf] %v2812_v31  ;;  %v2969_v29 = vshrl.u32 %v8317_v58, 16  ;;  %v2980_v43 = vshrl.u32 %v8321_v61, 16  ;;  %4538 = vmatprep.mubr.bf16.mxu0 %v8334_v40 }
 0x233   : > { %2806 = vst [vmem:[#allocation2 + $0x54] sm:$0xf] %v2805_v5  ;;  %v2570_v41 = vrot.slane %v2568_v4, 7  ;;  %v2553_v56 = vrot.slane %v2551_v59, 7  ;;  %v8343_v62 = vpop.f32.mrb[150].mxu0  ;;  %v6808_v51 = vld [vmem:[%s9496_s4 + $0x1c8] sm:$0xff]   ;;  %v8352_v33 = vcombine.low %v8321_v61, %v8323_v11  ;;  %v2147_v28 = vadd.f32 %v8292_v10, %v8140_v52  ;;  %4539 = vmatmul.mubr.bf16.vlgmr.msra.gmra.mrb[160].mxu0 %v5464_v0 }
 0x234   : > { %v2815_v53 = vld [vmem:[#allocation2 + $0x68] sm:$0x1]  ;;  %v2808_v9 = vld [vmem:[#allocation2 + $0x5c] sm:$0x1]  ;;  %v2983_v21 = vshll.u32 %v8321_v61, 16  ;;  %v2139_v7 = vadd.f32 %v8294_v63, %v8126_v42  ;;  %v8358_v8 = vpop.f32.mrb[151].mxu0  ;;  %v2150_v52 = vadd.f32 %v8300_v39, %v8145_v30  ;;  %v2142_v42 = vadd.f32 %v8305_v37, %v8128_v23  ;;  %6406 = vmatpush3.bf16.msra.mxu0 %v6803_v12 }
 0x235   : > { %v2573_v55 = vor.u32 %v2571_v26, %v2570_v41  ;;  %v2575_v38 = vrot.slane %v2570_v41, 4  ;;  %v2556_v14 = vor.u32 %v2554_v34, %v2553_v56  ;;  %v2558_v17 = vrot.slane %v2553_v56, 4  ;;  %4546 = vmatprep.mubr.bf16.mxu0 %v8352_v33  ;;  %v6809_v10 = vld [vmem:[%s9496_s4 + $0x188] sm:$0xff]   ;;  %6407 = vmatprep.subr.bf16.mxu0 %v6808_v51  ;;  %v6814_v23 = vld [vmem:[%s9496_s4 + $0x1d0] sm:$0xff]  }
 0x236   : > { %v2219_v18 = vmax.f32 %v2147_v28, 0.0  ;;  %v2217_v4 = vmax.f32 %v2139_v7, 0.0  ;;  %v2220_v37 = vmax.f32 %v2150_v52, 0.0  ;;  %v8382_v26 = vld [vmem:[#allocation2 + $0x14] sm:$0x1]  ;;  %v2958_v59 = vrot.slane %v2956_v16, 4 }
 0x237   : > { %v2574_v63 = vsel %vm8230_vm0, %v2566_v25, %v2573_v55  ;;  %v2816_v46 = vsel %vm7943_vm4, %v2575_v38, %v2815_v53  ;;  %v2557_v13 = vsel %vm8230_vm0, %v2549_v49, %v2556_v14  ;;  %v2809_v0 = vsel %vm7943_vm4, %v2558_v17, %v2808_v9  ;;  %v6815_v12 = vld [vmem:[%s9496_s4 + $0x190] sm:$0xff]  }
 0x238   : > { %2814 = vst [vmem:[#allocation2 + $0x64] sm:$0xf] %v2574_v63  ;;  %2817 = vst [vmem:[#allocation2 + $0x68] sm:$0x1] %v2816_v46  ;;  %v5582_v30 = vpack.c.bf16 %v2219_v18, %v2219_v18  ;;  %v5580_v39 = vpack.c.bf16 %v2217_v4, %v2217_v4  ;;  %v2218_v25 = vmax.f32 %v2142_v42, 0.0  ;;  %v2993_v49 = vshrl.u32 %v8323_v11, 16  ;;  %6408 = vmatpush3.bf16.msra.mxu0 %v6809_v10 }
 0x239   : > { %2807 = vst [vmem:[#allocation2 + $0x58] sm:$0xf] %v2557_v13  ;;  %2810 = vst [vmem:[#allocation2 + $0x5c] sm:$0x1] %v2809_v0  ;;  %v2961_v31 = vrot.slane %v2959_v2, 5  ;;  %v2965_v5 = vshll.u32 %v8317_v58, 16  ;;  %v5583_v28 = vpack.c.bf16 %v2220_v37, %v2220_v37  ;;  %6409 = vmatprep.subr.bf16.mxu0 %v6814_v23 }
 0x23a   : > { %v8388_v34 = vpop.f32.mrb[152].mxu0  ;;  %v2594_v41 = vshrl.u32 %v5582_v30, 16  ;;  %v2597_v56 = vshll.u32 %v5582_v30, 16  ;;  %v2577_v51 = vshrl.u32 %v5580_v39, 16  ;;  %v2971_v53 = vrot.slane %v2969_v29, 4  ;;  %v6817_v16 = vld [vmem:[%s9496_s4 + $0x170] sm:$0xff]  }
 0x23b   : > { %v8393_v9 = vpop.f32.mrb[153].mxu0  ;;  %v2825_v2 = vld [vmem:[#allocation2 + $0x78] sm:$0xf]  ;;  %v5581_v7 = vpack.c.bf16 %v2218_v25, %v2218_v25  ;;  %v2962_v55 = vor.u32 %v2961_v31, %v2958_v59  ;;  %v8398_v38 = vrot.slane %v2965_v5, 5  ;;  %v2580_v4 = vshll.u32 %v5580_v39, 16  ;;  %6305 = vmatprep.subr.bf16.mxu1 %v6817_v16  ;;  %v6818_v42 = vld [vmem:[%s9496_s4 + $0x130] sm:$0xff]  }
 0x23c   : > { %v8400_v14 = vpop.f32.mrb[154].mxu0  ;;  %v2596_v17 = vrot.slane %v2594_v41, 7  ;;  %v2579_v18 = vrot.slane %v2577_v51, 7  ;;  %v2975_v29 = vshll.u32 %v8382_v26, 16  ;;  %v2818_v10 = vld [vmem:[#allocation2 + $0x6c] sm:$0xf]  ;;  %6410 = vmatpush3.bf16.msra.mxu0 %v6815_v12  ;;  %6306 = vmatpush3.bf16.msra.mxu1 %v6818_v42 }
 0x23d   : > { %v8403_v52 = vpop.f32.mrb[155].mxu0  ;;  %v2602_v63 = vshrl.u32 %v5583_v28, 16  ;;  %v2605_v46 = vshll.u32 %v5583_v28, 16  ;;  %v2585_v13 = vshrl.u32 %v5581_v7, 16  ;;  %v5415_v0 = vrot.slane %v8289_v35, 9 }
 0x23e   : > { %v2599_v30 = vor.u32 %v2597_v56, %v2596_v17  ;;  %v2600_v23 = vrot.slane %v2596_v17, 4  ;;  %v2582_v37 = vor.u32 %v2580_v4, %v2579_v18  ;;  %v2588_v25 = vshll.u32 %v5581_v7, 16  ;;  %v2829_v28 = vld [vmem:[#allocation2 + $0x80] sm:$0x1]  ;;  %v2822_v35 = vld [vmem:[#allocation2 + $0x74] sm:$0x1] }
 0x23f   : > { %v2604_v39 = vrot.slane %v2602_v63, 7  ;;  %v2587_v59 = vrot.slane %v2585_v13, 7  ;;  %v2963_v31 = vrot.slane %v2962_v55, 4  ;;  %v2972_v5 = vor.u32 %v2971_v53, %v8398_v38  ;;  %v8415_v55 = vld [vmem:[#allocation2 + $0x24] sm:$0xf] }
 0x240   : > { %v2826_v41 = vsel %vm8220_vm15, %v2599_v30, %v2825_v2  ;;  %v2583_v51 = vrot.slane %v2579_v18, 4  ;;  %v2819_v16 = vsel %vm8220_vm15, %v2582_v37, %v2818_v10  ;;  %v3375_v56 = vrot.slane %v8317_v58, 5  ;;  %v8422_v63 = vld [vmem:[#allocation2 + $0x28] sm:$0xf]  ;;  %v8680_v15 = vld [vmem:[#allocation2 + $0x54] sm:$0xf] }
 0x241   : > { %2827 = vst [vmem:[#allocation2 + $0x78] sm:$0xf] %v2826_v41  ;;  %2820 = vst [vmem:[#allocation2 + $0x6c] sm:$0xf] %v2819_v16  ;;  %v2607_v12 = vor.u32 %v2605_v46, %v2604_v39  ;;  %v2609_v7 = vrot.slane %v2604_v39, 4  ;;  %v2590_v17 = vor.u32 %v2588_v25, %v2587_v59  ;;  %v2592_v4 = vrot.slane %v2587_v59, 4 }
 0x242   : > { %v8417_v53 = vpop.f32.mrb[156].mxu0  ;;  %v2968_v2 = vsel %vm8051_vm9, %v2963_v31, %v8398_v38  ;;  %v2973_v18 = vrot.slane %v2972_v5, 4  ;;  %v2977_v42 = vrot.slane %v2975_v29, 5  ;;  %v3377_v10 = vrot.slane %v3375_v56, 4  ;;  %v6820_v29 = vld [vmem:[%s9496_s4 + $0x1d8] sm:$0xff]  }
 0x243   : > { %v8424_v58 = vpop.f32.mrb[157].mxu0  ;;  %v2608_v46 = vsel %vm8230_vm0, %v2600_v23, %v2607_v12  ;;  %v2830_v13 = vsel %vm7943_vm4, %v2609_v7, %v2829_v28  ;;  %v2591_v30 = vsel %vm8230_vm0, %v2583_v51, %v2590_v17  ;;  %v2823_v37 = vsel %vm7943_vm4, %v2592_v4, %v2822_v35  ;;  %v6821_v25 = vld [vmem:[%s9496_s4 + $0x198] sm:$0xff]   ;;  %v8448_v5 = vld [vmem:[#allocation2 + $0x20] sm:$0x1]  ;;  %6411 = vmatprep.subr.bf16.mxu0 %v6820_v29 }
 0x244   : > { %v8434_v38 = vpop.f32.mrb[158].mxu0  ;;  %2828 = vst [vmem:[#allocation2 + $0x7c] sm:$0xf] %v2608_v46  ;;  %2831 = vst [vmem:[#allocation2 + $0x80] sm:$0x1] %v2830_v13  ;;  %v2978_v23 = vsel %vm8051_vm9, %v2973_v18, %v2977_v42  ;;  %v3376_v39 = vsel %vm8076_vm12, %v5415_v0, %v3375_v56  ;;  %v3378_v59 = vrot.slane %v8382_v26, 5  ;;  %v8457_v28 = vcombine.low %v8415_v55, %v8422_v63 }
 0x245   : > { %2821 = vst [vmem:[#allocation2 + $0x70] sm:$0xf] %v2591_v30  ;;  %2824 = vst [vmem:[#allocation2 + $0x74] sm:$0x1] %v2823_v37  ;;  %v3004_v31 = vshrl.u32 %v8415_v55, 16  ;;  %v8450_v41 = vpop.f32.mrb[159].mxu0  ;;  %v8452_v51 = vcombine.low %v2968_v2, %v2978_v23  ;;  %6412 = vmatpush3.bf16.msra.mxu0 %v6821_v25  ;;  %v2163_v4 = vadd.f32 %v8326_v47, %v8166_v3 }
 0x246   : > { %v3007_v16 = vshll.u32 %v8415_v55, 16  ;;  %v2982_v35 = vrot.slane %v2980_v43, 4  ;;  %v3379_v26 = vsel %vm8076_vm12, %v3377_v10, %v3378_v59  ;;  %v2985_v0 = vrot.slane %v2983_v21, 5  ;;  %v6822_v7 = vld [vmem:[%s9496_s4 + $0x1e0] sm:$0xff]   ;;  %v6826_v59 = vld [vmem:[%s9496_s4 + $0x138] sm:$0xff]  }
 0x247   : > { %v2989_v56 = vshll.u32 %v8323_v11, 16  ;;  %v2995_v12 = vrot.slane %v2993_v49, 4  ;;  %4385 = vmatprep.mubr.bf16.mxu1 %v8452_v51  ;;  %v8472_v43 = vcombine.low %v3376_v39, %v3379_v26  ;;  %v2999_v17 = vshll.u32 %v8448_v5, 16  ;;  %6413 = vmatprep.subr.bf16.mxu0 %v6822_v7 }
 0x248   : > { %v2155_v21 = vadd.f32 %v8336_v20, %v8149_v6  ;;  %4386 = vmatmul.mubr.bf16.gmra.mrb[132].mxu1 %v8334_v40  ;;  %v2986_v49 = vor.u32 %v2985_v0, %v2982_v35  ;;  %v2166_v18 = vadd.f32 %v8343_v62, %v8168_v1  ;;  %v2158_v42 = vadd.f32 %v8358_v8, %v8151_v54  ;;  %v6824_v1 = vld [vmem:[%s9496_s4 + $0x178] sm:$0xff]   ;;  %v6825_v54 = vld [vmem:[%s9496_s4 + $0x1a0] sm:$0xff]  }
 0x249   : > { %v2991_v2 = vrot.slane %v2989_v56, 5  ;;  %4547 = vmatmul.mubr.bf16.gmra.mrb[164].mxu0 %v8472_v43  ;;  %v3017_v10 = vshrl.u32 %v8422_v63, 16  ;;  %v3001_v46 = vrot.slane %v2999_v17, 5  ;;  %v2223_v3 = vmax.f32 %v2163_v4, 0.0  ;;  %6307 = vmatprep.subr.bf16.mxu1 %v6824_v1 }
 0x24a   : > { %v2221_v47 = vmax.f32 %v2155_v21, 0.0  ;;  %4554 = vmatprep.mubr.bf16.mxu0 %v8457_v28  ;;  %v2987_v6 = vrot.slane %v2986_v49, 4  ;;  %v2224_v20 = vmax.f32 %v2166_v18, 0.0  ;;  %v2222_v13 = vmax.f32 %v2158_v42, 0.0  ;;  %6414 = vmatpush3.bf16.msra.mxu0 %v6825_v54  ;;  %v6829_v21 = vld [vmem:[%s9496_s4 + $0x1f0] sm:$0xff]  }
 0x24b   : > { %v2996_v40 = vor.u32 %v2995_v12, %v2991_v2  ;;  %v5586_v62 = vpack.c.bf16 %v2223_v3, %v2223_v3  ;;  %v5416_v30 = vrot.slane %v8321_v61, 9  ;;  %v3382_v37 = vrot.slane %v8323_v11, 5  ;;  %v6827_v61 = vld [vmem:[%s9496_s4 + $0x1e8] sm:$0xff]   ;;  %v2839_v12 = vld [vmem:[#allocation2 + $0x90] sm:$0xf]  ;;  %6308 = vmatpush3.bf16.msra.mxu1 %v6826_v59 }
 0x24c   : > { %v5584_v8 = vpack.c.bf16 %v2221_v47, %v2221_v47  ;;  %v5587_v25 = vpack.c.bf16 %v2224_v20, %v2224_v20  ;;  %v5585_v23 = vpack.c.bf16 %v2222_v13, %v2222_v13  ;;  %v3385_v39 = vrot.slane %v8448_v5, 5  ;;  %v6828_v11 = vld [vmem:[%s9496_s4 + $0x1a8] sm:$0xff]   ;;  %v2832_v42 = vld [vmem:[#allocation2 + $0x84] sm:$0xf]  ;;  %6415 = vmatprep.subr.bf16.mxu0 %v6827_v61 }
 0x24d   : > { %v2997_v29 = vrot.slane %v2996_v40, 4  ;;  %v2992_v35 = vsel %vm8051_vm9, %v2987_v6, %v2991_v2  ;;  %v2628_v26 = vshrl.u32 %v5586_v62, 16  ;;  %v2631_v0 = vshll.u32 %v5586_v62, 16  ;;  %v2843_v6 = vld [vmem:[#allocation2 + $0x98] sm:$0x1] }
 0x24e   : > { %v2611_v56 = vshrl.u32 %v5584_v8, 16  ;;  %v2614_v7 = vshll.u32 %v5584_v8, 16  ;;  %v2636_v17 = vshrl.u32 %v5587_v25, 16  ;;  %v2619_v4 = vshrl.u32 %v5585_v23, 16  ;;  %6416 = vmatpush3.bf16.msra.mxu0 %v6828_v11  ;;  %v2836_v8 = vld [vmem:[#allocation2 + $0x8c] sm:$0x1] }
 0x24f   : > { %v3002_v5 = vsel %vm8051_vm9, %v2997_v29, %v3001_v46  ;;  %v2630_v2 = vrot.slane %v2628_v26, 7  ;;  %v2639_v3 = vshll.u32 %v5587_v25, 16  ;;  %v2622_v46 = vshll.u32 %v5585_v23, 16  ;;  %v8515_v29 = vld [vmem:[#allocation2 + $0x30] sm:$0xf]  ;;  %6417 = vmatprep.subr.bf16.mxu0 %v6829_v21 }
 0x250   : > { %v8512_v49 = vcombine.low %v2992_v35, %v3002_v5  ;;  %v2613_v18 = vrot.slane %v2611_v56, 7  ;;  %v2638_v47 = vrot.slane %v2636_v17, 7  ;;  %v2621_v40 = vrot.slane %v2619_v4, 7  ;;  %v8518_v56 = vld [vmem:[#allocation2 + $0x34] sm:$0xf] }
 0x251   : > { %v3384_v20 = vrot.slane %v3382_v37, 4  ;;  %v2633_v13 = vor.u32 %v2631_v0, %v2630_v2  ;;  %v2634_v1 = vrot.slane %v2630_v2, 4  ;;  %v6830_v23 = vld [vmem:[%s9496_s4 + $0x1b0] sm:$0xff]   ;;  %v3383_v11 = vsel %vm8076_vm12, %v5416_v30, %v3382_v37  ;;  %v8542_v37 = vld [vmem:[#allocation2 + $0x2c] sm:$0x1] }
 0x252   : > { %4393 = vmatprep.mubr.bf16.mxu1 %v8512_v49  ;;  %v2616_v54 = vor.u32 %v2614_v7, %v2613_v18  ;;  %v2617_v62 = vrot.slane %v2613_v18, 4  ;;  %v2641_v59 = vor.u32 %v2639_v3, %v2638_v47  ;;  %v2643_v35 = vrot.slane %v2638_v47, 4  ;;  %v6831_v7 = vld [vmem:[%s9496_s4 + $0x1f8] sm:$0xff]   ;;  %6418 = vmatpush3.bf16.msra.mxu0 %v6830_v23 }
 0x253   : > { %v2624_v25 = vor.u32 %v2622_v46, %v2621_v40  ;;  %v2626_v26 = vrot.slane %v2621_v40, 4  ;;  %4394 = vmatmul.mubr.bf16.gmra.mrb[136].mxu1 %v8352_v33  ;;  %v2840_v0 = vsel %vm8220_vm15, %v2633_v13, %v2839_v12  ;;  %v3386_v5 = vsel %vm8076_vm12, %v3384_v20, %v3385_v39  ;;  %v6832_v39 = vld [vmem:[%s9496_s4 + $0x1b8] sm:$0xff]   ;;  %6419 = vmatprep.subr.bf16.mxu0 %v6831_v7 }
 0x254   : > { %v2833_v61 = vsel %vm8220_vm15, %v2616_v54, %v2832_v42  ;;  %2841 = vst [vmem:[#allocation2 + $0x90] sm:$0xf] %v2840_v0  ;;  %v2642_v17 = vsel %vm8230_vm0, %v2634_v1, %v2641_v59  ;;  %v2844_v12 = vsel %vm7943_vm4, %v2643_v35, %v2843_v6  ;;  %v8547_v21 = vcombine.low %v3383_v11, %v3386_v5 }
 0x255   : > { %2834 = vst [vmem:[#allocation2 + $0x84] sm:$0xf] %v2833_v61  ;;  %v2625_v4 = vsel %vm8230_vm0, %v2617_v62, %v2624_v25  ;;  %v2837_v30 = vsel %vm7943_vm4, %v2626_v26, %v2836_v8  ;;  %2842 = vst [vmem:[#allocation2 + $0x94] sm:$0xf] %v2642_v17  ;;  %v3028_v2 = vshrl.u32 %v8515_v29, 16  ;;  %v3031_v18 = vshll.u32 %v8515_v29, 16 }
 0x256   : > { %2845 = vst [vmem:[#allocation2 + $0x98] sm:$0x1] %v2844_v12  ;;  %2835 = vst [vmem:[#allocation2 + $0x88] sm:$0xf] %v2625_v4  ;;  %v8553_v42 = vcombine.low %v8515_v29, %v8518_v56  ;;  %v3006_v3 = vrot.slane %v3004_v31, 4  ;;  %v3009_v47 = vrot.slane %v3007_v16, 5  ;;  %4555 = vmatmul.mubr.bf16.gmra.mrb[168].mxu0 %v8547_v21  ;;  %v2179_v20 = vadd.f32 %v8388_v34, %v8186_v27 }
 0x257   : > { %2838 = vst [vmem:[#allocation2 + $0x8c] sm:$0x1] %v2837_v30  ;;  %v3013_v6 = vshll.u32 %v8422_v63, 16  ;;  %v3019_v40 = vrot.slane %v3017_v10, 4  ;;  %v3023_v46 = vshll.u32 %v8542_v37, 16  ;;  %v2171_v13 = vadd.f32 %v8393_v9, %v8172_v36  ;;  %6420 = vmatpush3.bf16.msra.mxu0 %v6832_v39 }
 0x258   : > { %v2182_v31 = vadd.f32 %v8400_v14, %v8191_v48  ;;  %v3041_v16 = vshrl.u32 %v8518_v56, 16  ;;  %4562 = vmatprep.mubr.bf16.mxu0 %v8553_v42  ;;  %v3010_v1 = vor.u32 %v3009_v47, %v3006_v3  ;;  %v2174_v10 = vadd.f32 %v8403_v52, %v8174_v60  ;;  %v6833_v14 = vld [vmem:[%s9496_s4 + $0x200] sm:$0xff]   ;;  %v2853_v17 = vld [vmem:[#allocation2 + $0xa8] sm:$0xf] }
 0x259   : > { %v3015_v54 = vrot.slane %v3013_v6, 5  ;;  %v2227_v62 = vmax.f32 %v2179_v20, 0.0  ;;  %v2225_v8 = vmax.f32 %v2171_v13, 0.0  ;;  %v5417_v27 = vrot.slane %v8415_v55, 9  ;;  %6589 = vmatprep.subr.bf16.mxu1 %v6833_v14  ;;  %v2846_v6 = vld [vmem:[#allocation2 + $0x9c] sm:$0xf] }
 0x25a   : > { %v2228_v59 = vmax.f32 %v2182_v31, 0.0  ;;  %v3011_v34 = vrot.slane %v3010_v1, 4  ;;  %v2226_v9 = vmax.f32 %v2174_v10, 0.0  ;;  %v3389_v48 = vrot.slane %v8422_v63, 5  ;;  %v8588_v31 = vld [vmem:[#allocation2 + $0x3c] sm:$0xf] }
 0x25b   : > { %v3020_v36 = vor.u32 %v3019_v40, %v3015_v54  ;;  %v3025_v35 = vrot.slane %v3023_v46, 5  ;;  %v5590_v25 = vpack.c.bf16 %v2227_v62, %v2227_v62  ;;  %v5588_v26 = vpack.c.bf16 %v2225_v8, %v2225_v8  ;;  %v2857_v8 = vld [vmem:[#allocation2 + $0xb0] sm:$0x1]  ;;  %v8592_v14 = vld [vmem:[#allocation2 + $0x40] sm:$0xf] }
 0x25c   : > { %v5591_v23 = vpack.c.bf16 %v2228_v59, %v2228_v59  ;;  %v3016_v60 = vsel %vm8051_vm9, %v3011_v34, %v3015_v54  ;;  %v5589_v0 = vpack.c.bf16 %v2226_v9, %v2226_v9  ;;  %v3392_v55 = vrot.slane %v8542_v37, 5  ;;  %v2850_v59 = vld [vmem:[#allocation2 + $0xa4] sm:$0x1] }
 0x25d   : > { %v3021_v52 = vrot.slane %v3020_v36, 4  ;;  %v2662_v61 = vshrl.u32 %v5590_v25, 16  ;;  %v2665_v11 = vshll.u32 %v5590_v25, 16  ;;  %v2645_v5 = vshrl.u32 %v5588_v26, 16 }
 0x25e   : > { %v3390_v63 = vsel %vm8076_vm12, %v5417_v27, %v3389_v48  ;;  %v2648_v12 = vshll.u32 %v5588_v26, 16  ;;  %v2670_v4 = vshrl.u32 %v5591_v23, 16  ;;  %v2653_v30 = vshrl.u32 %v5589_v0, 16 }
 0x25f   : > { %v3026_v7 = vsel %vm8051_vm9, %v3021_v52, %v3025_v35  ;;  %v2664_v3 = vrot.slane %v2662_v61, 7  ;;  %v2647_v47 = vrot.slane %v2645_v5, 7  ;;  %v2673_v37 = vshll.u32 %v5591_v23, 16  ;;  %v8601_v23 = vld [vmem:[#allocation2 + $0x38] sm:$0x1] }
 0x260   : > { %v8586_v39 = vcombine.low %v3016_v60, %v3026_v7  ;;  %v2672_v40 = vrot.slane %v2670_v4, 7  ;;  %v2655_v46 = vrot.slane %v2653_v30, 7  ;;  %v2656_v20 = vshll.u32 %v5589_v0, 16 }
 0x261   : > { %v3391_v13 = vrot.slane %v3389_v48, 4  ;;  %v2667_v1 = vor.u32 %v2665_v11, %v2664_v3  ;;  %v2668_v54 = vrot.slane %v2664_v3, 4  ;;  %v2650_v10 = vor.u32 %v2648_v12, %v2647_v47 }
 0x262   : > { %4401 = vmatprep.mubr.bf16.mxu1 %v8586_v39  ;;  %v2651_v62 = vrot.slane %v2647_v47, 4  ;;  %v2675_v27 = vor.u32 %v2673_v37, %v2672_v40  ;;  %v2677_v34 = vrot.slane %v2672_v40, 4  ;;  %v2658_v36 = vor.u32 %v2656_v20, %v2655_v46 }
 0x263   : > { %v2660_v9 = vrot.slane %v2655_v46, 4  ;;  %4402 = vmatmul.mubr.bf16.gmra.mrb[140].mxu1 %v8457_v28  ;;  %v2854_v48 = vsel %vm8220_vm15, %v2667_v1, %v2853_v17  ;;  %v2847_v35 = vsel %vm8220_vm15, %v2650_v10, %v2846_v6  ;;  %v3393_v25 = vsel %vm8076_vm12, %v3391_v13, %v3392_v55 }
 0x264   : > { %v3052_v26 = vshrl.u32 %v8588_v31, 16  ;;  %2855 = vst [vmem:[#allocation2 + $0xa8] sm:$0xf] %v2854_v48  ;;  %2848 = vst [vmem:[#allocation2 + $0x9c] sm:$0xf] %v2847_v35  ;;  %v2676_v60 = vsel %vm8230_vm0, %v2668_v54, %v2675_v27  ;;  %v2858_v52 = vsel %vm7943_vm4, %v2677_v34, %v2857_v8  ;;  %v2659_v0 = vsel %vm8230_vm0, %v2651_v62, %v2658_v36 }
 0x265   : > { %v2851_v61 = vsel %vm7943_vm4, %v2660_v9, %v2850_v59  ;;  %2856 = vst [vmem:[#allocation2 + $0xac] sm:$0xf] %v2676_v60  ;;  %2859 = vst [vmem:[#allocation2 + $0xb0] sm:$0x1] %v2858_v52  ;;  %v8611_v55 = vcombine.low %v3390_v63, %v3393_v25  ;;  %v3055_v11 = vshll.u32 %v8588_v31, 16  ;;  %v8616_v5 = vcombine.low %v8588_v31, %v8592_v14 }
 0x266   : > { %2849 = vst [vmem:[#allocation2 + $0xa0] sm:$0xf] %v2659_v0  ;;  %2852 = vst [vmem:[#allocation2 + $0xa4] sm:$0x1] %v2851_v61  ;;  %v3030_v7 = vrot.slane %v3028_v2, 4  ;;  %v3033_v17 = vrot.slane %v3031_v18, 5  ;;  %v2195_v30 = vadd.f32 %v8417_v53, %v8204_v57  ;;  %v2187_v3 = vadd.f32 %v8424_v58, %v8195_v19 }
 0x267   : > { %v3037_v12 = vshll.u32 %v8518_v56, 16  ;;  %v3043_v4 = vrot.slane %v3041_v16, 4  ;;  %v3047_v63 = vshll.u32 %v8601_v23, 16  ;;  %4563 = vmatmul.mubr.bf16.gmra.mrb[172].mxu0 %v8611_v55  ;;  %v2198_v2 = vadd.f32 %v8434_v38, %v8206_v22  ;;  %v2867_v25 = vld [vmem:[#allocation2 + $0xc0] sm:$0xf] }
 0x268   : > { %v2190_v18 = vadd.f32 %v8450_v41, %v8197_v32  ;;  %v3065_v47 = vshrl.u32 %v8592_v14, 16  ;;  %4570 = vmatprep.mubr.bf16.mxu0 %v8616_v5  ;;  %v3034_v16 = vor.u32 %v3033_v17, %v3030_v7  ;;  %v2231_v40 = vmax.f32 %v2195_v30, 0.0  ;;  %v2860_v0 = vld [vmem:[#allocation2 + $0xb4] sm:$0xf] }
 0x269   : > { %v3039_v6 = vrot.slane %v3037_v12, 5  ;;  %v3049_v37 = vrot.slane %v3047_v63, 5  ;;  %v2229_v46 = vmax.f32 %v2187_v3, 0.0  ;;  %v2232_v20 = vmax.f32 %v2198_v2, 0.0  ;;  %v2871_v3 = vld [vmem:[#allocation2 + $0xc8] sm:$0x1] }
 0x26a   : > { %v2230_v57 = vmax.f32 %v2190_v18, 0.0  ;;  %v3035_v53 = vrot.slane %v3034_v16, 4  ;;  %v5418_v19 = vrot.slane %v8515_v29, 9  ;;  %v3396_v22 = vrot.slane %v8518_v56, 5  ;;  %v2864_v2 = vld [vmem:[#allocation2 + $0xbc] sm:$0x1] }
 0x26b   : > { %v3044_v13 = vor.u32 %v3043_v4, %v3039_v6  ;;  %v5594_v58 = vpack.c.bf16 %v2231_v40, %v2231_v40  ;;  %v5592_v38 = vpack.c.bf16 %v2229_v46, %v2229_v46  ;;  %v5595_v32 = vpack.c.bf16 %v2232_v20, %v2232_v20  ;;  %v8652_v40 = vld [vmem:[#allocation2 + $0x48] sm:$0xf]  ;;  %v8654_v46 = vld [vmem:[#allocation2 + $0x4c] sm:$0xf] }
 0x26c   : > { %v5593_v41 = vpack.c.bf16 %v2230_v57, %v2230_v57  ;;  %v3040_v1 = vsel %vm8051_vm9, %v3035_v53, %v3039_v6  ;;  %v3398_v10 = vrot.slane %v3396_v22, 4  ;;  %v3399_v62 = vrot.slane %v8601_v23, 5 }
 0x26d   : > { %v3045_v54 = vrot.slane %v3044_v13, 4  ;;  %v2696_v8 = vshrl.u32 %v5594_v58, 16  ;;  %v2699_v59 = vshll.u32 %v5594_v58, 16  ;;  %v2679_v27 = vshrl.u32 %v5592_v38, 16  ;;  %v2891_v13 = vld [vmem:[#allocation2 + $0x44] sm:$0x1] }
 0x26e   : > { %v3397_v34 = vsel %vm8076_vm12, %v5418_v19, %v3396_v22  ;;  %v2682_v56 = vshll.u32 %v5592_v38, 16  ;;  %v2704_v36 = vshrl.u32 %v5595_v32, 16  ;;  %v2687_v9 = vshrl.u32 %v5593_v41, 16 }
 0x26f   : > { %v3050_v29 = vsel %vm8051_vm9, %v3045_v54, %v3049_v37  ;;  %v2698_v35 = vrot.slane %v2696_v8, 7  ;;  %v2681_v60 = vrot.slane %v2679_v27, 7  ;;  %v2707_v52 = vshll.u32 %v5595_v32, 16 }
 0x270   : > { %v8646_v48 = vcombine.low %v3040_v1, %v3050_v29  ;;  %v2706_v23 = vrot.slane %v2704_v36, 7  ;;  %v2689_v61 = vrot.slane %v2687_v9, 7  ;;  %v2690_v7 = vshll.u32 %v5593_v41, 16 }
 0x271   : > { %v3400_v17 = vsel %vm8076_vm12, %v3398_v10, %v3399_v62  ;;  %v2701_v12 = vor.u32 %v2699_v59, %v2698_v35  ;;  %v2702_v4 = vrot.slane %v2698_v35, 4  ;;  %v2684_v63 = vor.u32 %v2682_v56, %v2681_v60  ;;  %v2894_v56 = vld [vmem:[#allocation2 + $0x50] sm:$0x1] }
 0x272   : > { %4409 = vmatprep.mubr.bf16.mxu1 %v8646_v48  ;;  %v2685_v30 = vrot.slane %v2681_v60, 4  ;;  %v2709_v18 = vor.u32 %v2707_v52, %v2706_v23  ;;  %v2711_v16 = vrot.slane %v2706_v23, 4  ;;  %v2692_v6 = vor.u32 %v2690_v7, %v2689_v61  ;;  %v8692_v60 = vld [vmem:[#allocation2 + $0x58] sm:$0xf] }
 0x273   : > { %v2694_v37 = vrot.slane %v2689_v61, 4  ;;  %4410 = vmatmul.mubr.bf16.gmra.mrb[144].mxu1 %v8553_v42  ;;  %v2868_v20 = vsel %vm8220_vm15, %v2701_v12, %v2867_v25  ;;  %v2861_v57 = vsel %vm8220_vm15, %v2684_v63, %v2860_v0  ;;  %v8660_v53 = vcombine.low %v3397_v34, %v3400_v17 }
 0x274   : > { %2869 = vst [vmem:[#allocation2 + $0xc0] sm:$0xf] %v2868_v20  ;;  %2862 = vst [vmem:[#allocation2 + $0xb4] sm:$0xf] %v2861_v57  ;;  %v2710_v19 = vsel %vm8230_vm0, %v2702_v4, %v2709_v18  ;;  %v2872_v22 = vsel %vm7943_vm4, %v2711_v16, %v2871_v3  ;;  %v2693_v58 = vsel %vm8230_vm0, %v2685_v30, %v2692_v6  ;;  %v3076_v24 = vshrl.u32 %v8652_v40, 16 }
 0x275   : > { %v2865_v38 = vsel %vm7943_vm4, %v2694_v37, %v2864_v2  ;;  %2870 = vst [vmem:[#allocation2 + $0xc4] sm:$0xf] %v2710_v19  ;;  %2873 = vst [vmem:[#allocation2 + $0xc8] sm:$0x1] %v2872_v22  ;;  %4571 = vmatmul.mubr.bf16.gmra.mrb[176].mxu0 %v8660_v53  ;;  %v8674_v32 = vcombine.low %v8652_v40, %v8654_v46  ;;  %v3054_v41 = vrot.slane %v3052_v26, 4  ;;  %v3057_v50 = vrot.slane %v3055_v11, 5 }
 0x276   : > { %2863 = vst [vmem:[#allocation2 + $0xb8] sm:$0xf] %v2693_v58  ;;  %2866 = vst [vmem:[#allocation2 + $0xbc] sm:$0x1] %v2865_v38  ;;  %v3079_v1 = vshll.u32 %v8652_v40, 16  ;;  %v3061_v54 = vshll.u32 %v8592_v14, 16  ;;  %v8706_v2 = vcombine.low %v8680_v15, %v8692_v60 }
 0x277   : > { %v3067_v10 = vrot.slane %v3065_v47, 4  ;;  %v3071_v62 = vshll.u32 %v2891_v13, 16  ;;  %v3089_v8 = vshrl.u32 %v8654_v46, 16  ;;  %4578 = vmatprep.mubr.bf16.mxu0 %v8674_v32  ;;  %v3058_v59 = vor.u32 %v3057_v50, %v3054_v41  ;;  %v8709_v16 = vld [vmem:[#allocation2 + $0x60] sm:$0xf] }
 0x278   : > { %v3403_v26 = vrot.slane %v8592_v14, 5  ;;  %v3063_v27 = vrot.slane %v3061_v54, 5  ;;  %v5419_v11 = vrot.slane %v8588_v31, 9  ;;  %v3406_v34 = vrot.slane %v2891_v13, 5  ;;  %v2897_v58 = vld [vmem:[#allocation2 + $0x5c] sm:$0x1] }
 0x279   : > { %v3100_v29 = vshrl.u32 %v8680_v15, 16  ;;  %v3059_v36 = vrot.slane %v3058_v59, 4  ;;  %v3073_v9 = vrot.slane %v3071_v62, 5  ;;  %v3103_v47 = vshll.u32 %v8680_v15, 16 }
 0x27a   : > { %v3405_v35 = vrot.slane %v3403_v26, 4  ;;  %v3068_v25 = vor.u32 %v3067_v10, %v3063_v27  ;;  %v3078_v52 = vrot.slane %v3076_v24, 4  ;;  %v3081_v0 = vrot.slane %v3079_v1, 5 }
 0x27b   : > { %v3085_v23 = vshll.u32 %v8654_v46, 16  ;;  %v3404_v14 = vsel %vm8076_vm12, %v5419_v11, %v3403_v26  ;;  %v3091_v61 = vrot.slane %v3089_v8, 4  ;;  %v3095_v7 = vshll.u32 %v2894_v56, 16 }
 0x27c   : > { %v3407_v31 = vsel %vm8076_vm12, %v3405_v35, %v3406_v34  ;;  %v3069_v17 = vrot.slane %v3068_v25, 4  ;;  %v3082_v4 = vor.u32 %v3081_v0, %v3078_v52  ;;  %v3064_v30 = vsel %vm8051_vm9, %v3059_v36, %v3063_v27  ;;  %v8739_v35 = vld [vmem:[#allocation2 + $0x6c] sm:$0xf] }
 0x27d   : > { %v8699_v12 = vcombine.low %v3404_v14, %v3407_v31  ;;  %v3087_v63 = vrot.slane %v3085_v23, 5  ;;  %v3113_v3 = vshrl.u32 %v8692_v60, 16  ;;  %v3410_v18 = vrot.slane %v8654_v46, 5  ;;  %v2900_v23 = vld [vmem:[#allocation2 + $0x68] sm:$0x1] }
 0x27e   : > { %v3074_v6 = vsel %vm8051_vm9, %v3069_v17, %v3073_v9  ;;  %v3083_v37 = vrot.slane %v3082_v4, 4  ;;  %v5420_v57 = vrot.slane %v8652_v40, 9  ;;  %v3413_v22 = vrot.slane %v2894_v56, 5  ;;  %v8724_v40 = vld [vmem:[#allocation2 + $0x64] sm:$0xf] }
 0x27f   : > { %4579 = vmatmul.mubr.bf16.gmra.mrb[180].mxu0 %v8699_v12  ;;  %v3092_v20 = vor.u32 %v3091_v61, %v3087_v63  ;;  %v8715_v13 = vcombine.low %v3064_v30, %v3074_v6  ;;  %v3412_v19 = vrot.slane %v3410_v18, 4  ;;  %v3097_v46 = vrot.slane %v3095_v7, 5  ;;  %v8749_v17 = vld [vmem:[#allocation2 + $0x70] sm:$0xf] }
 0x280   : > { %4586 = vmatprep.mubr.bf16.mxu0 %v8706_v2  ;;  %v3411_v24 = vsel %vm8076_vm12, %v5420_v57, %v3410_v18  ;;  %v3124_v41 = vshrl.u32 %v8709_v16, 16  ;;  %v3102_v1 = vrot.slane %v3100_v29, 4  ;;  %v3105_v54 = vrot.slane %v3103_v47, 5 }
 0x281   : > { %v3093_v38 = vrot.slane %v3092_v20, 4  ;;  %4417 = vmatprep.mubr.bf16.mxu1 %v8715_v13  ;;  %v3414_v50 = vsel %vm8076_vm12, %v3412_v19, %v3413_v22  ;;  %v3109_v10 = vshll.u32 %v8692_v60, 16  ;;  %v3088_v62 = vsel %vm8051_vm9, %v3083_v37, %v3087_v63 }
 0x282   : > { %4418 = vmatmul.mubr.bf16.gmra.mrb[148].mxu1 %v8616_v5  ;;  %v3115_v59 = vrot.slane %v3113_v3, 4  ;;  %v3119_v26 = vshll.u32 %v2897_v58, 16  ;;  %v3127_v11 = vshll.u32 %v8709_v16, 16  ;;  %v3106_v34 = vor.u32 %v3105_v54, %v3102_v1  ;;  %v8772_v1 = vld [vmem:[#allocation2 + $0x78] sm:$0xf] }
 0x283   : > { %v3098_v8 = vsel %vm8051_vm9, %v3093_v38, %v3097_v46  ;;  %v3111_v56 = vrot.slane %v3109_v10, 5  ;;  %v8735_v29 = vcombine.low %v3411_v24, %v3414_v50  ;;  %v3137_v36 = vshrl.u32 %v8724_v40, 16 }
 0x284   : > { %v8732_v27 = vcombine.low %v3088_v62, %v3098_v8  ;;  %v3417_v9 = vrot.slane %v8692_v60, 5  ;;  %v8744_v47 = vcombine.low %v8709_v16, %v8724_v40  ;;  %v3107_v25 = vrot.slane %v3106_v34, 4 }
 0x285   : > { %v3116_v52 = vor.u32 %v3115_v59, %v3111_v56  ;;  %v5421_v0 = vrot.slane %v8680_v15, 9  ;;  %v3121_v14 = vrot.slane %v3119_v26, 5  ;;  %v3420_v61 = vrot.slane %v2897_v58, 5 }
 0x286   : > { %4425 = vmatprep.mubr.bf16.mxu1 %v8732_v27  ;;  %9544 = vst [vmem:[#allocation6_spill] sm:$0xff] %v8744_v47  ;;  %v3419_v31 = vrot.slane %v3417_v9, 4  ;;  %v3126_v7 = vrot.slane %v3124_v41, 4  ;;  %v3148_v4 = vshrl.u32 %v8739_v35, 16  ;;  %v3129_v63 = vrot.slane %v3127_v11, 5 }
 0x287   : > { %4587 = vmatmul.mubr.bf16.gmra.mrb[184].mxu0 %v8735_v29  ;;  %v3117_v60 = vrot.slane %v3116_v52, 4  ;;  %v3133_v30 = vshll.u32 %v8724_v40, 16  ;;  %v3112_v15 = vsel %vm8051_vm9, %v3107_v25, %v3111_v56  ;;  %v3151_v3 = vshll.u32 %v8739_v35, 16  ;;  %v8777_v11 = vld [vmem:[#allocation2 + $0x7c] sm:$0xf] }
 0x288   : > { %4594 = vmatprep.mubr.bf16.mxu0 %v8744_v47  ;;  %v3139_v18 = vrot.slane %v3137_v36, 4  ;;  %v3143_v6 = vshll.u32 %v2900_v23, 16  ;;  %v3421_v20 = vsel %vm8076_vm12, %v3419_v31, %v3420_v61  ;;  %v3130_v57 = vor.u32 %v3129_v63, %v3126_v7 }
 0x289   : > { %v3122_v37 = vsel %vm8051_vm9, %v3117_v60, %v3121_v14  ;;  %v3135_v19 = vrot.slane %v3133_v30, 5  ;;  %v3161_v58 = vshrl.u32 %v8749_v17, 16  ;;  %v3424_v38 = vrot.slane %v8724_v40, 5  ;;  %v2903_v40 = vld [vmem:[#allocation2 + $0x74] sm:$0x1] }
 0x28a   : > { %4426 = vmatmul.mubr.bf16.gmra.mrb[152].mxu1 %v8674_v32  ;;  %v8761_v22 = vcombine.low %v3112_v15, %v3122_v37  ;;  %v3418_v46 = vsel %vm8076_vm12, %v5421_v0, %v3417_v9  ;;  %v8769_v24 = vcombine.low %v8739_v35, %v8749_v17  ;;  %v5422_v50 = vrot.slane %v8709_v16, 9  ;;  %v8800_v37 = vld [vmem:[#allocation2 + $0x84] sm:$0xf] }
 0x28b   : > { %v3140_v41 = vor.u32 %v3139_v18, %v3135_v19  ;;  %v8775_v54 = vcombine.low %v3418_v46, %v3421_v20  ;;  %v3131_v10 = vrot.slane %v3130_v57, 4  ;;  %v3145_v62 = vrot.slane %v3143_v6, 5 }
 0x28c   : > { %9545 = vst [vmem:[#allocation7_spill] sm:$0xff] %v8769_v24  ;;  %4433 = vmatprep.mubr.bf16.mxu1 %v8761_v22  ;;  %v3426_v8 = vrot.slane %v3424_v38, 4  ;;  %v3427_v26 = vrot.slane %v2900_v23, 5  ;;  %v3150_v34 = vrot.slane %v3148_v4, 4  ;;  %v3153_v56 = vrot.slane %v3151_v3, 5 }
 0x28d   : > { %v3141_v59 = vrot.slane %v3140_v41, 4  ;;  %v3172_v16 = vshrl.u32 %v8772_v1, 16  ;;  %v3175_v36 = vshll.u32 %v8772_v1, 16  ;;  %v3157_v9 = vshll.u32 %v8749_v17, 16  ;;  %v2906_v3 = vld [vmem:[#allocation2 + $0x80] sm:$0x1] }
 0x28e   : > { %v3163_v25 = vrot.slane %v3161_v58, 4  ;;  %v3428_v0 = vsel %vm8076_vm12, %v3426_v8, %v3427_v26  ;;  %v3154_v23 = vor.u32 %v3153_v56, %v3150_v34  ;;  %v3167_v14 = vshll.u32 %v2903_v40, 16  ;;  %v8802_v58 = vld [vmem:[#allocation2 + $0x88] sm:$0xf] }
 0x28f   : > { %4595 = vmatmul.mubr.bf16.gmra.mrb[188].mxu0 %v8775_v54  ;;  %v3146_v52 = vsel %vm8051_vm9, %v3141_v59, %v3145_v62  ;;  %v3136_v31 = vsel %vm8051_vm9, %v3131_v10, %v3135_v19  ;;  %v3185_v61 = vshrl.u32 %v8777_v11, 16  ;;  %v3159_v7 = vrot.slane %v3157_v9, 5 }
 0x290   : > { %4602 = vmatprep.mubr.bf16.mxu0 %v8769_v24  ;;  %v3431_v60 = vrot.slane %v8749_v17, 5  ;;  %v8792_v4 = vcombine.low %v3136_v31, %v3146_v52  ;;  %v3425_v63 = vsel %vm8076_vm12, %v5422_v50, %v3424_v38  ;;  %v3155_v18 = vrot.slane %v3154_v23, 4  ;;  %v8827_v23 = vld [vmem:[#allocation2 + $0x90] sm:$0xf] }
 0x291   : > { %v8797_v30 = vcombine.low %v3425_v63, %v3428_v0  ;;  %v3164_v15 = vor.u32 %v3163_v25, %v3159_v7  ;;  %v3169_v6 = vrot.slane %v3167_v14, 5  ;;  %v3174_v20 = vrot.slane %v3172_v16, 4  ;;  %v8833_v63 = vld [vmem:[#allocation2 + $0x94] sm:$0xf] }
 0x292   : > { %4434 = vmatmul.mubr.bf16.gmra.mrb[156].mxu1 %v8706_v2  ;;  %v3177_v57 = vrot.slane %v3175_v36, 5  ;;  %v3433_v19 = vrot.slane %v3431_v60, 4  ;;  %v3181_v38 = vshll.u32 %v8777_v11, 16  ;;  %v3187_v46 = vrot.slane %v3185_v61, 4 }
 0x293   : > { %9546 = vst [vmem:[#allocation8_spill] sm:$0xff] %v8797_v30  ;;  %4441 = vmatprep.mubr.bf16.mxu1 %v8792_v4  ;;  %v3165_v17 = vrot.slane %v3164_v15, 4  ;;  %v8807_v41 = vcombine.low %v8772_v1, %v8777_v11  ;;  %v5423_v50 = vrot.slane %v8739_v35, 9  ;;  %v3434_v62 = vrot.slane %v2903_v40, 5 }
 0x294   : > { %v3196_v8 = vshrl.u32 %v8800_v37, 16  ;;  %v3183_v59 = vrot.slane %v3181_v38, 5  ;;  %v3199_v26 = vshll.u32 %v8800_v37, 16  ;;  %v3209_v34 = vshrl.u32 %v8802_v58, 16 }
 0x295   : > { %9547 = vst [vmem:[#allocation9_spill] sm:$0xff] %v8807_v41  ;;  %v3170_v10 = vsel %vm8051_vm9, %v3165_v17, %v3169_v6  ;;  %v3178_v56 = vor.u32 %v3177_v57, %v3174_v20  ;;  %v3191_v16 = vshll.u32 %v2906_v3, 16  ;;  %v3160_v35 = vsel %vm8051_vm9, %v3155_v18, %v3159_v7  ;;  %v2909_v18 = vld [vmem:[#allocation2 + $0x8c] sm:$0x1] }
 0x296   : > { %v3435_v36 = vsel %vm8076_vm12, %v3433_v19, %v3434_v62  ;;  %v3188_v9 = vor.u32 %v3187_v46, %v3183_v59  ;;  %v3438_v40 = vrot.slane %v8777_v11, 5  ;;  %v8822_v25 = vcombine.low %v3160_v35, %v3170_v10 }
 0x297   : > { %4603 = vmatmul.mubr.bf16.gmra.mrb[192].mxu0 %v8797_v30  ;;  %v3432_v52 = vsel %vm8076_vm12, %v5423_v50, %v3431_v60  ;;  %v3205_v14 = vshll.u32 %v8802_v58, 16  ;;  %v3179_v61 = vrot.slane %v3178_v56, 4  ;;  %v3193_v7 = vrot.slane %v3191_v16, 5 }
 0x298   : > { %4610 = vmatprep.mubr.bf16.mxu0 %v8807_v41  ;;  %9548 = vst [vmem:[#allocation10_spill] sm:$0xff] %v8822_v25  ;;  %v3189_v0 = vrot.slane %v3188_v9, 4  ;;  %v8831_v31 = vcombine.low %v3432_v52, %v3435_v36  ;;  %v3211_v11 = vrot.slane %v3209_v34, 4  ;;  %v3440_v15 = vrot.slane %v3438_v40, 4  ;;  %v8858_v9 = vld [vmem:[#allocation2 + $0xa0] sm:$0xf] }
 0x299   : > { %v3198_v6 = vrot.slane %v3196_v8, 4  ;;  %v3201_v20 = vrot.slane %v3199_v26, 5  ;;  %v3207_v57 = vrot.slane %v3205_v14, 5  ;;  %v8837_v60 = vcombine.low %v8800_v37, %v8802_v58 }
 0x29a   : > { %4442 = vmatmul.mubr.bf16.gmra.mrb[160].mxu1 %v8744_v47  ;;  %9549 = vst [vmem:[#allocation11_spill] sm:$0xff] %v8831_v31  ;;  %v3194_v17 = vsel %vm8051_vm9, %v3189_v0, %v3193_v7  ;;  %v3441_v19 = vrot.slane %v2906_v3, 5  ;;  %v3233_v38 = vshrl.u32 %v8833_v63, 16  ;;  %v5424_v50 = vrot.slane %v8772_v1, 9  ;;  %v8865_v7 = vld [vmem:[#allocation2 + $0x9c] sm:$0xf] }
 0x29b   : > { %4449 = vmatprep.mubr.bf16.mxu1 %v8822_v25  ;;  %9550 = vst [vmem:[#allocation12_spill] sm:$0xff] %v8837_v60  ;;  %v3212_v46 = vor.u32 %v3211_v11, %v3207_v57  ;;  %v3220_v10 = vshrl.u32 %v8827_v23, 16  ;;  %v3223_v62 = vshll.u32 %v8827_v23, 16  ;;  %v3215_v8 = vshll.u32 %v2909_v18, 16 }
 0x29c   : > { %v3184_v26 = vsel %vm8051_vm9, %v3179_v61, %v3183_v59  ;;  %v3442_v34 = vsel %vm8076_vm12, %v3440_v15, %v3441_v19  ;;  %v3202_v56 = vor.u32 %v3201_v20, %v3198_v6  ;;  %v3445_v3 = vrot.slane %v8802_v58, 5  ;;  %v2912_v20 = vld [vmem:[#allocation2 + $0x98] sm:$0x1] }
 0x29d   : > { %v8852_v16 = vcombine.low %v3184_v26, %v3194_v17  ;;  %v3229_v35 = vshll.u32 %v8833_v63, 16  ;;  %v3439_v1 = vsel %vm8076_vm12, %v5424_v50, %v3438_v40  ;;  %v3213_v36 = vrot.slane %v3212_v46, 4 }
 0x29e   : > { %v3235_v52 = vrot.slane %v3233_v38, 4  ;;  %v8861_v59 = vcombine.low %v3439_v1, %v3442_v34  ;;  %v3217_v0 = vrot.slane %v3215_v8, 5  ;;  %v3203_v58 = vrot.slane %v3202_v56, 4 }
 0x29f   : > { %4611 = vmatmul.mubr.bf16.gmra.mrb[196].mxu0 %v8831_v31  ;;  %9551 = vst [vmem:[#allocation13_spill] sm:$0xff] %v8852_v16  ;;  %v8863_v14 = vrot.slane %v3229_v35, 5  ;;  %v3447_v61 = vrot.slane %v3445_v3, 4  ;;  %v3222_v11 = vrot.slane %v3220_v10, 4  ;;  %v3225_v15 = vrot.slane %v3223_v62, 5 }
 0x2a0   : > { %4618 = vmatprep.mubr.bf16.mxu0 %v8837_v60  ;;  %9552 = vst [vmem:[#allocation14_spill] sm:$0xff] %v8861_v59  ;;  %v8869_v40 = vcombine.low %v8827_v23, %v8833_v63  ;;  %v3257_v6 = vshrl.u32 %v8858_v9, 16  ;;  %v3218_v17 = vsel %vm8051_vm9, %v3213_v36, %v3217_v0  ;;  %v5425_v19 = vrot.slane %v8800_v37, 9  ;;  %v8899_v0 = vld [vmem:[#allocation2 + $0xac] sm:$0xf] }
 0x2a1   : > { %v3448_v38 = vrot.slane %v2909_v18, 5  ;;  %v3236_v46 = vor.u32 %v3235_v52, %v8863_v14  ;;  %v3244_v50 = vshrl.u32 %v8865_v7, 16  ;;  %v3247_v10 = vshll.u32 %v8865_v7, 16  ;;  %v8897_v52 = vld [vmem:[#allocation2 + $0xa8] sm:$0xf] }
 0x2a2   : > { %4450 = vmatmul.mubr.bf16.gmra.mrb[164].mxu1 %v8769_v24  ;;  %v3452_v62 = vrot.slane %v8833_v63, 5  ;;  %v3253_v8 = vshll.u32 %v8858_v9, 16  ;;  %v3208_v26 = vsel %vm8051_vm9, %v3203_v58, %v3207_v57  ;;  %v3226_v37 = vor.u32 %v3225_v15, %v3222_v11  ;;  %v6085_v58 = vpop.f32.mrb[128].mxu1  ;;  %v2915_v15 = vld [vmem:[#allocation2 + $0xa4] sm:$0x1] }
 0x2a3   : > { %4457 = vmatprep.mubr.bf16.mxu1 %v8852_v16  ;;  %v3449_v34 = vsel %vm8076_vm12, %v3447_v61, %v3448_v38  ;;  %v3239_v18 = vshll.u32 %v2912_v20, 16  ;;  %v8886_v56 = vcombine.low %v3208_v26, %v3218_v17  ;;  %v3259_v1 = vrot.slane %v3257_v6, 4  ;;  %v6086_v38 = vpop.f32.mrb[129].mxu1 }
 0x2a4   : > { %v8888_v35 = vrot.slane %v3253_v8, 5  ;;  %v3446_v63 = vsel %vm8076_vm12, %v5425_v19, %v3445_v3  ;;  %v8895_v36 = vcombine.low %v8865_v7, %v8858_v9  ;;  %v3237_v57 = vrot.slane %v3236_v46, 4  ;;  %v6088_v26 = vpop.f32.mrb[130].mxu1 }
 0x2a5   : > { %9553 = vst [vmem:[#allocation15_spill] sm:$0xff] %v8886_v56  ;;  %v8902_v61 = vcombine.low %v3446_v63, %v3449_v34  ;;  %v3454_v11 = vrot.slane %v3452_v62, 4  ;;  %v3246_v6 = vrot.slane %v3244_v50, 4  ;;  %v3249_v17 = vrot.slane %v3247_v10, 5  ;;  %v6089_v63 = vpop.f32.mrb[131].mxu1 }
 0x2a6   : > { %v3227_v3 = vrot.slane %v3226_v37, 4  ;;  %v3241_v19 = vrot.slane %v3239_v18, 5  ;;  %v5426_v8 = vrot.slane %v8827_v23, 9  ;;  %v3459_v46 = vrot.slane %v8858_v9, 5 }
 0x2a7   : > { %4619 = vmatmul.mubr.bf16.gmra.mrb[200].mxu0 %v8861_v59  ;;  %9554 = vst [vmem:[#allocation16_spill] sm:$0xff] %v8902_v61  ;;  %v3455_v59 = vrot.slane %v2912_v20, 5  ;;  %v3260_v31 = vor.u32 %v3259_v1, %v8888_v35  ;;  %v3277_v34 = vshll.u32 %v8899_v0, 16  ;;  %v3268_v10 = vshrl.u32 %v8897_v52, 16 }
 0x2a8   : > { %4626 = vmatprep.mubr.bf16.mxu0 %v8869_v40  ;;  %v3242_v50 = vsel %vm8051_vm9, %v3237_v57, %v3241_v19  ;;  %v3271_v23 = vshll.u32 %v8897_v52, 16  ;;  %v3453_v9 = vsel %vm8076_vm12, %v5426_v8, %v3452_v62  ;;  %v3250_v37 = vor.u32 %v3249_v17, %v3246_v6  ;;  %v8931_v8 = vld [vmem:[#allocation2 + $0xb0] sm:$0x1]  ;;  %v8935_v6 = vld [vmem:[#allocation2 + $0xc0] sm:$0xf] }
 0x2a9   : > { %v3456_v20 = vsel %vm8076_vm12, %v3454_v11, %v3455_v59  ;;  %v3263_v18 = vshll.u32 %v2915_v15, 16  ;;  %v3232_v1 = vsel %vm8051_vm9, %v3227_v3, %v8863_v14  ;;  %v8924_v57 = vcombine.low %v8897_v52, %v8899_v0  ;;  %v8940_v3 = vld [vmem:[#allocation2 + $0xb8] sm:$0xf] }
 0x2aa   : > { %4458 = vmatmul.mubr.bf16.gmra.mrb[168].mxu1 %v8807_v41  ;;  %v3281_v41 = vshrl.u32 %v8899_v0, 16  ;;  %v5427_v19 = vrot.slane %v8865_v7, 9  ;;  %v8929_v16 = vcombine.low %v3232_v1, %v3242_v50  ;;  %v3261_v62 = vrot.slane %v3260_v31, 4  ;;  %v8946_v1 = vld [vmem:[#allocation2 + $0xc4] sm:$0xf] }
 0x2ab   : > { %4465 = vmatprep.mubr.bf16.mxu1 %v8886_v56  ;;  %v8927_v56 = vld [vmem:[#allocation2 + $0xb4] sm:$0xf]  ;;  %v8933_v59 = vrot.slane %v3277_v34, 5  ;;  %v8938_v14 = vcombine.low %v3453_v9, %v3456_v20  ;;  %v3462_v17 = vrot.slane %v2915_v15, 5  ;;  %v3270_v7 = vrot.slane %v3268_v10, 4 }
 0x2ac   : > { %9555 = vst [vmem:[#allocation17_spill] sm:$0xff] %v8929_v16  ;;  %v3283_v11 = vrot.slane %v3281_v41, 4  ;;  %v3273_v24 = vrot.slane %v3271_v23, 5  ;;  %v3251_v50 = vrot.slane %v3250_v37, 4  ;;  %v3265_v31 = vrot.slane %v3263_v18, 5 }
 0x2ad   : > { %9556 = vst [vmem:[#allocation18_spill] sm:$0xff] %v8938_v14  ;;  %v3460_v34 = vsel %vm8076_vm12, %v5427_v19, %v3459_v46  ;;  %v3292_v41 = vshrl.u32 %v8927_v56, 16  ;;  %v3295_v15 = vshll.u32 %v8927_v56, 16  ;;  %v3479_v20 = vshrl.u32 %v8935_v6, 16 }
 0x2ae   : > { %v3482_v10 = vshll.u32 %v8935_v6, 16  ;;  %v3266_v23 = vsel %vm8051_vm9, %v3261_v62, %v3265_v31  ;;  %v3305_v37 = vshrl.u32 %v8940_v3, 16  ;;  %v3301_v18 = vshll.u32 %v8940_v3, 16 }
 0x2af   : > { %4627 = vmatmul.mubr.bf16.gmra.mrb[204].mxu0 %v8902_v61  ;;  %v3461_v61 = vrot.slane %v3459_v46, 4  ;;  %v3284_v46 = vor.u32 %v3283_v11, %v8933_v59  ;;  %v3274_v19 = vor.u32 %v3273_v24, %v3270_v7  ;;  %v3256_v62 = vsel %vm8051_vm9, %v3251_v50, %v8888_v35 }
 0x2b0   : > { %4634 = vmatprep.mubr.bf16.mxu0 %v8895_v36  ;;  %v8971_v11 = vcombine.low %v8927_v56, %v8940_v3  ;;  %v3466_v24 = vrot.slane %v8899_v0, 5  ;;  %v8974_v7 = vcombine.low %v3256_v62, %v3266_v23  ;;  %v3307_v25 = vrot.slane %v3305_v37, 4 }
 0x2b1   : > { %v3463_v9 = vsel %vm8076_vm12, %v3461_v61, %v3462_v17  ;;  %v3287_v61 = vshll.u32 %v8931_v8, 16  ;;  %v3492_v17 = vshrl.u32 %v8946_v1, 16  ;;  %v3285_v30 = vrot.slane %v3284_v46, 4 }
 0x2b2   : > { %4466 = vmatmul.mubr.bf16.gmra.mrb[172].mxu1 %v8837_v60  ;;  %v8967_v31 = vcombine.low %v3460_v34, %v3463_v9  ;;  %v3484_v60 = vrot.slane %v3482_v10, 5  ;;  %v3488_v35 = vshll.u32 %v8946_v1, 16  ;;  %v3275_v50 = vrot.slane %v3274_v19, 4  ;;  %v2921_v19 = vld [vmem:[#allocation2 + $0xbc] sm:$0x1] }
 0x2b3   : > { %4473 = vmatprep.mubr.bf16.mxu1 %v8929_v16  ;;  %v8961_v16 = vadd.f32 %v6086_v38, %v6085_v58  ;;  %v2924_v58 = vld [vmem:[#allocation2 + $0xc8] sm:$0x1]  ;;  %v3481_v38 = vrot.slane %v3479_v20, 4  ;;  %v3289_v34 = vrot.slane %v3287_v61, 5  ;;  %v3494_v47 = vrot.slane %v3492_v17, 4 }
 0x2b4   : > { %v3468_v0 = vrot.slane %v3466_v24, 4  ;;  %v3294_v23 = vrot.slane %v3292_v41, 4  ;;  %v3297_v62 = vrot.slane %v3295_v15, 5  ;;  %v5430_v10 = vrot.slane %v8935_v6, 9 }
 0x2b5   : > { %9557 = vst [vmem:[#allocation19_spill] sm:$0xff] %v8961_v16  ;;  %v3303_v16 = vrot.slane %v3301_v18, 5  ;;  %v3485_v9 = vor.u32 %v3484_v60, %v3481_v38  ;;  %v3507_v37 = vrot.slane %v8946_v1, 5  ;;  %v3290_v46 = vsel %vm8051_vm9, %v3285_v30, %v3289_v34 }
 0x2b6   : > { %v3469_v18 = vrot.slane %v8931_v8, 5  ;;  %v3510_v38 = vrot.slane %v2924_v58, 5  ;;  %v3280_v30 = vsel %vm8051_vm9, %v3275_v50, %v8933_v59  ;;  %v5428_v8 = vrot.slane %v8897_v52, 9 }
 0x2b7   : > { %4635 = vmatmul.mubr.bf16.gmra.mrb[208].mxu0 %v8938_v14  ;;  %v8976_v14 = vadd.f32 %v6089_v63, %v6088_v26  ;;  %v3490_v26 = vrot.slane %v3488_v35, 5  ;;  %v3498_v63 = vshll.u32 %v2924_v58, 16  ;;  %v3486_v20 = vrot.slane %v3485_v9, 4 }
 0x2b8   : > { %4642 = vmatprep.mubr.bf16.mxu0 %v8924_v57  ;;  %v3308_v60 = vor.u32 %v3307_v25, %v3303_v16  ;;  %v3508_v15 = vsel %vm8076_vm12, %v5430_v10, %v3507_v37  ;;  %v3509_v17 = vrot.slane %v3507_v37, 4  ;;  %v3470_v35 = vsel %vm8076_vm12, %v3468_v0, %v3469_v18 }
 0x2b9   : > { %v3495_v61 = vor.u32 %v3494_v47, %v3490_v26  ;;  %v3491_v41 = vsel %vm8051_vm9, %v3486_v20, %v3490_v26  ;;  %v3500_v47 = vrot.slane %v3498_v63, 5  ;;  %v3298_v34 = vor.u32 %v3297_v62, %v3294_v23 }
 0x2ba   : > { %4474 = vmatmul.mubr.bf16.gmra.mrb[176].mxu1 %v8869_v40  ;;  %v3311_v9 = vshll.u32 %v2921_v19, 16  ;;  %v3511_v26 = vsel %vm8076_vm12, %v3509_v17, %v3510_v38  ;;  %v9000_v20 = vcombine.low %v3280_v30, %v3290_v46  ;;  %v3473_v58 = vrot.slane %v8940_v3, 5 }
 0x2bb   : > { %4481 = vmatprep.mubr.bf16.mxu1 %v8974_v7  ;;  %v3496_v25 = vrot.slane %v3495_v61, 4  ;;  %v9005_v59 = vcombine.low %v3508_v15, %v3511_v26  ;;  %v3309_v52 = vrot.slane %v3308_v60, 4  ;;  %v3467_v0 = vsel %vm8076_vm12, %v5428_v8, %v3466_v24 }
 0x2bc   : > { %v9013_v23 = vcombine.low %v3467_v0, %v3470_v35  ;;  %v3299_v63 = vrot.slane %v3298_v34, 4  ;;  %v3313_v62 = vrot.slane %v3311_v9, 5  ;;  %v9017_v3 = vcombine.low %v8935_v6, %v8946_v1  ;;  %v6835_v35 = vld [vmem:[%s9496_s4 + $0x210] sm:$0xff]  }
 0x2bd   : > { %v3501_v10 = vsel %vm8051_vm9, %v3496_v25, %v3500_v47  ;;  %v3475_v37 = vrot.slane %v3473_v58, 4  ;;  %v3476_v18 = vrot.slane %v2921_v19, 5  ;;  %v5429_v61 = vrot.slane %v8927_v56, 9  ;;  %v9042_v56 = vld [vmem:[#allocation2 + $0xd0] sm:$0xf] }
 0x2be   : > { %v9008_v50 = vcombine.low %v3491_v41, %v3501_v10  ;;  %v3314_v46 = vsel %vm8051_vm9, %v3309_v52, %v3313_v62  ;;  %v3304_v24 = vsel %vm8051_vm9, %v3299_v63, %v3303_v16  ;;  %v9040_v16 = vld [vmem:[#allocation2 + $0xcc] sm:$0xf]  ;;  %v9044_v19 = vld [vmem:[#allocation2 + $0xd4] sm:$0x1]  ;;  %v3541_v17 = vrot.slane %v9042_v56, 5  ;;  %v9562_v63 = vld [vmem:[#allocation7_spill] sm:$0xff] }
 0x2bf   : > { %4643 = vmatmul.mubr.bf16.gmra.mrb[212].mxu0 %v8967_v31  ;;  %v9025_v60 = vcombine.low %v3304_v24, %v3314_v46  ;;  %v3477_v6 = vsel %vm8076_vm12, %v3475_v37, %v3476_v18  ;;  %v3474_v1 = vsel %vm8076_vm12, %v5429_v61, %v3473_v58  ;;  %v5431_v15 = vrot.slane %v9040_v16, 9  ;;  %v9561_v58 = vld [vmem:[#allocation8_spill] sm:$0xff]  ;;  %v9563_v37 = vld [vmem:[#allocation13_spill] sm:$0xff]  ;;  %v9567_v18 = vld [vmem:[#allocation14_spill] sm:$0xff] }
 0x2c0   : > { %4650 = vmatprep.mubr.bf16.mxu0 %v8971_v11  ;;  %v9034_v41 = vcombine.low %v3474_v1, %v3477_v6  ;;  %v3544_v38 = vrot.slane %v9044_v19, 5  ;;  %v3543_v8 = vrot.slane %v3541_v17, 4  ;;  %v9565_v46 = vld [vmem:[#allocation9_spill] sm:$0xff] }
 0x2c1   : > { %v9052_v30 = vsel %vm8076_vm12, %v5431_v15, %v3541_v17 }
 0x2c2   : > { %4482 = vmatmul.mubr.bf16.gmra.mrb[180].mxu1 %v8895_v36  ;;  %v9060_v25 = vsel %vm8076_vm12, %v3543_v8, %v3544_v38  ;;  %v9568_v38 = vld [vmem:[#allocation12_spill] sm:$0xff] }
 0x2c3   : > { %4489 = vmatprep.mubr.bf16.mxu1 %v9000_v20  ;;  %v5485_v47 = vcombine.low %v9052_v30, %v9060_v25 }
 0x2c7   : > { %4651 = vmatmul.mubr.bf16.gmra.mrb[216].mxu0 %v9013_v23 }
 0x2c8   : > { %4658 = vmatprep.mubr.bf16.mxu0 %v9017_v3 }
 0x2ca   : > { %4490 = vmatmul.mubr.bf16.gmra.mrb[184].mxu1 %v8924_v57 }
 0x2cb   : > { %4497 = vmatprep.mubr.bf16.mxu1 %v9025_v60 }
 0x2cf   : > { %4659 = vmatmul.mubr.bf16.gmra.mrb[220].mxu0 %v9034_v41 }
 0x2d0   : > { %4860 = vmatprep.mubr.bf16.mxu0 %v8512_v49 }
 0x2d2   : > { %4498 = vmatmul.mubr.bf16.gmra.mrb[188].mxu1 %v8971_v11 }
 0x2d3   : > { %4699 = vmatprep.mubr.bf16.mxu1 %v8472_v43  ;;  %v6834_v43 = vld [vmem:[%s9496_s4 + $0x208] sm:$0xff]  }
 0x2d7   : > { %4861 = vmatmul.mubr.bf16.vlgmr.msra.gmra.mrb[224].mxu0 %v8352_v33  ;;  %v6842_v33 = vld [vmem:[%s9496_s4 + $0x200] sm:$0xff]  }
 0x2d8   : > { %4868 = vmatprep.mubr.bf16.mxu0 %v8586_v39 }
 0x2da   : > { %4700 = vmatmul.mubr.bf16.vlgmr.msra.gmra.mrb[192].mxu1 %v8452_v51  ;;  %v6837_v51 = vld [vmem:[%s9496_s4 + $0x220] sm:$0xff]  }
 0x2db   : > { %4707 = vmatprep.mubr.bf16.mxu1 %v8547_v21  ;;  %6590 = vmatpush3.bf16.msra.mxu1 %v6842_v33  ;;  %v9569_v33 = vld [vmem:[#allocation17_spill] sm:$0xff] }
 0x2dc   : > { %6591 = vmatprep.subr.bf16.mxu1 %v6834_v43 }
 0x2df   : > { %4869 = vmatmul.mubr.bf16.gmra.mrb[228].mxu0 %v8457_v28  ;;  %6592 = vmatpush3.bf16.msra.mxu1 %v6834_v43  ;;  %v6838_v28 = vld [vmem:[%s9496_s4 + $0x228] sm:$0xff]  }
 0x2e0   : > { %4876 = vmatprep.mubr.bf16.mxu0 %v8646_v48  ;;  %6593 = vmatprep.subr.bf16.mxu1 %v6835_v35 }
 0x2e2   : > { %4708 = vmatmul.mubr.bf16.gmra.mrb[196].mxu1 %v8512_v49  ;;  %v6839_v49 = vld [vmem:[%s9496_s4 + $0x230] sm:$0xff]  }
 0x2e3   : > { %4715 = vmatprep.mubr.bf16.mxu1 %v8611_v55  ;;  %6594 = vmatpush3.bf16.msra.mxu1 %v6835_v35 }
 0x2e4   : > { %6595 = vmatprep.subr.bf16.mxu1 %v6836_v44 }
 0x2e7   : > { %4877 = vmatmul.mubr.bf16.gmra.mrb[232].mxu0 %v8553_v42  ;;  %6596 = vmatpush3.bf16.msra.mxu1 %v6836_v44  ;;  %v6840_v42 = vld [vmem:[%s9496_s4 + $0x238] sm:$0xff]  }
 0x2e8   : > { %4884 = vmatprep.mubr.bf16.mxu0 %v8715_v13  ;;  %6597 = vmatprep.subr.bf16.mxu1 %v6837_v51 }
 0x2ea   : > { %4716 = vmatmul.mubr.bf16.gmra.mrb[200].mxu1 %v8586_v39  ;;  %v9110_v39 = vld [vmem:[%s9497_s5] ss:$0 sm:$0xff] }
 0x2eb   : > { %4723 = vmatprep.mubr.bf16.mxu1 %v8660_v53  ;;  %6598 = vmatpush3.bf16.msra.mxu1 %v6837_v51 }
 0x2ec   : > { %6599 = vmatprep.subr.bf16.mxu1 %v6838_v28 }
 0x2ef   : > { %4885 = vmatmul.mubr.bf16.gmra.mrb[236].mxu0 %v8616_v5  ;;  %6600 = vmatpush3.bf16.msra.mxu1 %v6838_v28  ;;  %v9558_v5 = vld [vmem:[#allocation6_spill] sm:$0xff] }
 0x2f0   : > { %4892 = vmatprep.mubr.bf16.mxu0 %v8732_v27  ;;  %6601 = vmatprep.subr.bf16.mxu1 %v6839_v49 }
 0x2f2   : > { %4724 = vmatmul.mubr.bf16.gmra.mrb[204].mxu1 %v8646_v48  ;;  %v9559_v48 = vld [vmem:[#allocation10_spill] sm:$0xff] }
 0x2f3   : > { %4731 = vmatprep.mubr.bf16.mxu1 %v8699_v12  ;;  %6602 = vmatpush3.bf16.msra.mxu1 %v6839_v49 }
 0x2f4   : > { %6603 = vmatprep.subr.bf16.mxu1 %v6840_v42 }
 0x2f7   : > { %4893 = vmatmul.mubr.bf16.gmra.mrb[240].mxu0 %v8674_v32  ;;  %6604 = vmatpush3.bf16.msra.mxu1 %v6840_v42  ;;  %v9560_v32 = vld [vmem:[#allocation19_spill] sm:$0xff] }
 0x2f8   : > { %4900 = vmatprep.mubr.bf16.mxu0 %v8761_v22 }
 0x2fa   : > { %4732 = vmatmul.mubr.bf16.gmra.mrb[208].mxu1 %v8715_v13  ;;  %v4380_v13 = vadd.f32 %v9560_v32, %v9110_v39 }
 0x2fb   : > { %4739 = vmatprep.mubr.bf16.mxu1 %v8735_v29 }
 0x2ff   : > { %4901 = vmatmul.mubr.bf16.gmra.mrb[244].mxu0 %v8706_v2 }
 0x300   : > { %4908 = vmatprep.mubr.bf16.mxu0 %v8792_v4 }
 0x302   : > { %4740 = vmatmul.mubr.bf16.gmra.mrb[212].mxu1 %v8732_v27  ;;  %v4383_v27 = vadd.f32 %v8976_v14, %v9110_v39  ;;  %v9566_v14 = vld [vmem:[#allocation15_spill] sm:$0xff] }
 0x303   : > { %4747 = vmatprep.mubr.bf16.mxu1 %v8775_v54 }
 0x306   : > { %v6197_v34 = vpop.f32.mrb[160].mxu0 }
 0x307   : > { %4909 = vmatmul.mubr.bf16.gmra.mrb[248].mxu0 %v9558_v5  ;;  %v6198_v2 = vpop.f32.mrb[161].mxu0  ;;  %v9570_v5 = vld [vmem:[#allocation16_spill] sm:$0xff] }
 0x308   : > { %4916 = vmatprep.mubr.bf16.mxu0 %v9559_v48  ;;  %v6199_v9 = vadd.f32 %v6198_v2, %v6197_v34  ;;  %v6200_v26 = vpop.f32.mrb[162].mxu0 }
 0x309   : > { %v6201_v10 = vpop.f32.mrb[163].mxu0 }
 0x30a   : > { %4748 = vmatmul.mubr.bf16.gmra.mrb[216].mxu1 %v8761_v22  ;;  %v9120_v52 = vadd.f32 %v6199_v9, %v4380_v13  ;;  %v6202_v0 = vadd.f32 %v6201_v10, %v6200_v26  ;;  %v9564_v22 = vld [vmem:[#allocation11_spill] sm:$0xff] }
 0x30b   : > { %4755 = vmatprep.mubr.bf16.mxu1 %v9561_v58 }
 0x30c   : > { %v9123_v62 = vadd.f32 %v6202_v0, %v4383_v27  ;;  %v9571_v0 = vld [vmem:[#allocation18_spill] sm:$0xff] }
 0x30f   : > { %4917 = vmatmul.mubr.bf16.gmra.mrb[252].mxu0 %v9562_v63 }
 0x310   : > { %4924 = vmatprep.mubr.bf16.mxu0 %v9563_v37 }
 0x312   : > { %4756 = vmatmul.mubr.bf16.gmra.mrb[220].mxu1 %v8792_v4 }
 0x313   : > { %4763 = vmatprep.mubr.bf16.mxu1 %v9564_v22 }
 0x317   : > { %4925 = vmatmul.mubr.bf16.gmra.mrb[0].mxu0 %v9565_v46 }
 0x318   : > { %4932 = vmatprep.mubr.bf16.mxu0 %v9566_v14 }
 0x31a   : > { %4764 = vmatmul.mubr.bf16.gmra.mrb[224].mxu1 %v9559_v48 }
 0x31b   : > { %4771 = vmatprep.mubr.bf16.mxu1 %v9567_v18  ;;  %v6091_v24 = vpop.f32.mrb[132].mxu1 }
 0x31c   : > { %v6203_v61 = vpop.f32.mrb[164].mxu0  ;;  %v6092_v6 = vpop.f32.mrb[133].mxu1 }
 0x31d   : > { %v6204_v1 = vpop.f32.mrb[165].mxu0  ;;  %v6093_v15 = vadd.f32 %v6092_v6, %v6091_v24  ;;  %v6094_v17 = vpop.f32.mrb[134].mxu1 }
 0x31e   : > { %v6205_v8 = vadd.f32 %v6204_v1, %v6203_v61  ;;  %v6206_v4 = vpop.f32.mrb[166].mxu0  ;;  %v6095_v43 = vpop.f32.mrb[135].mxu1  ;;  %v3516_v1 = vshll.u32 %v9040_v16, 16 }
 0x31f   : > { %4933 = vmatmul.mubr.bf16.gmra.mrb[4].mxu0 %v9568_v38  ;;  %v4388_v35 = vadd.f32 %v6093_v15, %v9110_v39  ;;  %v6207_v44 = vpop.f32.mrb[167].mxu0  ;;  %v6096_v51 = vadd.f32 %v6095_v43, %v6094_v17  ;;  %v3522_v15 = vshll.u32 %v9042_v56, 16  ;;  %v3526_v17 = vshrl.u32 %v9042_v56, 16 }
 0x320   : > { %4940 = vmatprep.mubr.bf16.mxu0 %v9569_v33  ;;  %v6208_v28 = vadd.f32 %v6207_v44, %v6206_v4 }
 0x321   : > { %v4391_v49 = vadd.f32 %v6096_v51, %v9110_v39  ;;  %v9136_v42 = vadd.f32 %v6205_v8, %v4388_v35  ;;  %v3518_v8 = vrot.slane %v3516_v1, 5  ;;  %v3524_v4 = vrot.slane %v3522_v15, 5 }
 0x322   : > { %4772 = vmatmul.mubr.bf16.gmra.mrb[228].mxu1 %v9563_v37  ;;  %v3528_v43 = vrot.slane %v3526_v17, 4 }
 0x323   : > { %4779 = vmatprep.mubr.bf16.mxu1 %v9570_v5  ;;  %v9140_v48 = vadd.f32 %v6208_v28, %v4391_v49  ;;  %v3532_v49 = vshll.u32 %v9044_v19, 16 }
 0x326   : > { %v6097_v32 = vpop.f32.mrb[136].mxu1 }
 0x327   : > { %4941 = vmatmul.mubr.bf16.gmra.mrb[8].mxu0 %v8869_v40  ;;  %v6098_v13 = vpop.f32.mrb[137].mxu1 }
 0x328   : > { %4948 = vmatprep.mubr.bf16.mxu0 %v8974_v7  ;;  %v6099_v34 = vadd.f32 %v6098_v13, %v6097_v32  ;;  %v6100_v2 = vpop.f32.mrb[138].mxu1 }
 0x329   : > { %v6101_v27 = vpop.f32.mrb[139].mxu1  ;;  %v6209_v26 = vpop.f32.mrb[168].mxu0 }
 0x32a   : > { %v6102_v9 = vadd.f32 %v6101_v27, %v6100_v2  ;;  %4780 = vmatmul.mubr.bf16.gmra.mrb[232].mxu1 %v9566_v14  ;;  %v4396_v10 = vadd.f32 %v6099_v34, %v9110_v39  ;;  %v6210_v63 = vpop.f32.mrb[169].mxu0  ;;  %v3513_v14 = vshrl.u32 %v9040_v16, 16  ;;  %v3529_v34 = vor.u32 %v3528_v43, %v3524_v4 }
 0x32b   : > { %4787 = vmatprep.mubr.bf16.mxu1 %v9571_v0  ;;  %v6211_v37 = vadd.f32 %v6210_v63, %v6209_v26  ;;  %v6212_v46 = vpop.f32.mrb[170].mxu0 }
 0x32c   : > { %v4399_v24 = vadd.f32 %v6102_v9, %v9110_v39  ;;  %v6213_v40 = vpop.f32.mrb[171].mxu0 }
 0x32d   : > { %v6214_v61 = vadd.f32 %v6213_v40, %v6212_v46  ;;  %v9149_v6 = vadd.f32 %v6211_v37, %v4396_v10  ;;  %v3530_v46 = vrot.slane %v3529_v34, 4 }
 0x32f   : > { %4949 = vmatmul.mubr.bf16.gmra.mrb[12].mxu0 %v8895_v36  ;;  %v9156_v38 = vadd.f32 %v6214_v61, %v4399_v24  ;;  %v3515_v36 = vrot.slane %v3513_v14, 4 }
 0x330   : > { %4956 = vmatprep.mubr.bf16.mxu0 %v9000_v20 }
 0x331   : > { %v3519_v13 = vor.u32 %v3518_v8, %v3515_v36 }
 0x332   : > { %4788 = vmatmul.mubr.bf16.gmra.mrb[236].mxu1 %v9569_v33 }
 0x333   : > { %4795 = vmatprep.mubr.bf16.mxu1 %v8967_v31  ;;  %v3520_v37 = vrot.slane %v3519_v13, 4 }
 0x336   : > { %v6103_v35 = vpop.f32.mrb[140].mxu1 }
 0x337   : > { %4957 = vmatmul.mubr.bf16.gmra.mrb[16].mxu0 %v8924_v57  ;;  %v6104_v44 = vpop.f32.mrb[141].mxu1  ;;  %v3534_v57 = vrot.slane %v3532_v49, 5 }
 0x338   : > { %4964 = vmatprep.mubr.bf16.mxu0 %v9025_v60  ;;  %v6105_v51 = vadd.f32 %v6104_v44, %v6103_v35  ;;  %v6106_v28 = vpop.f32.mrb[142].mxu1 }
 0x339   : > { %v6107_v32 = vpop.f32.mrb[143].mxu1  ;;  %v3535_v61 = vsel %vm8051_vm9, %v3530_v46, %v3534_v57 }
 0x33a   : > { %v6108_v33 = vadd.f32 %v6107_v32, %v6106_v28  ;;  %4796 = vmatmul.mubr.bf16.gmra.mrb[240].mxu1 %v8974_v7  ;;  %v6215_v2 = vpop.f32.mrb[172].mxu0  ;;  %v4404_v27 = vadd.f32 %v6105_v51, %v9110_v39  ;;  %v3525_v7 = vsel %vm8051_vm9, %v3520_v37, %v3524_v4  ;;  %v5483_v51 = vcombine.low %v9040_v16, %v9042_v56 }
 0x33b   : > { %4803 = vmatprep.mubr.bf16.mxu1 %v9013_v23  ;;  %v6216_v9 = vpop.f32.mrb[173].mxu0  ;;  %v5484_v1 = vcombine.low %v3525_v7, %v3535_v61 }
 0x33c   : > { %v6217_v26 = vadd.f32 %v6216_v9, %v6215_v2  ;;  %v6218_v10 = vpop.f32.mrb[174].mxu0  ;;  %v4407_v63 = vadd.f32 %v6108_v33, %v9110_v39 }
 0x33d   : > { %v6219_v19 = vpop.f32.mrb[175].mxu0 }
 0x33e   : > { %v6220_v24 = vadd.f32 %v6219_v19, %v6218_v10  ;;  %v9168_v40 = vadd.f32 %v6217_v26, %v4404_v27 }
 0x33f   : > { %4965 = vmatmul.mubr.bf16.gmra.mrb[20].mxu0 %v8971_v11 }
 0x340   : > { %4972 = vmatprep.mubr.bf16.mxu0 %v9008_v50  ;;  %v9175_v14 = vadd.f32 %v6220_v24, %v4407_v63 }
 0x342   : > { %4804 = vmatmul.mubr.bf16.gmra.mrb[244].mxu1 %v9000_v20 }
 0x343   : > { %4811 = vmatprep.mubr.bf16.mxu1 %v9034_v41 }
 0x346   : > { %v6109_v15 = vpop.f32.mrb[144].mxu1 }
 0x347   : > { %4973 = vmatmul.mubr.bf16.gmra.mrb[24].mxu0 %v9017_v3  ;;  %v6110_v11 = vpop.f32.mrb[145].mxu1 }
 0x348   : > { %v6111_v17 = vadd.f32 %v6110_v11, %v6109_v15  ;;  %v6112_v36 = vpop.f32.mrb[146].mxu1  ;;  %4980 = vmatprep.mubr.bf16.mxu0 %v5484_v1  ;;  %v6221_v8 = vpop.f32.mrb[176].mxu0 }
 0x349   : > { %v6113_v43 = vpop.f32.mrb[147].mxu1  ;;  %v6222_v4 = vpop.f32.mrb[177].mxu0 }
 0x34a   : > { %v4412_v45 = vadd.f32 %v6111_v17, %v9110_v39  ;;  %v6114_v35 = vadd.f32 %v6113_v43, %v6112_v36  ;;  %4812 = vmatmul.mubr.bf16.gmra.mrb[248].mxu1 %v9025_v60  ;;  %v6223_v44 = vadd.f32 %v6222_v4, %v6221_v8  ;;  %v6224_v20 = vpop.f32.mrb[178].mxu0 }
 0x34b   : > { %4819 = vmatprep.mubr.bf16.mxu1 %v9005_v59  ;;  %v6225_v3 = vpop.f32.mrb[179].mxu0 }
 0x34c   : > { %v4415_v28 = vadd.f32 %v6114_v35, %v9110_v39  ;;  %v6226_v49 = vadd.f32 %v6225_v3, %v6224_v20  ;;  %v9186_v32 = vadd.f32 %v6223_v44, %v4412_v45 }
 0x34e   : > { %v9188_v13 = vadd.f32 %v6226_v49, %v4415_v28 }
 0x34f   : > { %4981 = vmatmul.mubr.bf16.gmra.mrb[28].mxu0 %v5483_v51 }
 0x352   : > { %v6227_v34 = vpop.f32.mrb[180].mxu0  ;;  %4820 = vmatmul.mubr.bf16.gmra.mrb[252].mxu1 %v9008_v50 }
 0x353   : > { %v6228_v60 = vpop.f32.mrb[181].mxu0  ;;  %6605 = vmatprep.mubr.bf16.mxu1 %v8547_v21 }
 0x354   : > { %v6229_v33 = vadd.f32 %v6228_v60, %v6227_v34  ;;  %v6230_v2 = vpop.f32.mrb[182].mxu0 }
 0x355   : > { %v6231_v16 = vpop.f32.mrb[183].mxu0  ;;  %v6115_v56 = vpop.f32.mrb[148].mxu1 }
 0x356   : > { %v6232_v27 = vadd.f32 %v6231_v16, %v6230_v2  ;;  %v6116_v9 = vpop.f32.mrb[149].mxu1 }
 0x357   : > { %v6117_v57 = vadd.f32 %v6116_v9, %v6115_v56  ;;  %v6118_v26 = vpop.f32.mrb[150].mxu1 }
 0x358   : > { %v6119_v10 = vpop.f32.mrb[151].mxu1 }
 0x359   : > { %v4420_v63 = vadd.f32 %v6117_v57, %v9110_v39  ;;  %v6120_v37 = vadd.f32 %v6119_v10, %v6118_v26 }
 0x35a   : > { %v6233_v46 = vpop.f32.mrb[184].mxu0  ;;  %6606 = vmatmul.mubr.bf16.vlgmr.msra.gmra.mrb[0].mxu1 %v8611_v55 }
 0x35b   : > { %v6234_v19 = vpop.f32.mrb[185].mxu0  ;;  %v4423_v50 = vadd.f32 %v6120_v37, %v9110_v39  ;;  %6609 = vmatprep.mubr.bf16.mxu1 %v8660_v53  ;;  %v9196_v7 = vadd.f32 %v6229_v33, %v4420_v63 }
 0x35c   : > { %v6235_v21 = vadd.f32 %v6234_v19, %v6233_v46  ;;  %v6236_v24 = vpop.f32.mrb[186].mxu0 }
 0x35d   : > { %v6237_v61 = vpop.f32.mrb[187].mxu0  ;;  %v6121_v1 = vpop.f32.mrb[152].mxu1  ;;  %v9198_v11 = vadd.f32 %v6232_v27, %v4423_v50 }
 0x35e   : > { %v6238_v15 = vadd.f32 %v6237_v61, %v6236_v24  ;;  %v6122_v17 = vpop.f32.mrb[153].mxu1 }
 0x35f   : > { %v6123_v36 = vadd.f32 %v6122_v17, %v6121_v1  ;;  %v6124_v8 = vpop.f32.mrb[154].mxu1 }
 0x360   : > { %v6125_v43 = vpop.f32.mrb[155].mxu1 }
 0x361   : > { %v4428_v55 = vadd.f32 %v6123_v36, %v9110_v39  ;;  %v6126_v4 = vadd.f32 %v6125_v43, %v6124_v8 }
 0x362   : > { %v6239_v45 = vpop.f32.mrb[188].mxu0  ;;  %6610 = vmatmul.mubr.bf16.gmra.mrb[4].mxu1 %v8699_v12 }
 0x363   : > { %v6240_v53 = vpop.f32.mrb[189].mxu0  ;;  %v4431_v35 = vadd.f32 %v6126_v4, %v9110_v39  ;;  %6613 = vmatprep.mubr.bf16.mxu1 %v8735_v29  ;;  %v9204_v51 = vadd.f32 %v6235_v21, %v4428_v55 }
 0x364   : > { %v6241_v44 = vadd.f32 %v6240_v53, %v6239_v45  ;;  %v6242_v20 = vpop.f32.mrb[190].mxu0 }
 0x365   : > { %v6243_v3 = vpop.f32.mrb[191].mxu0  ;;  %v6127_v28 = vpop.f32.mrb[156].mxu1  ;;  %v9206_v34 = vadd.f32 %v6238_v15, %v4431_v35 }
 0x366   : > { %v6244_v49 = vadd.f32 %v6243_v3, %v6242_v20  ;;  %v6128_v60 = vpop.f32.mrb[157].mxu1 }
 0x367   : > { %v6129_v33 = vadd.f32 %v6128_v60, %v6127_v28  ;;  %v6130_v2 = vpop.f32.mrb[158].mxu1 }
 0x368   : > { %v6131_v16 = vpop.f32.mrb[159].mxu1 }
 0x369   : > { %v4436_v12 = vadd.f32 %v6129_v33, %v9110_v39  ;;  %v6132_v56 = vadd.f32 %v6131_v16, %v6130_v2 }
 0x36a   : > { %v6245_v27 = vpop.f32.mrb[192].mxu0  ;;  %6614 = vmatmul.mubr.bf16.gmra.mrb[8].mxu1 %v8775_v54 }
 0x36b   : > { %v6246_v29 = vpop.f32.mrb[193].mxu0  ;;  %v4439_v9 = vadd.f32 %v6132_v56, %v9110_v39  ;;  %6617 = vmatprep.mubr.bf16.mxu1 %v9561_v58  ;;  %v9212_v10 = vadd.f32 %v6241_v44, %v4436_v12 }
 0x36c   : > { %v6247_v57 = vadd.f32 %v6246_v29, %v6245_v27  ;;  %v6248_v26 = vpop.f32.mrb[194].mxu0 }
 0x36d   : > { %v6249_v63 = vpop.f32.mrb[195].mxu0  ;;  %v6133_v37 = vpop.f32.mrb[160].mxu1  ;;  %v9214_v19 = vadd.f32 %v6244_v49, %v4439_v9 }
 0x36e   : > { %v6250_v46 = vadd.f32 %v6249_v63, %v6248_v26  ;;  %v6134_v50 = vpop.f32.mrb[161].mxu1 }
 0x36f   : > { %v6135_v21 = vadd.f32 %v6134_v50, %v6133_v37  ;;  %v6136_v24 = vpop.f32.mrb[162].mxu1 }
 0x370   : > { %v6137_v61 = vpop.f32.mrb[163].mxu1 }
 0x371   : > { %v4444_v54 = vadd.f32 %v6135_v21, %v9110_v39  ;;  %v6138_v1 = vadd.f32 %v6137_v61, %v6136_v24 }
 0x372   : > { %v6251_v15 = vpop.f32.mrb[196].mxu0  ;;  %6618 = vmatmul.mubr.bf16.gmra.mrb[12].mxu1 %v9564_v22 }
 0x373   : > { %v6252_v58 = vpop.f32.mrb[197].mxu0  ;;  %v4447_v17 = vadd.f32 %v6138_v1, %v9110_v39  ;;  %6621 = vmatprep.mubr.bf16.mxu1 %v9567_v18  ;;  %v9220_v43 = vadd.f32 %v6247_v57, %v4444_v54 }
 0x374   : > { %v6253_v36 = vadd.f32 %v6252_v58, %v6251_v15  ;;  %v6254_v8 = vpop.f32.mrb[198].mxu0 }
 0x375   : > { %v6255_v55 = vpop.f32.mrb[199].mxu0  ;;  %v6139_v4 = vpop.f32.mrb[164].mxu1  ;;  %v9222_v53 = vadd.f32 %v6250_v46, %v4447_v17 }
 0x376   : > { %v6256_v45 = vadd.f32 %v6255_v55, %v6254_v8  ;;  %v6140_v35 = vpop.f32.mrb[165].mxu1 }
 0x377   : > { %v6141_v44 = vadd.f32 %v6140_v35, %v6139_v4  ;;  %v6142_v20 = vpop.f32.mrb[166].mxu1 }
 0x378   : > { %v6143_v3 = vpop.f32.mrb[167].mxu1 }
 0x379   : > { %v4452_v22 = vadd.f32 %v6141_v44, %v9110_v39  ;;  %v6144_v28 = vadd.f32 %v6143_v3, %v6142_v20 }
 0x37a   : > { %v6257_v49 = vpop.f32.mrb[200].mxu0  ;;  %6622 = vmatmul.mubr.bf16.gmra.mrb[16].mxu1 %v9570_v5 }
 0x37b   : > { %v6258_v18 = vpop.f32.mrb[201].mxu0  ;;  %v4455_v60 = vadd.f32 %v6144_v28, %v9110_v39  ;;  %6625 = vmatprep.mubr.bf16.mxu1 %v9571_v0  ;;  %v9228_v16 = vadd.f32 %v6253_v36, %v4452_v22 }
 0x37c   : > { %v6259_v33 = vadd.f32 %v6258_v18, %v6257_v49  ;;  %v6260_v2 = vpop.f32.mrb[202].mxu0 }
 0x37d   : > { %v6261_v12 = vpop.f32.mrb[203].mxu0  ;;  %v6145_v56 = vpop.f32.mrb[168].mxu1  ;;  %v9230_v29 = vadd.f32 %v6256_v45, %v4455_v60 }
 0x37e   : > { %v6262_v27 = vadd.f32 %v6261_v12, %v6260_v2  ;;  %v6146_v9 = vpop.f32.mrb[169].mxu1 }
 0x37f   : > { %v6147_v57 = vadd.f32 %v6146_v9, %v6145_v56  ;;  %v6148_v26 = vpop.f32.mrb[170].mxu1 }
 0x380   : > { %v6149_v63 = vpop.f32.mrb[171].mxu1 }
 0x381   : > { %v4460_v5 = vadd.f32 %v6147_v57, %v9110_v39  ;;  %v6150_v37 = vadd.f32 %v6149_v63, %v6148_v26 }
 0x382   : > { %v6263_v46 = vpop.f32.mrb[204].mxu0  ;;  %6626 = vmatmul.mubr.bf16.gmra.mrb[20].mxu1 %v8967_v31 }
 0x383   : > { %v6264_v0 = vpop.f32.mrb[205].mxu0  ;;  %v4463_v50 = vadd.f32 %v6150_v37, %v9110_v39  ;;  %6629 = vmatprep.mubr.bf16.mxu1 %v9013_v23  ;;  %v9236_v61 = vadd.f32 %v6259_v33, %v4460_v5 }
 0x384   : > { %v6265_v21 = vadd.f32 %v6264_v0, %v6263_v46  ;;  %v6266_v24 = vpop.f32.mrb[206].mxu0 }
 0x385   : > { %v6267_v54 = vpop.f32.mrb[207].mxu0  ;;  %v6151_v1 = vpop.f32.mrb[172].mxu1  ;;  %v9238_v58 = vadd.f32 %v6262_v27, %v4463_v50 }
 0x386   : > { %v6268_v15 = vadd.f32 %v6267_v54, %v6266_v24  ;;  %v6152_v17 = vpop.f32.mrb[173].mxu1 }
 0x387   : > { %v6153_v36 = vadd.f32 %v6152_v17, %v6151_v1  ;;  %v6154_v8 = vpop.f32.mrb[174].mxu1 }
 0x388   : > { %v6155_v55 = vpop.f32.mrb[175].mxu1 }
 0x389   : > { %v4468_v31 = vadd.f32 %v6153_v36, %v9110_v39  ;;  %v6156_v4 = vadd.f32 %v6155_v55, %v6154_v8 }
 0x38a   : > { %v6269_v45 = vpop.f32.mrb[208].mxu0  ;;  %6630 = vmatmul.mubr.bf16.gmra.mrb[24].mxu1 %v9034_v41 }
 0x38b   : > { %v6270_v23 = vpop.f32.mrb[209].mxu0  ;;  %v4471_v35 = vadd.f32 %v6156_v4, %v9110_v39  ;;  %6633 = vmatprep.mubr.bf16.mxu1 %v9005_v59  ;;  %v9244_v3 = vadd.f32 %v6265_v21, %v4468_v31 }
 0x38c   : > { %v6271_v44 = vadd.f32 %v6270_v23, %v6269_v45  ;;  %v6272_v20 = vpop.f32.mrb[210].mxu0 }
 0x38d   : > { %v6273_v22 = vpop.f32.mrb[211].mxu0  ;;  %v6157_v28 = vpop.f32.mrb[176].mxu1  ;;  %v9246_v18 = vadd.f32 %v6268_v15, %v4471_v35 }
 0x38e   : > { %v6274_v49 = vadd.f32 %v6273_v22, %v6272_v20  ;;  %v6158_v60 = vpop.f32.mrb[177].mxu1 }
 0x38f   : > { %v6159_v33 = vadd.f32 %v6158_v60, %v6157_v28  ;;  %v6160_v2 = vpop.f32.mrb[178].mxu1 }
 0x390   : > { %v6161_v12 = vpop.f32.mrb[179].mxu1 }
 0x391   : > { %v4476_v41 = vadd.f32 %v6159_v33, %v9110_v39  ;;  %v6162_v56 = vadd.f32 %v6161_v12, %v6160_v2 }
 0x392   : > { %v6275_v27 = vpop.f32.mrb[212].mxu0  ;;  %6634 = vmatmul.mubr.bf16.gmra.mrb[28].mxu1 %v5485_v47 }
 0x393   : > { %v6276_v59 = vpop.f32.mrb[213].mxu0  ;;  %v4479_v9 = vadd.f32 %v6162_v56, %v9110_v39  ;;  %v9253_v63 = vadd.f32 %v6271_v44, %v4476_v41 }
 0x394   : > { %v6277_v57 = vadd.f32 %v6276_v59, %v6275_v27  ;;  %v6278_v26 = vpop.f32.mrb[214].mxu0 }
 0x395   : > { %v6279_v5 = vpop.f32.mrb[215].mxu0  ;;  %v6163_v37 = vpop.f32.mrb[180].mxu1  ;;  %v9255_v0 = vadd.f32 %v6274_v49, %v4479_v9 }
 0x396   : > { %v6280_v46 = vadd.f32 %v6279_v5, %v6278_v26  ;;  %v6164_v50 = vpop.f32.mrb[181].mxu1 }
 0x397   : > { %v6165_v21 = vadd.f32 %v6164_v50, %v6163_v37  ;;  %v6166_v24 = vpop.f32.mrb[182].mxu1 }
 0x398   : > { %v6167_v54 = vpop.f32.mrb[183].mxu1 }
 0x399   : > { %v4484_v1 = vadd.f32 %v6165_v21, %v9110_v39  ;;  %v6168_v30 = vadd.f32 %v6167_v54, %v6166_v24 }
 0x39a   : > { %v6281_v25 = vpop.f32.mrb[216].mxu0 }
 0x39b   : > { %v6282_v47 = vpop.f32.mrb[217].mxu0  ;;  %v4487_v15 = vadd.f32 %v6168_v30, %v9110_v39  ;;  %v9259_v8 = vadd.f32 %v6277_v57, %v4484_v1 }
 0x39c   : > { %v6283_v17 = vadd.f32 %v6282_v47, %v6281_v25  ;;  %v6284_v36 = vpop.f32.mrb[218].mxu0 }
 0x39d   : > { %v6285_v55 = vpop.f32.mrb[219].mxu0  ;;  %v6169_v31 = vpop.f32.mrb[184].mxu1  ;;  %v9261_v45 = vadd.f32 %v6280_v46, %v4487_v15 }
 0x39e   : > { %v6286_v4 = vadd.f32 %v6285_v55, %v6284_v36  ;;  %v6170_v23 = vpop.f32.mrb[185].mxu1 }
 0x39f   : > { %v6171_v35 = vadd.f32 %v6170_v23, %v6169_v31  ;;  %v6172_v44 = vpop.f32.mrb[186].mxu1 }
 0x3a0   : > { %v6173_v20 = vpop.f32.mrb[187].mxu1 }
 0x3a1   : > { %v4492_v22 = vadd.f32 %v6171_v35, %v9110_v39  ;;  %v6174_v28 = vadd.f32 %v6173_v20, %v6172_v44 }
 0x3a2   : > { %v6287_v49 = vpop.f32.mrb[220].mxu0 }
 0x3a3   : > { %v6288_v60 = vpop.f32.mrb[221].mxu0  ;;  %v4495_v33 = vadd.f32 %v6174_v28, %v9110_v39  ;;  %v9265_v41 = vadd.f32 %v6283_v17, %v4492_v22 }
 0x3a4   : > { %v6289_v2 = vadd.f32 %v6288_v60, %v6287_v49  ;;  %v6290_v12 = vpop.f32.mrb[222].mxu0 }
 0x3a5   : > { %v6291_v56 = vpop.f32.mrb[223].mxu0  ;;  %v6175_v27 = vpop.f32.mrb[188].mxu1  ;;  %v9267_v9 = vadd.f32 %v6286_v4, %v4495_v33 }
 0x3a6   : > { %v6292_v59 = vadd.f32 %v6291_v56, %v6290_v12  ;;  %v6176_v57 = vpop.f32.mrb[189].mxu1 }
 0x3a7   : > { %v6177_v26 = vadd.f32 %v6176_v57, %v6175_v27  ;;  %v6178_v5 = vpop.f32.mrb[190].mxu1 }
 0x3a8   : > { %v6179_v37 = vpop.f32.mrb[191].mxu1 }
 0x3a9   : > { %v4500_v46 = vadd.f32 %v6177_v26, %v9110_v39  ;;  %v6180_v50 = vadd.f32 %v6179_v37, %v6178_v5 }
 0x3aa   : > { %v6421_v21 = vpop.f32.mrb[224].mxu0 }
 0x3ab   : > { %v6422_v24 = vpop.f32.mrb[225].mxu0  ;;  %v4503_v54 = vadd.f32 %v6180_v50, %v9110_v39  ;;  %v9271_v25 = vadd.f32 %v6289_v2, %v4500_v46 }
 0x3ac   : > { %v6423_v1 = vadd.f32 %v6422_v24, %v6421_v21  ;;  %v6424_v30 = vpop.f32.mrb[226].mxu0 }
 0x3ad   : > { %v6425_v47 = vpop.f32.mrb[227].mxu0  ;;  %v6309_v15 = vpop.f32.mrb[192].mxu1  ;;  %v9273_v36 = vadd.f32 %v6292_v59, %v4503_v54 }
 0x3ae   : > { %v6426_v17 = vadd.f32 %v6425_v47, %v6424_v30  ;;  %v6310_v55 = vpop.f32.mrb[193].mxu1 }
 0x3af   : > { %v6311_v31 = vadd.f32 %v6310_v55, %v6309_v15  ;;  %v6312_v4 = vpop.f32.mrb[194].mxu1 }
 0x3b0   : > { %v6313_v23 = vpop.f32.mrb[195].mxu1 }
 0x3b1   : > { %v4702_v35 = vadd.f32 %v6311_v31, %v9120_v52  ;;  %v6314_v44 = vadd.f32 %v6313_v23, %v6312_v4 }
 0x3b2   : > { %v6427_v20 = vpop.f32.mrb[228].mxu0 }
 0x3b3   : > { %v6428_v22 = vpop.f32.mrb[229].mxu0  ;;  %v4705_v39 = vadd.f32 %v6314_v44, %v9123_v62  ;;  %v9277_v60 = vadd.f32 %v6423_v1, %v4702_v35 }
 0x3b4   : > { %v6429_v28 = vadd.f32 %v6428_v22, %v6427_v20  ;;  %v6430_v49 = vpop.f32.mrb[230].mxu0 }
 0x3b5   : > { %v6431_v33 = vpop.f32.mrb[231].mxu0  ;;  %v6315_v2 = vpop.f32.mrb[196].mxu1  ;;  %v9279_v56 = vadd.f32 %v6426_v17, %v4705_v39 }
 0x3b6   : > { %v6432_v12 = vadd.f32 %v6431_v33, %v6430_v49  ;;  %v6316_v27 = vpop.f32.mrb[197].mxu1 }
 0x3b7   : > { %v6317_v59 = vadd.f32 %v6316_v27, %v6315_v2  ;;  %v6318_v57 = vpop.f32.mrb[198].mxu1 }
 0x3b8   : > { %v6319_v26 = vpop.f32.mrb[199].mxu1 }
 0x3b9   : > { %v4710_v52 = vadd.f32 %v6317_v59, %v9136_v42  ;;  %v6320_v5 = vadd.f32 %v6319_v26, %v6318_v57 }
 0x3ba   : > { %v6433_v37 = vpop.f32.mrb[232].mxu0 }
 0x3bb   : > { %v6434_v46 = vpop.f32.mrb[233].mxu0  ;;  %v4713_v62 = vadd.f32 %v6320_v5, %v9140_v48  ;;  %v9283_v24 = vadd.f32 %v6429_v28, %v4710_v52 }
 0x3bc   : > { %v6435_v50 = vadd.f32 %v6434_v46, %v6433_v37  ;;  %v6436_v21 = vpop.f32.mrb[234].mxu0 }
 0x3bd   : > { %v6437_v54 = vpop.f32.mrb[235].mxu0  ;;  %v6321_v1 = vpop.f32.mrb[200].mxu1  ;;  %v9285_v47 = vadd.f32 %v6432_v12, %v4713_v62 }
 0x3be   : > { %v6438_v30 = vadd.f32 %v6437_v54, %v6436_v21  ;;  %v6322_v15 = vpop.f32.mrb[201].mxu1 }
 0x3bf   : > { %v6323_v17 = vadd.f32 %v6322_v15, %v6321_v1  ;;  %v6324_v55 = vpop.f32.mrb[202].mxu1 }
 0x3c0   : > { %v6325_v31 = vpop.f32.mrb[203].mxu1 }
 0x3c1   : > { %v4718_v42 = vadd.f32 %v6323_v17, %v9149_v6  ;;  %v6326_v4 = vadd.f32 %v6325_v31, %v6324_v55 }
 0x3c2   : > { %v6439_v23 = vpop.f32.mrb[236].mxu0 }
 0x3c3   : > { %v6440_v35 = vpop.f32.mrb[237].mxu0  ;;  %v4721_v48 = vadd.f32 %v6326_v4, %v9156_v38  ;;  %v9289_v22 = vadd.f32 %v6435_v50, %v4718_v42 }
 0x3c4   : > { %v6441_v44 = vadd.f32 %v6440_v35, %v6439_v23  ;;  %v6442_v20 = vpop.f32.mrb[238].mxu0 }
 0x3c5   : > { %v6443_v39 = vpop.f32.mrb[239].mxu0  ;;  %v6327_v28 = vpop.f32.mrb[204].mxu1  ;;  %v9291_v33 = vadd.f32 %v6438_v30, %v4721_v48 }
 0x3c6   : > { %v6444_v49 = vadd.f32 %v6443_v39, %v6442_v20  ;;  %v6328_v2 = vpop.f32.mrb[205].mxu1 }
 0x3c7   : > { %v6329_v12 = vadd.f32 %v6328_v2, %v6327_v28  ;;  %v6330_v27 = vpop.f32.mrb[206].mxu1 }
 0x3c8   : > { %v6331_v59 = vpop.f32.mrb[207].mxu1 }
 0x3c9   : > { %v4726_v6 = vadd.f32 %v6329_v12, %v9168_v40  ;;  %v6332_v57 = vadd.f32 %v6331_v59, %v6330_v27 }
 0x3ca   : > { %v6445_v26 = vpop.f32.mrb[240].mxu0 }
 0x3cb   : > { %v6446_v52 = vpop.f32.mrb[241].mxu0  ;;  %v4729_v38 = vadd.f32 %v6332_v57, %v9175_v14  ;;  %v9295_v46 = vadd.f32 %v6441_v44, %v4726_v6 }
 0x3cc   : > { %v6447_v5 = vadd.f32 %v6446_v52, %v6445_v26  ;;  %v6448_v37 = vpop.f32.mrb[242].mxu0 }
 0x3cd   : > { %v6449_v62 = vpop.f32.mrb[243].mxu0  ;;  %v6333_v50 = vpop.f32.mrb[208].mxu1  ;;  %v9297_v54 = vadd.f32 %v6444_v49, %v4729_v38 }
 0x3ce   : > { %v6450_v21 = vadd.f32 %v6449_v62, %v6448_v37  ;;  %v6334_v1 = vpop.f32.mrb[209].mxu1 }
 0x3cf   : > { %v6335_v30 = vadd.f32 %v6334_v1, %v6333_v50  ;;  %v6336_v15 = vpop.f32.mrb[210].mxu1 }
 0x3d0   : > { %v6337_v17 = vpop.f32.mrb[211].mxu1 }
 0x3d1   : > { %v4734_v40 = vadd.f32 %v6335_v30, %v9186_v32  ;;  %v6338_v55 = vadd.f32 %v6337_v17, %v6336_v15 }
 0x3d2   : > { %v6451_v31 = vpop.f32.mrb[244].mxu0 }
 0x3d3   : > { %v6452_v42 = vpop.f32.mrb[245].mxu0  ;;  %v4737_v14 = vadd.f32 %v6338_v55, %v9188_v13  ;;  %v9301_v35 = vadd.f32 %v6447_v5, %v4734_v40 }
 0x3d4   : > { %v6453_v4 = vadd.f32 %v6452_v42, %v6451_v31  ;;  %v6454_v23 = vpop.f32.mrb[246].mxu0 }
 0x3d5   : > { %v6455_v48 = vpop.f32.mrb[247].mxu0  ;;  %v6339_v44 = vpop.f32.mrb[212].mxu1  ;;  %v9303_v39 = vadd.f32 %v6450_v21, %v4737_v14 }
 0x3d6   : > { %v6456_v20 = vadd.f32 %v6455_v48, %v6454_v23  ;;  %v6340_v28 = vpop.f32.mrb[213].mxu1 }
 0x3d7   : > { %v6341_v49 = vadd.f32 %v6340_v28, %v6339_v44  ;;  %v6342_v2 = vpop.f32.mrb[214].mxu1 }
 0x3d8   : > { %v6343_v12 = vpop.f32.mrb[215].mxu1 }
 0x3d9   : > { %v4742_v32 = vadd.f32 %v6341_v49, %v9196_v7  ;;  %v6344_v27 = vadd.f32 %v6343_v12, %v6342_v2 }
 0x3da   : > { %v6457_v59 = vpop.f32.mrb[248].mxu0 }
 0x3db   : > { %v6458_v6 = vpop.f32.mrb[249].mxu0  ;;  %v4745_v13 = vadd.f32 %v6344_v27, %v9198_v11  ;;  %v9307_v52 = vadd.f32 %v6453_v4, %v4742_v32 }
 0x3dc   : > { %v6459_v57 = vadd.f32 %v6458_v6, %v6457_v59  ;;  %v6460_v26 = vpop.f32.mrb[250].mxu0 }
 0x3dd   : > { %v6461_v38 = vpop.f32.mrb[251].mxu0  ;;  %v6345_v5 = vpop.f32.mrb[216].mxu1  ;;  %v9309_v62 = vadd.f32 %v6456_v20, %v4745_v13 }
 0x3de   : > { %v6462_v37 = vadd.f32 %v6461_v38, %v6460_v26  ;;  %v6346_v50 = vpop.f32.mrb[217].mxu1 }
 0x3df   : > { %v6347_v21 = vadd.f32 %v6346_v50, %v6345_v5  ;;  %v6348_v1 = vpop.f32.mrb[218].mxu1 }
 0x3e0   : > { %v6349_v30 = vpop.f32.mrb[219].mxu1 }
 0x3e1   : > { %v4750_v7 = vadd.f32 %v6347_v21, %v9204_v51  ;;  %v6350_v15 = vadd.f32 %v6349_v30, %v6348_v1 }
 0x3e2   : > { %v6463_v17 = vpop.f32.mrb[252].mxu0 }
 0x3e3   : > { %v6464_v40 = vpop.f32.mrb[253].mxu0  ;;  %v4753_v11 = vadd.f32 %v6350_v15, %v9206_v34  ;;  %v9313_v42 = vadd.f32 %v6459_v57, %v4750_v7 }
 0x3e4   : > { %v6465_v55 = vadd.f32 %v6464_v40, %v6463_v17  ;;  %v6466_v31 = vpop.f32.mrb[254].mxu0 }
 0x3e5   : > { %v6467_v14 = vpop.f32.mrb[255].mxu0  ;;  %v6351_v4 = vpop.f32.mrb[220].mxu1  ;;  %v9315_v48 = vadd.f32 %v6462_v37, %v4753_v11 }
 0x3e6   : > { %v6468_v23 = vadd.f32 %v6467_v14, %v6466_v31  ;;  %v6352_v44 = vpop.f32.mrb[221].mxu1 }
 0x3e7   : > { %v6353_v20 = vadd.f32 %v6352_v44, %v6351_v4  ;;  %v6354_v28 = vpop.f32.mrb[222].mxu1 }
 0x3e8   : > { %v6355_v49 = vpop.f32.mrb[223].mxu1 }
 0x3e9   : > { %v4758_v51 = vadd.f32 %v6353_v20, %v9212_v10  ;;  %v6356_v2 = vadd.f32 %v6355_v49, %v6354_v28 }
 0x3ea   : > { %v6469_v12 = vpop.f32.mrb[0].mxu0 }
 0x3eb   : > { %v6470_v32 = vpop.f32.mrb[1].mxu0  ;;  %v4761_v34 = vadd.f32 %v6356_v2, %v9214_v19  ;;  %v9319_v6 = vadd.f32 %v6465_v55, %v4758_v51 }
 0x3ec   : > { %v6471_v27 = vadd.f32 %v6470_v32, %v6469_v12  ;;  %v6472_v59 = vpop.f32.mrb[2].mxu0 }
 0x3ed   : > { %v6473_v13 = vpop.f32.mrb[3].mxu0  ;;  %v6357_v57 = vpop.f32.mrb[224].mxu1  ;;  %v9321_v38 = vadd.f32 %v6468_v23, %v4761_v34 }
 0x3ee   : > { %v6474_v26 = vadd.f32 %v6473_v13, %v6472_v59  ;;  %v6358_v5 = vpop.f32.mrb[225].mxu1 }
 0x3ef   : > { %v6359_v37 = vadd.f32 %v6358_v5, %v6357_v57  ;;  %v6360_v50 = vpop.f32.mrb[226].mxu1 }
 0x3f0   : > { %v6361_v21 = vpop.f32.mrb[227].mxu1 }
 0x3f1   : > { %v4766_v10 = vadd.f32 %v6359_v37, %v9220_v43  ;;  %v6362_v1 = vadd.f32 %v6361_v21, %v6360_v50 }
 0x3f2   : > { %v6475_v30 = vpop.f32.mrb[4].mxu0 }
 0x3f3   : > { %v6476_v7 = vpop.f32.mrb[5].mxu0  ;;  %v4769_v19 = vadd.f32 %v6362_v1, %v9222_v53  ;;  %v9325_v40 = vadd.f32 %v6471_v27, %v4766_v10 }
 0x3f4   : > { %v6477_v15 = vadd.f32 %v6476_v7, %v6475_v30  ;;  %v6478_v17 = vpop.f32.mrb[6].mxu0 }
 0x3f5   : > { %v6479_v11 = vpop.f32.mrb[7].mxu0  ;;  %v6363_v55 = vpop.f32.mrb[228].mxu1  ;;  %v9327_v14 = vadd.f32 %v6474_v26, %v4769_v19 }
 0x3f6   : > { %v6480_v31 = vadd.f32 %v6479_v11, %v6478_v17  ;;  %v6364_v4 = vpop.f32.mrb[229].mxu1 }
 0x3f7   : > { %v6365_v23 = vadd.f32 %v6364_v4, %v6363_v55  ;;  %v6366_v44 = vpop.f32.mrb[230].mxu1 }
 0x3f8   : > { %v6367_v20 = vpop.f32.mrb[231].mxu1 }
 0x3f9   : > { %v4774_v43 = vadd.f32 %v6365_v23, %v9228_v16  ;;  %v6368_v28 = vadd.f32 %v6367_v20, %v6366_v44 }
 0x3fa   : > { %v6481_v49 = vpop.f32.mrb[8].mxu0 }
 0x3fb   : > { %v6482_v51 = vpop.f32.mrb[9].mxu0  ;;  %v4777_v53 = vadd.f32 %v6368_v28, %v9230_v29  ;;  %v9331_v32 = vadd.f32 %v6477_v15, %v4774_v43 }
 0x3fc   : > { %v6483_v2 = vadd.f32 %v6482_v51, %v6481_v49  ;;  %v6484_v12 = vpop.f32.mrb[10].mxu0 }
 0x3fd   : > { %v6485_v34 = vpop.f32.mrb[11].mxu0  ;;  %v6369_v27 = vpop.f32.mrb[232].mxu1  ;;  %v9333_v13 = vadd.f32 %v6480_v31, %v4777_v53 }
 0x3fe   : > { %v6486_v59 = vadd.f32 %v6485_v34, %v6484_v12  ;;  %v6370_v57 = vpop.f32.mrb[233].mxu1 }
 0x3ff   : > { %v6371_v26 = vadd.f32 %v6370_v57, %v6369_v27  ;;  %v6372_v5 = vpop.f32.mrb[234].mxu1 }
 0x400   : > { %v6373_v37 = vpop.f32.mrb[235].mxu1 }
 0x401   : > { %v4782_v16 = vadd.f32 %v6371_v26, %v9236_v61  ;;  %v6374_v50 = vadd.f32 %v6373_v37, %v6372_v5 }
 0x402   : > { %v6487_v21 = vpop.f32.mrb[12].mxu0 }
 0x403   : > { %v6488_v10 = vpop.f32.mrb[13].mxu0  ;;  %v4785_v29 = vadd.f32 %v6374_v50, %v9238_v58  ;;  %v9337_v7 = vadd.f32 %v6483_v2, %v4782_v16 }
 0x404   : > { %v6489_v1 = vadd.f32 %v6488_v10, %v6487_v21  ;;  %v6490_v30 = vpop.f32.mrb[14].mxu0 }
 0x405   : > { %v6491_v19 = vpop.f32.mrb[15].mxu0  ;;  %v6375_v15 = vpop.f32.mrb[236].mxu1  ;;  %v9339_v11 = vadd.f32 %v6486_v59, %v4785_v29 }
 0x406   : > { %v6492_v17 = vadd.f32 %v6491_v19, %v6490_v30  ;;  %v6376_v55 = vpop.f32.mrb[237].mxu1 }
 0x407   : > { %v6377_v31 = vadd.f32 %v6376_v55, %v6375_v15  ;;  %v6378_v4 = vpop.f32.mrb[238].mxu1 }
 0x408   : > { %v6379_v23 = vpop.f32.mrb[239].mxu1 }
 0x409   : > { %v4790_v61 = vadd.f32 %v6377_v31, %v9244_v3  ;;  %v6380_v44 = vadd.f32 %v6379_v23, %v6378_v4 }
 0x40a   : > { %v6493_v20 = vpop.f32.mrb[16].mxu0 }
 0x40b   : > { %v6494_v43 = vpop.f32.mrb[17].mxu0  ;;  %v4793_v58 = vadd.f32 %v6380_v44, %v9246_v18  ;;  %v9343_v51 = vadd.f32 %v6489_v1, %v4790_v61 }
 0x40c   : > { %v6495_v28 = vadd.f32 %v6494_v43, %v6493_v20  ;;  %v6496_v49 = vpop.f32.mrb[18].mxu0 }
 0x40d   : > { %v6497_v53 = vpop.f32.mrb[19].mxu0  ;;  %v6381_v2 = vpop.f32.mrb[240].mxu1  ;;  %v9345_v34 = vadd.f32 %v6492_v17, %v4793_v58 }
 0x40e   : > { %v6498_v12 = vadd.f32 %v6497_v53, %v6496_v49  ;;  %v6382_v27 = vpop.f32.mrb[241].mxu1 }
 0x40f   : > { %v6383_v59 = vadd.f32 %v6382_v27, %v6381_v2  ;;  %v6384_v57 = vpop.f32.mrb[242].mxu1 }
 0x410   : > { %v6385_v26 = vpop.f32.mrb[243].mxu1 }
 0x411   : > { %v4798_v3 = vadd.f32 %v6383_v59, %v9253_v63  ;;  %v6386_v5 = vadd.f32 %v6385_v26, %v6384_v57 }
 0x412   : > { %v6499_v37 = vpop.f32.mrb[20].mxu0 }
 0x413   : > { %v6500_v16 = vpop.f32.mrb[21].mxu0  ;;  %v4801_v18 = vadd.f32 %v6386_v5, %v9255_v0  ;;  %v9349_v10 = vadd.f32 %v6495_v28, %v4798_v3 }
 0x414   : > { %v6501_v50 = vadd.f32 %v6500_v16, %v6499_v37  ;;  %v6502_v21 = vpop.f32.mrb[22].mxu0 }
 0x415   : > { %v6503_v29 = vpop.f32.mrb[23].mxu0  ;;  %v6387_v1 = vpop.f32.mrb[244].mxu1  ;;  %v9351_v19 = vadd.f32 %v6498_v12, %v4801_v18 }
 0x416   : > { %v6504_v30 = vadd.f32 %v6503_v29, %v6502_v21  ;;  %v6388_v15 = vpop.f32.mrb[245].mxu1 }
 0x417   : > { %v6389_v17 = vadd.f32 %v6388_v15, %v6387_v1  ;;  %v6390_v55 = vpop.f32.mrb[246].mxu1 }
 0x418   : > { %v6391_v31 = vpop.f32.mrb[247].mxu1 }
 0x419   : > { %v4806_v63 = vadd.f32 %v6389_v17, %v9259_v8  ;;  %v6392_v4 = vadd.f32 %v6391_v31, %v6390_v55 }
 0x41a   : > { %v6505_v23 = vpop.f32.mrb[24].mxu0 }
 0x41b   : > { %v6506_v61 = vpop.f32.mrb[25].mxu0  ;;  %v4809_v0 = vadd.f32 %v6392_v4, %v9261_v45  ;;  %v9355_v43 = vadd.f32 %v6501_v50, %v4806_v63 }
 0x41c   : > { %v6507_v44 = vadd.f32 %v6506_v61, %v6505_v23  ;;  %v6508_v20 = vpop.f32.mrb[26].mxu0 }
 0x41d   : > { %v6509_v58 = vpop.f32.mrb[27].mxu0  ;;  %v6393_v28 = vpop.f32.mrb[248].mxu1  ;;  %v9357_v53 = vadd.f32 %v6504_v30, %v4809_v0 }
 0x41e   : > { %v6510_v49 = vadd.f32 %v6509_v58, %v6508_v20  ;;  %v6394_v2 = vpop.f32.mrb[249].mxu1 }
 0x41f   : > { %v6395_v12 = vadd.f32 %v6394_v2, %v6393_v28  ;;  %v6396_v27 = vpop.f32.mrb[250].mxu1 }
 0x420   : > { %v6397_v59 = vpop.f32.mrb[251].mxu1 }
 0x421   : > { %v4814_v8 = vadd.f32 %v6395_v12, %v9265_v41  ;;  %v6398_v57 = vadd.f32 %v6397_v59, %v6396_v27 }
 0x422   : > { %v6511_v26 = vpop.f32.mrb[28].mxu0 }
 0x423   : > { %v6512_v3 = vpop.f32.mrb[29].mxu0  ;;  %v4817_v45 = vadd.f32 %v6398_v57, %v9267_v9  ;;  %v9361_v16 = vadd.f32 %v6507_v44, %v4814_v8 }
 0x424   : > { %v6513_v5 = vadd.f32 %v6512_v3, %v6511_v26  ;;  %v6514_v37 = vpop.f32.mrb[30].mxu0 }
 0x425   : > { %v6515_v18 = vpop.f32.mrb[31].mxu0  ;;  %v6399_v50 = vpop.f32.mrb[252].mxu1  ;;  %v9363_v29 = vadd.f32 %v6510_v49, %v4817_v45 }
 0x426   : > { %v6516_v21 = vadd.f32 %v6515_v18, %v6514_v37  ;;  %v6400_v1 = vpop.f32.mrb[253].mxu1 }
 0x427   : > { %v6401_v30 = vadd.f32 %v6400_v1, %v6399_v50  ;;  %v6402_v15 = vpop.f32.mrb[254].mxu1 }
 0x428   : > { %v6403_v41 = vpop.f32.mrb[255].mxu1 }
 0x429   : > { %v4822_v17 = vadd.f32 %v6401_v30, %v9271_v25  ;;  %v6404_v55 = vadd.f32 %v6403_v41, %v6402_v15 }
 0x42b   : > { %v4825_v9 = vadd.f32 %v6404_v55, %v9273_v36  ;;  %v9368_v31 = vadd.f32 %v6513_v5, %v4822_v17 }
 0x42d   : > { %v6607_v63 = vpop.f32.mrb[0].mxu1  ;;  %v9372_v4 = vadd.f32 %v6516_v21, %v4825_v9 }
 0x42e   : > { %v5032_v23 = vadd.f32 %v6607_v63, %v9283_v24  ;;  %v5023_v61 = vpop.f32.mrb[1].mxu1 }
 0x42f   : > { %v5024_v0 = vadd.f32 %v5023_v61, %v9277_v60  ;;  %v6608_v44 = vpop.f32.mrb[2].mxu1 }
 0x430   : > { %v5152_v20 = vmax.f32 %v5032_v23, 0.0  ;;  %v5035_v25 = vadd.f32 %v6608_v44, %v9285_v47  ;;  %v5026_v58 = vpop.f32.mrb[3].mxu1 }
 0x431   : > { %v5150_v28 = vmax.f32 %v5024_v0, 0.0  ;;  %v5027_v36 = vadd.f32 %v5026_v58, %v9279_v56 }
 0x432   : > { %5184 = vst [vmem:[%s9378_s11 + $0x10] sm:$0xff] %v5152_v20  ;;  %v5153_v24 = vmax.f32 %v5035_v25, 0.0 }
 0x433   : > { %5182 = vst [vmem:[%s9378_s11] sm:$0xff] %v5150_v28  ;;  %v5151_v60 = vmax.f32 %v5027_v36, 0.0 }
 0x434   : > { %5185 = vst [vmem:[%s9378_s11 + $0x18] sm:$0xff] %v5153_v24 }
 0x435   : > { %5183 = vst [vmem:[%s9378_s11 + $0x8] sm:$0xff] %v5151_v60  ;;  %v6611_v47 = vpop.f32.mrb[4].mxu1 }
 0x436   : > { %v5048_v49 = vadd.f32 %v6611_v47, %v9295_v46  ;;  %v5039_v56 = vpop.f32.mrb[5].mxu1 }
 0x437   : > { %v5040_v2 = vadd.f32 %v5039_v56, %v9289_v22  ;;  %v6612_v12 = vpop.f32.mrb[6].mxu1 }
 0x438   : > { %v5156_v27 = vmax.f32 %v5048_v49, 0.0  ;;  %v5051_v59 = vadd.f32 %v6612_v12, %v9297_v54  ;;  %v5042_v8 = vpop.f32.mrb[7].mxu1 }
 0x439   : > { %v5154_v57 = vmax.f32 %v5040_v2, 0.0  ;;  %v5043_v26 = vadd.f32 %v5042_v8, %v9291_v33 }
 0x43a   : > { %5188 = vst [vmem:[%s9378_s11 + $0x30] sm:$0xff] %v5156_v27  ;;  %v5157_v3 = vmax.f32 %v5051_v59, 0.0 }
 0x43b   : > { %5186 = vst [vmem:[%s9378_s11 + $0x20] sm:$0xff] %v5154_v57  ;;  %v5155_v45 = vmax.f32 %v5043_v26, 0.0 }
 0x43c   : > { %5189 = vst [vmem:[%s9378_s11 + $0x38] sm:$0xff] %v5157_v3 }
 0x43d   : > { %5187 = vst [vmem:[%s9378_s11 + $0x28] sm:$0xff] %v5155_v45  ;;  %v6615_v46 = vpop.f32.mrb[8].mxu1 }
 0x43e   : > { %v5064_v22 = vadd.f32 %v6615_v46, %v9307_v52  ;;  %v5055_v5 = vpop.f32.mrb[9].mxu1 }
 0x43f   : > { %v5056_v54 = vadd.f32 %v5055_v5, %v9301_v35  ;;  %v6616_v37 = vpop.f32.mrb[10].mxu1 }
 0x440   : > { %v5160_v18 = vmax.f32 %v5064_v22, 0.0  ;;  %v5067_v33 = vadd.f32 %v6616_v37, %v9309_v62  ;;  %v5058_v50 = vpop.f32.mrb[11].mxu1 }
 0x441   : > { %v5158_v21 = vmax.f32 %v5056_v54, 0.0  ;;  %v5059_v1 = vadd.f32 %v5058_v50, %v9303_v39 }
 0x442   : > { %5192 = vst [vmem:[%s9378_s11 + $0x50] sm:$0xff] %v5160_v18  ;;  %v5161_v30 = vmax.f32 %v5067_v33, 0.0 }
 0x443   : > { %5190 = vst [vmem:[%s9378_s11 + $0x40] sm:$0xff] %v5158_v21  ;;  %v5159_v15 = vmax.f32 %v5059_v1, 0.0 }
 0x444   : > { %5193 = vst [vmem:[%s9378_s11 + $0x58] sm:$0xff] %v5161_v30 }
 0x445   : > { %5191 = vst [vmem:[%s9378_s11 + $0x48] sm:$0xff] %v5159_v15  ;;  %v6619_v52 = vpop.f32.mrb[12].mxu1 }
 0x446   : > { %v5080_v35 = vadd.f32 %v6619_v52, %v9319_v6  ;;  %v5071_v41 = vpop.f32.mrb[13].mxu1 }
 0x447   : > { %v5072_v62 = vadd.f32 %v5071_v41, %v9313_v42  ;;  %v6620_v17 = vpop.f32.mrb[14].mxu1 }
 0x448   : > { %v5164_v55 = vmax.f32 %v5080_v35, 0.0  ;;  %v5083_v39 = vadd.f32 %v6620_v17, %v9321_v38  ;;  %v5074_v9 = vpop.f32.mrb[15].mxu1 }
 0x449   : > { %v5162_v63 = vmax.f32 %v5072_v62, 0.0  ;;  %v5075_v23 = vadd.f32 %v5074_v9, %v9315_v48 }
 0x44a   : > { %5196 = vst [vmem:[%s9378_s11 + $0x70] sm:$0xff] %v5164_v55  ;;  %v5165_v61 = vmax.f32 %v5083_v39, 0.0 }
 0x44b   : > { %5194 = vst [vmem:[%s9378_s11 + $0x60] sm:$0xff] %v5162_v63  ;;  %v5163_v0 = vmax.f32 %v5075_v23, 0.0 }
 0x44c   : > { %5197 = vst [vmem:[%s9378_s11 + $0x78] sm:$0xff] %v5165_v61 }
 0x44d   : > { %5195 = vst [vmem:[%s9378_s11 + $0x68] sm:$0xff] %v5163_v0  ;;  %v6623_v6 = vpop.f32.mrb[16].mxu1 }
 0x44e   : > { %v5096_v42 = vadd.f32 %v6623_v6, %v9331_v32  ;;  %v5087_v44 = vpop.f32.mrb[17].mxu1 }
 0x44f   : > { %v5088_v38 = vadd.f32 %v5087_v44, %v9325_v40  ;;  %v6624_v20 = vpop.f32.mrb[18].mxu1 }
 0x450   : > { %v5168_v25 = vmax.f32 %v5096_v42, 0.0  ;;  %v5099_v48 = vadd.f32 %v6624_v20, %v9333_v13  ;;  %v5090_v58 = vpop.f32.mrb[19].mxu1 }
 0x451   : > { %v5166_v28 = vmax.f32 %v5088_v38, 0.0  ;;  %v5091_v36 = vadd.f32 %v5090_v58, %v9327_v14 }
 0x452   : > { %5200 = vst [vmem:[%s9378_s11 + $0x90] sm:$0xff] %v5168_v25  ;;  %v5169_v24 = vmax.f32 %v5099_v48, 0.0 }
 0x453   : > { %5198 = vst [vmem:[%s9378_s11 + $0x80] sm:$0xff] %v5166_v28  ;;  %v5167_v60 = vmax.f32 %v5091_v36, 0.0 }
 0x454   : > { %5201 = vst [vmem:[%s9378_s11 + $0x98] sm:$0xff] %v5169_v24 }
 0x455   : > { %5199 = vst [vmem:[%s9378_s11 + $0x88] sm:$0xff] %v5167_v60  ;;  %v6627_v32 = vpop.f32.mrb[20].mxu1 }
 0x456   : > { %v5112_v40 = vadd.f32 %v6627_v32, %v9343_v51  ;;  %v5103_v47 = vpop.f32.mrb[21].mxu1 }
 0x457   : > { %v5104_v13 = vadd.f32 %v5103_v47, %v9337_v7  ;;  %v6628_v49 = vpop.f32.mrb[22].mxu1 }
 0x458   : > { %v5172_v56 = vmax.f32 %v5112_v40, 0.0  ;;  %v5115_v14 = vadd.f32 %v6628_v49, %v9345_v34  ;;  %v5106_v2 = vpop.f32.mrb[23].mxu1 }
 0x459   : > { %v5170_v12 = vmax.f32 %v5104_v13, 0.0  ;;  %v5107_v27 = vadd.f32 %v5106_v2, %v9339_v11 }
 0x45a   : > { %5204 = vst [vmem:[%s9378_s11 + $0xb0] sm:$0xff] %v5172_v56  ;;  %v5173_v59 = vmax.f32 %v5115_v14, 0.0 }
 0x45b   : > { %5202 = vst [vmem:[%s9378_s11 + $0xa0] sm:$0xff] %v5170_v12  ;;  %v5171_v8 = vmax.f32 %v5107_v27, 0.0 }
 0x45c   : > { %5205 = vst [vmem:[%s9378_s11 + $0xb8] sm:$0xff] %v5173_v59 }
 0x45d   : > { %5203 = vst [vmem:[%s9378_s11 + $0xa8] sm:$0xff] %v5171_v8  ;;  %v6631_v51 = vpop.f32.mrb[24].mxu1 }
 0x45e   : > { %v5128_v7 = vadd.f32 %v6631_v51, %v9355_v43  ;;  %v5119_v57 = vpop.f32.mrb[25].mxu1 }
 0x45f   : > { %v5120_v34 = vadd.f32 %v5119_v57, %v9349_v10  ;;  %v6632_v26 = vpop.f32.mrb[26].mxu1 }
 0x460   : > { %v5176_v3 = vmax.f32 %v5128_v7, 0.0  ;;  %v5131_v11 = vadd.f32 %v6632_v26, %v9357_v53  ;;  %v5122_v45 = vpop.f32.mrb[27].mxu1 }
 0x461   : > { %v5174_v46 = vmax.f32 %v5120_v34, 0.0  ;;  %v5123_v22 = vadd.f32 %v5122_v45, %v9351_v19 }
 0x462   : > { %5208 = vst [vmem:[%s9378_s11 + $0xd0] sm:$0xff] %v5176_v3  ;;  %v5177_v5 = vmax.f32 %v5131_v11, 0.0 }
 0x463   : > { %5206 = vst [vmem:[%s9378_s11 + $0xc0] sm:$0xff] %v5174_v46  ;;  %v5175_v54 = vmax.f32 %v5123_v22, 0.0 }
 0x464   : > { %5209 = vst [vmem:[%s9378_s11 + $0xd8] sm:$0xff] %v5177_v5 }
 0x465   : > { %5207 = vst [vmem:[%s9378_s11 + $0xc8] sm:$0xff] %v5175_v54  ;;  %v6635_v43 = vpop.f32.mrb[28].mxu1 }
 0x466   : > { %v5144_v10 = vadd.f32 %v6635_v43, %v9368_v31  ;;  %v5135_v37 = vpop.f32.mrb[29].mxu1 }
 0x467   : > { %v5136_v53 = vadd.f32 %v5135_v37, %v9361_v16  ;;  %v6636_v18 = vpop.f32.mrb[30].mxu1 }
 0x468   : > { %v5180_v19 = vmax.f32 %v5144_v10, 0.0  ;;  %v5147_v33 = vadd.f32 %v6636_v18, %v9372_v4  ;;  %v5138_v50 = vpop.f32.mrb[31].mxu1 }
 0x469   : > { %v5178_v21 = vmax.f32 %v5136_v53, 0.0  ;;  %v5139_v1 = vadd.f32 %v5138_v50, %v9363_v29 }
 0x46a   : > { %5212 = vst [vmem:[%s9378_s11 + $0xf0] sm:$0xff] %v5180_v19  ;;  %v5181_v30 = vmax.f32 %v5147_v33, 0.0 }
 0x46b   : > { %5210 = vst [vmem:[%s9378_s11 + $0xe0] sm:$0xff] %v5178_v21  ;;  %v5179_v16 = vmax.f32 %v5139_v1, 0.0 }
 0x46c   : > { %5213 = vst [vmem:[%s9378_s11 + $0xf8] sm:$0xff] %v5181_v30 }
 0x46d   : > { %5211 = vst [vmem:[%s9378_s11 + $0xe8] sm:$0xff] %v5179_v16 }
 0x46e   : > { %6856 = shalt.err (!%p6853_p3)
}
 0x46f   : > { %s6857_s20 = scalar_lea.hbm %s9442_s14, 4096  ;;  %s6861_s9 = scalar_lea.hbm %s9498_s6, 8192 }
 0x470   : > { %p6858_p4 = scmp.ne.s32.totalorder %s9442_s14, %s6857_s20  ;;  %p6862_p9 = scmp.lt.u32.totalorder %s9442_s14, %s9498_s6 }
 0x471   : > { %p6863_p10 = scmp.lt.u32.totalorder %s6861_s9, %s6857_s20  ;;  %p6865_p12 = scmp.lt.u32.totalorder %s6857_s20, %s9442_s14 }
 0x472   : > { %p6859_p7 = pnand %p6858_p4, %p6984_p5 }
 0x473   : > { %p6864_p11 = por %p6863_p10, %p6862_p9 }
 0x474   : > { %p6860_p8 = pneg %p6859_p7 }
 0x475   : > { %p6866_p13 = por %p6865_p12, %p6864_p11 }
 0x477   : > { %p6867_p0 = pnand %p6866_p13, %p6860_p8 }
 0x479   : > { %6870 = shalt.err (!%p6867_p0)
}
 0x47a   : > { %s6909_s17 = smov 128   ;;  %s6910_s12 = smov 8  }
 0x47b   : > { %6638 = dma.vmem_to_hbm [thread:$0]  (%p6984_p5), %s9444_s10, 4096, %s9442_s14, %s9451_s25, %s6909_s17, %s6909_s17, %s6910_s12  }
 0x47c PF: > { %p6644_p1 = scmp.ge.s32.totalorder %s6905_s24, 2  ;;  %s5243_s13 = sand.u32 1, %s6893_s21  }
 0x47d   : > { %s5244_s16 = scalar_lea.sflag [#allocation4], %s5243_s13 }
 0x47e   : > { %p6641_p2 = pnand %p6644_p1, %p6988_p6 }
 0x480   : > { %6888 = dma.done.wait (!%p6641_p2), %s5244_s16, 4096  }
 0x481   : > { %6890 = vsyncadd (!%p6641_p2), %s5244_s16, 4294963200  ;;  %p16_p3 = scmp.ge.s32.totalorder %s6971_s27, 4   ;;  %s9572_s21 = smov %s6897_s22 }
 0x482   : > { %s9573_s22 = smov %s6901_s23  ;;  %s9574_s23 = smov %s6982_s30 }
 0x483   : > { %s9575_s24 = smov %s6971_s27  ;;  %18 = sbr.rel (!%p16_p3) target bundleno = 3 (0x3), region = 84 }
 0x48a   :  { %5249 = vsyncpa [#allocation4], 1 }
 0x48b   :  { %5251 = vsyncpa [#allocation4 + $0x1], 1 }

</bundles_post_ra>
